<compile_context>
chip_gen: v6e
topology: v6e:2x2x1
jax: 0.10.0
libtpu: 0.0.40
codegen_flags: <defaults>
</compile_context>

<pallas_src>
import functools

import jax
import jax.numpy as jnp
from jax.experimental import pallas as pl
from jax.experimental.pallas import tpu as pltpu

# ----------------------------- model config (small, T5-v1.1-like) -----------
VOCAB = 64
D_MODEL = 128
NUM_HEADS = 8
D_KV = D_MODEL // NUM_HEADS     # 16 ; NUM_HEADS * D_KV == D_MODEL
D_FF = 256
NUM_LAYERS = 2
NUM_BUCKETS = 8
MAX_DISTANCE = 16
EPS = 1e-6
NEG_INF = -1e9

BATCH = 2
SEQ = 8


# ----------------------------- kernel ---------------------------------------
def _rms_norm(x, w):
    # T5 LayerNorm: no mean subtraction, no bias.
    var = jnp.mean(x * x, axis=-1, keepdims=True)
    return x * jax.lax.rsqrt(var + EPS) * w


def t5_encoder_layer_kernel(x_ref, bias_ref, neg_ref,
                            ln1_ref, wqkv_ref, wo_ref,
                            ln2_ref, wi_ref, wffo_ref, fln_ref,
                            o_ref, *, batch, seq):
    """One T5 v1.1 encoder layer per grid step (grid axis = layer, arbitrary).

    x_ref     (B*S, D)       f32  initial hidden states (read only at l == 0)
    bias_ref  (H, S, S)      f32  shared relative-position bias
    neg_ref   (B, S)         f32  key-padding additive term (0 or -1e9)
    ln1/ln2   (1, D)         f32  per-layer RMSNorm weights (layer-streamed)
    wqkv      (D, 3D)        bf16 fused Q|K|V projection (layer-streamed)
    wo        (D, D)         bf16 concat-heads output projection
    wi        (D, 2*D_FF)    bf16 fused gate|up projection
    wffo      (D_FF, D)      bf16
    fln       (1, D)         f32  final RMSNorm weight
    o_ref     (B*S, D)       f32  resident hidden-state accumulator / output
    """
    bf16 = jnp.bfloat16
    f32 = jnp.float32

    l = pl.program_id(0)
    last = pl.num_programs(0) - 1

    @pl.when(l == 0)
    def _init():
        o_ref[...] = x_ref[...]

    x = o_ref[...]                                          # (BS, D) f32
    bias = bias_ref[...]                                    # (H, S, S)
    neg = neg_ref[...]                                      # (B, S)

    # ---- self-attention sub-layer (pre-norm, residual) ----------------------
    h = _rms_norm(x, ln1_ref[...])                          # (BS, D)
    qkv = jnp.dot(h.astype(bf16), wqkv_ref[...],
                  preferred_element_type=f32)               # (BS, 3D)
    q = qkv[:, :D_MODEL]                                    # lane-aligned slices
    k = qkv[:, D_MODEL:2 * D_MODEL]
    v = qkv[:, 2 * D_MODEL:]

    ctx_blocks = []
    for b in range(batch):                                  # per-batch attention
        r0, r1 = b * seq, (b + 1) * seq                     # sublane-aligned rows
        qb = q[r0:r1].reshape(seq, NUM_HEADS, D_KV)         # heads via reshape
        kb = k[r0:r1].reshape(seq, NUM_HEADS, D_KV)
        vb = v[r0:r1].reshape(seq, NUM_HEADS, D_KV)

        # T5 attention is unscaled (no 1/sqrt(d_k)).
        s = jnp.einsum('qhd,khd->hqk', qb.astype(bf16), kb.astype(bf16),
                       preferred_element_type=f32)          # (H, S, S)
        s = s + bias + neg[b:b + 1, :][None]                # pos bias + key pad
        s = s - jnp.max(s, axis=-1, keepdims=True)
        p = jnp.exp(s)
        p = p * pl.reciprocal(jnp.sum(p, axis=-1, keepdims=True), approx=True)

        cb = jnp.einsum('hqk,khd->qhd', p.astype(bf16), vb.astype(bf16),
                        preferred_element_type=f32)         # (S, H, d_kv)
        ctx_blocks.append(cb.reshape(seq, D_MODEL))         # fold heads to lanes

    ctx = jnp.concatenate(ctx_blocks, axis=0)               # (BS, D)
    attn = jnp.dot(ctx.astype(bf16), wo_ref[...],
                   preferred_element_type=f32)              # one (BS,D)@(D,D)
    x = x + attn

    # ---- gated-GELU feed-forward sub-layer (T5 v1.1) -------------------------
    h2 = _rms_norm(x, ln2_ref[...])
    giu = jnp.dot(h2.astype(bf16), wi_ref[...],
                  preferred_element_type=f32)               # (BS, 2*D_FF)
    g = jax.nn.gelu(giu[:, :D_FF], approximate=True)
    u = giu[:, D_FF:]
    ff = jnp.dot((g * u).astype(bf16), wffo_ref[...],
                 preferred_element_type=f32)                # (BS, D)
    x = x + ff

    @pl.when(l != last)
    def _store():
        o_ref[...] = x                                      # carry to next layer

    @pl.when(l == last)
    def _finalize():
        o_ref[...] = _rms_norm(x, fln_ref[...])             # final RMSNorm


# ----------------------------- pallas_call wrapper ---------------------------
def run_encoder(x2, bias, neg, params):
    """x2: (B*S, D) f32; bias: (H, S, S) f32; neg: (B, S) f32."""
    bs = x2.shape[0]
    kernel = functools.partial(t5_encoder_layer_kernel, batch=BATCH, seq=SEQ)

    grid_spec = pltpu.PrefetchScalarGridSpec(
        num_scalar_prefetch=0,
        grid=(NUM_LAYERS,),
        in_specs=[
            pl.BlockSpec((bs, D_MODEL), lambda l: (0, 0)),                    # x
            pl.BlockSpec((NUM_HEADS, SEQ, SEQ), lambda l: (0, 0, 0)),         # bias
            pl.BlockSpec((BATCH, SEQ), lambda l: (0, 0)),                     # neg
            pl.BlockSpec((None, 1, D_MODEL), lambda l: (l, 0, 0)),            # ln1
            pl.BlockSpec((None, D_MODEL, 3 * D_MODEL), lambda l: (l, 0, 0)),  # wqkv
            pl.BlockSpec((None, D_MODEL, D_MODEL), lambda l: (l, 0, 0)),      # wo
            pl.BlockSpec((None, 1, D_MODEL), lambda l: (l, 0, 0)),            # ln2
            pl.BlockSpec((None, D_MODEL, 2 * D_FF), lambda l: (l, 0, 0)),     # wi
            pl.BlockSpec((None, D_FF, D_MODEL), lambda l: (l, 0, 0)),         # wffo
            pl.BlockSpec((1, D_MODEL), lambda l: (0, 0)),                     # final ln
        ],
        out_specs=pl.BlockSpec((bs, D_MODEL), lambda l: (0, 0)),              # resident
    )

    return pl.pallas_call(
        kernel,
        out_shape=jax.ShapeDtypeStruct((bs, D_MODEL), jnp.float32),
        grid_spec=grid_spec,
        compiler_params=pltpu.CompilerParams(
            dimension_semantics=("arbitrary",),
            vmem_limit_bytes=32 * 1024 * 1024,
        ),
    )(x2, bias, neg,
      params["ln1"], params["wqkv"], params["wo"],
      params["ln2"], params["wi"], params["wffo"], params["final_ln"])


# ----------------------------- glue (plain JAX) -------------------------------
def relative_position_bucket(relative_position, num_buckets=NUM_BUCKETS,
                             max_distance=MAX_DISTANCE):
    # bidirectional (encoder) bucketing, as in T5.
    num_buckets //= 2
    ret = (relative_position > 0).astype(jnp.int32) * num_buckets
    n = jnp.abs(relative_position)
    max_exact = num_buckets // 2
    is_small = n < max_exact
    n_clamped = jnp.maximum(n, 1).astype(jnp.float32)
    val_if_large = max_exact + (
        jnp.log(n_clamped / max_exact) / jnp.log(max_distance / max_exact)
        * (num_buckets - max_exact)
    ).astype(jnp.int32)
    val_if_large = jnp.minimum(val_if_large, num_buckets - 1)
    ret = ret + jnp.where(is_small, n, val_if_large)
    return ret


def compute_position_bias(rel_bias_table, seq_len):
    ctx_pos = jnp.arange(seq_len)[:, None]
    mem_pos = jnp.arange(seq_len)[None, :]
    buckets = relative_position_bucket(mem_pos - ctx_pos)        # (S, S)
    bias = rel_bias_table[buckets]                               # (S, S, H)
    return jnp.transpose(bias, (2, 0, 1)).astype(jnp.float32)    # (H, S, S)


@jax.jit
def text_encoder_forward(input_ids, attn_mask, params):
    """Mirror of TextEncoder.forward after tokenization: returns
    (last_hidden_state, attention_mask.bool())."""
    B, S = input_ids.shape
    # Embedding lookup (gather) — glue.
    x = params["embed"][input_ids].astype(jnp.float32)           # (B, S, D)
    x2 = x.reshape(B * S, D_MODEL)                               # fold batch for projections

    pos_bias = compute_position_bias(params["rel_bias"], S)      # (H, S, S)
    neg = (1.0 - attn_mask.astype(jnp.float32)) * NEG_INF        # (B, S) key-padding term

    out = run_encoder(x2, pos_bias, neg, params)                 # (B*S, D)
    encoded = out.reshape(B, S, D_MODEL)
    return encoded, attn_mask.astype(bool)


# ----------------------------- deterministic parameter init --------------------
def init_params(key):
    def nrm(k, shape, scale=0.05, dtype=jnp.float32):
        return (scale * jax.random.normal(k, shape, dtype=jnp.float32)).astype(dtype)

    keys = jax.random.split(key, 8)
    return {
        "embed": nrm(keys[0], (VOCAB, D_MODEL), 1.0),
        "rel_bias": nrm(keys[1], (NUM_BUCKETS, NUM_HEADS), 0.1),
        "ln1": jnp.ones((NUM_LAYERS, 1, D_MODEL), jnp.float32),
        "ln2": jnp.ones((NUM_LAYERS, 1, D_MODEL), jnp.float32),
        "final_ln": jnp.ones((1, D_MODEL), jnp.float32),
        # Fused / stacked bf16 weights (MXU-native operands, f32 accumulation).
        "wqkv": nrm(keys[2], (NUM_LAYERS, D_MODEL, 3 * D_MODEL), dtype=jnp.bfloat16),
        "wo": nrm(keys[3], (NUM_LAYERS, D_MODEL, D_MODEL), dtype=jnp.bfloat16),
        "wi": nrm(keys[4], (NUM_LAYERS, D_MODEL, 2 * D_FF), dtype=jnp.bfloat16),
        "wffo": nrm(keys[5], (NUM_LAYERS, D_FF, D_MODEL), dtype=jnp.bfloat16),
    }


# ----------------------------- main --------------------------------------------
if __name__ == "__main__":
    # TODO(synk): T5Tokenizer.batch_encode_plus (string tokenization) has no
    # Pallas equivalent; we start from deterministic integer input_ids.
    key = jax.random.PRNGKey(0)
    k_param, k_ids = jax.random.split(key)

    B, S = BATCH, SEQ
    params = init_params(k_param)

    input_ids = jax.random.randint(k_ids, (B, S), 0, VOCAB, dtype=jnp.int32)
    lengths = jnp.array([S, S - 3], dtype=jnp.int32)          # second sample padded
    attn_mask = (jnp.arange(S)[None, :] < lengths[:, None]).astype(jnp.int32)

    encoded_text, mask_bool = text_encoder_forward(input_ids, attn_mask, params)
    jax.block_until_ready(encoded_text)
    jax.block_until_ready(mask_bool)

    assert encoded_text.shape == (B, S, D_MODEL)
    assert mask_bool.shape == (B, S) and mask_bool.dtype == jnp.bool_
    assert bool(jnp.all(jnp.isfinite(encoded_text)))
    print("KERNEL_OK")
</pallas_src>

<mosaic_0001>
module attributes {stable_mosaic.version = 11 : i64} {
  func.func @t5_encoder_layer_kernel(%arg0: i32, %arg1: memref<16x128xf32, #tpu.memory_space<vmem>>, %arg2: memref<8x8x8xf32, #tpu.memory_space<vmem>>, %arg3: memref<2x8xf32, #tpu.memory_space<vmem>>, %arg4: memref<1x1x128xf32, #tpu.memory_space<vmem>>, %arg5: memref<1x128x384xbf16, #tpu.memory_space<vmem>>, %arg6: memref<1x128x128xbf16, #tpu.memory_space<vmem>>, %arg7: memref<1x1x128xf32, #tpu.memory_space<vmem>>, %arg8: memref<1x128x512xbf16, #tpu.memory_space<vmem>>, %arg9: memref<1x256x128xbf16, #tpu.memory_space<vmem>>, %arg10: memref<1x128xf32, #tpu.memory_space<vmem>>, %arg11: memref<16x128xf32, #tpu.memory_space<vmem>>) attributes {dimension_semantics = [#tpu.dimension_semantics<arbitrary>], iteration_bounds = array<i64: 2>, scalar_prefetch = 0 : i64, scratch_operands = 0 : i64, tpu.core_type = #tpu.core_type<tc>, window_params = [{pipeline_mode = #tpu.pipeline_mode<synchronous>, transform_indices = @transform_0, window_bounds = array<i64: 16, 128>}, {pipeline_mode = #tpu.pipeline_mode<synchronous>, transform_indices = @transform_1, window_bounds = array<i64: 8, 8, 8>}, {pipeline_mode = #tpu.pipeline_mode<synchronous>, transform_indices = @transform_2, window_bounds = array<i64: 2, 8>}, {transform_indices = @transform_3, window_bounds = array<i64: 1, 1, 128>}, {transform_indices = @transform_4, window_bounds = array<i64: 1, 128, 384>}, {transform_indices = @transform_5, window_bounds = array<i64: 1, 128, 128>}, {transform_indices = @transform_6, window_bounds = array<i64: 1, 1, 128>}, {transform_indices = @transform_7, window_bounds = array<i64: 1, 128, 512>}, {transform_indices = @transform_8, window_bounds = array<i64: 1, 256, 128>}, {pipeline_mode = #tpu.pipeline_mode<synchronous>, transform_indices = @transform_9, window_bounds = array<i64: 1, 128>}, {pipeline_mode = #tpu.pipeline_mode<synchronous>, transform_indices = @transform_10, window_bounds = array<i64: 16, 128>}]} {
    %c0_i32 = arith.constant 0 : i32
    %0 = arith.cmpi eq, %arg0, %c0_i32 : i32
    %1 = arith.extui %0 : i1 to i32
    %c0_i32_0 = arith.constant 0 : i32
    %2 = arith.cmpi ne, %1, %c0_i32_0 : i32
    scf.if %2 {
      %c0_49 = arith.constant 0 : index
      %c0_50 = arith.constant 0 : index
      %136 = vector.load %arg1[%c0_49, %c0_50] : memref<16x128xf32, #tpu.memory_space<vmem>>, vector<16x128xf32>
      %c0_51 = arith.constant 0 : index
      %c0_52 = arith.constant 0 : index
      %137 = vector.load %arg11[%c0_51, %c0_52] : memref<16x128xf32, #tpu.memory_space<vmem>>, vector<16x128xf32>
      tpu.vector_store %arg11[%c0_51, %c0_52], %136 {strides = array<i32>} : memref<16x128xf32, #tpu.memory_space<vmem>>, vector<16x128xf32>,
    } else {
    }
    %c0 = arith.constant 0 : index
    %c0_1 = arith.constant 0 : index
    %3 = vector.load %arg11[%c0, %c0_1] : memref<16x128xf32, #tpu.memory_space<vmem>>, vector<16x128xf32>
    %c0_2 = arith.constant 0 : index
    %c0_3 = arith.constant 0 : index
    %c0_4 = arith.constant 0 : index
    %4 = vector.load %arg2[%c0_2, %c0_3, %c0_4] : memref<8x8x8xf32, #tpu.memory_space<vmem>>, vector<8x8x8xf32>
    %c0_5 = arith.constant 0 : index
    %c0_6 = arith.constant 0 : index
    %5 = vector.load %arg3[%c0_5, %c0_6] : memref<2x8xf32, #tpu.memory_space<vmem>>, vector<2x8xf32>
    %c0_7 = arith.constant 0 : index
    %c0_8 = arith.constant 0 : index
    %c0_9 = arith.constant 0 : index
    %6 = vector.load %arg4[%c0_7, %c0_8, %c0_9] : memref<1x1x128xf32, #tpu.memory_space<vmem>>, vector<1x1x128xf32>
    %7 = vector.shape_cast %6 : vector<1x1x128xf32> to vector<1x128xf32>
    %8 = arith.mulf %3, %3 : vector<16x128xf32>
    %cst = arith.constant dense<0.000000e+00> : vector<16xf32>
    %9 = vector.multi_reduction <add>, %8, %cst [1] : vector<16x128xf32> to vector<16xf32>
    %10 = vector.shape_cast %9 : vector<16xf32> to vector<16x1xf32>
    %cst_10 = arith.constant 1.280000e+02 : f32
    %11 = vector.broadcast %cst_10 : f32 to vector<16x1xf32>
    %12 = arith.divf %10, %11 : vector<16x1xf32>
    %cst_11 = arith.constant 9.99999997E-7 : f32
    %13 = vector.broadcast %cst_11 : f32 to vector<16x1xf32>
    %14 = arith.addf %12, %13 : vector<16x1xf32>
    %15 = math.rsqrt %14 : vector<16x1xf32>
    %16 = vector.broadcast %15 : vector<16x1xf32> to vector<16x128xf32>
    %17 = arith.mulf %3, %16 : vector<16x128xf32>
    %18 = vector.broadcast %7 : vector<1x128xf32> to vector<16x128xf32>
    %19 = arith.mulf %17, %18 : vector<16x128xf32>
    %20 = arith.truncf %19 : vector<16x128xf32> to vector<16x128xbf16>
    %c0_12 = arith.constant 0 : index
    %c0_13 = arith.constant 0 : index
    %c0_14 = arith.constant 0 : index
    %21 = vector.load %arg5[%c0_12, %c0_13, %c0_14] : memref<1x128x384xbf16, #tpu.memory_space<vmem>>, vector<1x128x384xbf16>
    %22 = vector.shape_cast %21 : vector<1x128x384xbf16> to vector<128x384xbf16>
    %cst_15 = arith.constant dense<0.000000e+00> : vector<16x384xf32>
    %23 = tpu.matmul %20, %22, %cst_15 {dimension_numbers = #tpu.dot_dimension_numbers<[1], [0], [0], [1], [0, 0, 1, 1], [], []>} : vector<16x128xbf16>, vector<128x384xbf16>, vector<16x384xf32> -> vector<16x384xf32>
    %24 = vector.extract_strided_slice %23 {offsets = [0, 0], sizes = [16, 128], strides = [1, 1]} : vector<16x384xf32> to vector<16x128xf32>
    %25 = vector.extract_strided_slice %23 {offsets = [0, 128], sizes = [16, 128], strides = [1, 1]} : vector<16x384xf32> to vector<16x128xf32>
    %26 = vector.extract_strided_slice %23 {offsets = [0, 256], sizes = [16, 128], strides = [1, 1]} : vector<16x384xf32> to vector<16x128xf32>
    %27 = vector.extract_strided_slice %24 {offsets = [0, 0], sizes = [8, 128], strides = [1, 1]} : vector<16x128xf32> to vector<8x128xf32>
    %28 = vector.shape_cast %27 : vector<8x128xf32> to vector<8x8x16xf32>
    %29 = vector.extract_strided_slice %25 {offsets = [0, 0], sizes = [8, 128], strides = [1, 1]} : vector<16x128xf32> to vector<8x128xf32>
    %30 = vector.shape_cast %29 : vector<8x128xf32> to vector<8x8x16xf32>
    %31 = vector.extract_strided_slice %26 {offsets = [0, 0], sizes = [8, 128], strides = [1, 1]} : vector<16x128xf32> to vector<8x128xf32>
    %32 = vector.shape_cast %31 : vector<8x128xf32> to vector<8x8x16xf32>
    %33 = arith.truncf %28 : vector<8x8x16xf32> to vector<8x8x16xbf16>
    %34 = arith.truncf %30 : vector<8x8x16xf32> to vector<8x8x16xbf16>
    "tpu.trace_start"() <{level = 10 : i32, message = "qhd,khd->hqk"}> : () -> ()
    %cst_16 = arith.constant dense<0.000000e+00> : vector<8x8x8xf32>
    %35 = tpu.matmul %33, %34, %cst_16 {dimension_numbers = #tpu.dot_dimension_numbers<[2], [2], [0], [0], [0, 1, 0, 0, 1, 0], [1], [1]>} : vector<8x8x16xbf16>, vector<8x8x16xbf16>, vector<8x8x8xf32> -> vector<8x8x8xf32>
    "tpu.trace_stop"() : () -> ()
    %36 = arith.addf %35, %4 : vector<8x8x8xf32>
    %37 = vector.extract_strided_slice %5 {offsets = [0, 0], sizes = [1, 8], strides = [1, 1]} : vector<2x8xf32> to vector<1x8xf32>
    %38 = vector.shape_cast %37 : vector<1x8xf32> to vector<1x1x8xf32>
    %39 = vector.broadcast %38 : vector<1x1x8xf32> to vector<8x8x8xf32>
    %40 = arith.addf %36, %39 : vector<8x8x8xf32>
    %cst_17 = arith.constant dense<0xFF800000> : vector<8x8xf32>
    %41 = vector.multi_reduction <maximumf>, %40, %cst_17 [2] : vector<8x8x8xf32> to vector<8x8xf32>
    %42 = vector.shape_cast %41 : vector<8x8xf32> to vector<8x8x1xf32>
    %43 = vector.broadcast %42 : vector<8x8x1xf32> to vector<8x8x8xf32>
    %44 = arith.subf %40, %43 : vector<8x8x8xf32>
    %45 = math.exp %44 : vector<8x8x8xf32>
    %cst_18 = arith.constant dense<0.000000e+00> : vector<8x8xf32>
    %46 = vector.multi_reduction <add>, %45, %cst_18 [2] : vector<8x8x8xf32> to vector<8x8xf32>
    %47 = vector.shape_cast %46 : vector<8x8xf32> to vector<8x8x1xf32>
    %48 = tpu.reciprocal %47 {approx = true} : vector<8x8x1xf32> -> vector<8x8x1xf32>
    %49 = vector.broadcast %48 : vector<8x8x1xf32> to vector<8x8x8xf32>
    %50 = arith.mulf %45, %49 : vector<8x8x8xf32>
    %51 = arith.truncf %50 : vector<8x8x8xf32> to vector<8x8x8xbf16>
    %52 = arith.truncf %32 : vector<8x8x16xf32> to vector<8x8x16xbf16>
    "tpu.trace_start"() <{level = 10 : i32, message = "hqk,khd->qhd"}> : () -> ()
    %cst_19 = arith.constant dense<0.000000e+00> : vector<8x16x8xf32>
    %53 = tpu.matmul %52, %51, %cst_19 {dimension_numbers = #tpu.dot_dimension_numbers<[0], [2], [2], [1], [0, 1, 0, 2, 1, 1], [1], [0]>} : vector<8x8x16xbf16>, vector<8x8x8xbf16>, vector<8x16x8xf32> -> vector<8x16x8xf32>
    %54 = tpu.transpose %53, [2, 0, 1] : vector<8x16x8xf32> -> vector<8x8x16xf32>
    "tpu.trace_stop"() : () -> ()
    %55 = vector.shape_cast %54 : vector<8x8x16xf32> to vector<8x128xf32>
    %56 = vector.extract_strided_slice %24 {offsets = [8, 0], sizes = [8, 128], strides = [1, 1]} : vector<16x128xf32> to vector<8x128xf32>
    %57 = vector.shape_cast %56 : vector<8x128xf32> to vector<8x8x16xf32>
    %58 = vector.extract_strided_slice %25 {offsets = [8, 0], sizes = [8, 128], strides = [1, 1]} : vector<16x128xf32> to vector<8x128xf32>
    %59 = vector.shape_cast %58 : vector<8x128xf32> to vector<8x8x16xf32>
    %60 = vector.extract_strided_slice %26 {offsets = [8, 0], sizes = [8, 128], strides = [1, 1]} : vector<16x128xf32> to vector<8x128xf32>
    %61 = vector.shape_cast %60 : vector<8x128xf32> to vector<8x8x16xf32>
    %62 = arith.truncf %57 : vector<8x8x16xf32> to vector<8x8x16xbf16>
    %63 = arith.truncf %59 : vector<8x8x16xf32> to vector<8x8x16xbf16>
    "tpu.trace_start"() <{level = 10 : i32, message = "qhd,khd->hqk"}> : () -> ()
    %cst_20 = arith.constant dense<0.000000e+00> : vector<8x8x8xf32>
    %64 = tpu.matmul %62, %63, %cst_20 {dimension_numbers = #tpu.dot_dimension_numbers<[2], [2], [0], [0], [0, 1, 0, 0, 1, 0], [1], [1]>} : vector<8x8x16xbf16>, vector<8x8x16xbf16>, vector<8x8x8xf32> -> vector<8x8x8xf32>
    "tpu.trace_stop"() : () -> ()
    %65 = arith.addf %64, %4 : vector<8x8x8xf32>
    %66 = vector.extract_strided_slice %5 {offsets = [1, 0], sizes = [1, 8], strides = [1, 1]} : vector<2x8xf32> to vector<1x8xf32>
    %67 = vector.shape_cast %66 : vector<1x8xf32> to vector<1x1x8xf32>
    %68 = vector.broadcast %67 : vector<1x1x8xf32> to vector<8x8x8xf32>
    %69 = arith.addf %65, %68 : vector<8x8x8xf32>
    %cst_21 = arith.constant dense<0xFF800000> : vector<8x8xf32>
    %70 = vector.multi_reduction <maximumf>, %69, %cst_21 [2] : vector<8x8x8xf32> to vector<8x8xf32>
    %71 = vector.shape_cast %70 : vector<8x8xf32> to vector<8x8x1xf32>
    %72 = vector.broadcast %71 : vector<8x8x1xf32> to vector<8x8x8xf32>
    %73 = arith.subf %69, %72 : vector<8x8x8xf32>
    %74 = math.exp %73 : vector<8x8x8xf32>
    %cst_22 = arith.constant dense<0.000000e+00> : vector<8x8xf32>
    %75 = vector.multi_reduction <add>, %74, %cst_22 [2] : vector<8x8x8xf32> to vector<8x8xf32>
    %76 = vector.shape_cast %75 : vector<8x8xf32> to vector<8x8x1xf32>
    %77 = tpu.reciprocal %76 {approx = true} : vector<8x8x1xf32> -> vector<8x8x1xf32>
    %78 = vector.broadcast %77 : vector<8x8x1xf32> to vector<8x8x8xf32>
    %79 = arith.mulf %74, %78 : vector<8x8x8xf32>
    %80 = arith.truncf %79 : vector<8x8x8xf32> to vector<8x8x8xbf16>
    %81 = arith.truncf %61 : vector<8x8x16xf32> to vector<8x8x16xbf16>
    "tpu.trace_start"() <{level = 10 : i32, message = "hqk,khd->qhd"}> : () -> ()
    %cst_23 = arith.constant dense<0.000000e+00> : vector<8x16x8xf32>
    %82 = tpu.matmul %81, %80, %cst_23 {dimension_numbers = #tpu.dot_dimension_numbers<[0], [2], [2], [1], [0, 1, 0, 2, 1, 1], [1], [0]>} : vector<8x8x16xbf16>, vector<8x8x8xbf16>, vector<8x16x8xf32> -> vector<8x16x8xf32>
    %83 = tpu.transpose %82, [2, 0, 1] : vector<8x16x8xf32> -> vector<8x8x16xf32>
    "tpu.trace_stop"() : () -> ()
    %84 = vector.shape_cast %83 : vector<8x8x16xf32> to vector<8x128xf32>
    %85 = tpu.concatenate %55, %84 in 0 : vector<8x128xf32>, vector<8x128xf32> -> vector<16x128xf32>
    %86 = arith.truncf %85 : vector<16x128xf32> to vector<16x128xbf16>
    %c0_24 = arith.constant 0 : index
    %c0_25 = arith.constant 0 : index
    %c0_26 = arith.constant 0 : index
    %87 = vector.load %arg6[%c0_24, %c0_25, %c0_26] : memref<1x128x128xbf16, #tpu.memory_space<vmem>>, vector<1x128x128xbf16>
    %88 = vector.shape_cast %87 : vector<1x128x128xbf16> to vector<128x128xbf16>
    %cst_27 = arith.constant dense<0.000000e+00> : vector<16x128xf32>
    %89 = tpu.matmul %86, %88, %cst_27 {dimension_numbers = #tpu.dot_dimension_numbers<[1], [0], [0], [1], [0, 0, 1, 1], [], []>} : vector<16x128xbf16>, vector<128x128xbf16>, vector<16x128xf32> -> vector<16x128xf32>
    %90 = arith.addf %3, %89 : vector<16x128xf32>
    %c0_28 = arith.constant 0 : index
    %c0_29 = arith.constant 0 : index
    %c0_30 = arith.constant 0 : index
    %91 = vector.load %arg7[%c0_28, %c0_29, %c0_30] : memref<1x1x128xf32, #tpu.memory_space<vmem>>, vector<1x1x128xf32>
    %92 = vector.shape_cast %91 : vector<1x1x128xf32> to vector<1x128xf32>
    %93 = arith.mulf %90, %90 : vector<16x128xf32>
    %cst_31 = arith.constant dense<0.000000e+00> : vector<16xf32>
    %94 = vector.multi_reduction <add>, %93, %cst_31 [1] : vector<16x128xf32> to vector<16xf32>
    %95 = vector.shape_cast %94 : vector<16xf32> to vector<16x1xf32>
    %cst_32 = arith.constant 1.280000e+02 : f32
    %96 = vector.broadcast %cst_32 : f32 to vector<16x1xf32>
    %97 = arith.divf %95, %96 : vector<16x1xf32>
    %cst_33 = arith.constant 9.99999997E-7 : f32
    %98 = vector.broadcast %cst_33 : f32 to vector<16x1xf32>
    %99 = arith.addf %97, %98 : vector<16x1xf32>
    %100 = math.rsqrt %99 : vector<16x1xf32>
    %101 = vector.broadcast %100 : vector<16x1xf32> to vector<16x128xf32>
    %102 = arith.mulf %90, %101 : vector<16x128xf32>
    %103 = vector.broadcast %92 : vector<1x128xf32> to vector<16x128xf32>
    %104 = arith.mulf %102, %103 : vector<16x128xf32>
    %105 = arith.truncf %104 : vector<16x128xf32> to vector<16x128xbf16>
    %c0_34 = arith.constant 0 : index
    %c0_35 = arith.constant 0 : index
    %c0_36 = arith.constant 0 : index
    %106 = vector.load %arg8[%c0_34, %c0_35, %c0_36] : memref<1x128x512xbf16, #tpu.memory_space<vmem>>, vector<1x128x512xbf16>
    %107 = vector.shape_cast %106 : vector<1x128x512xbf16> to vector<128x512xbf16>
    %cst_37 = arith.constant dense<0.000000e+00> : vector<16x512xf32>
    %108 = tpu.matmul %105, %107, %cst_37 {dimension_numbers = #tpu.dot_dimension_numbers<[1], [0], [0], [1], [0, 0, 1, 1], [], []>} : vector<16x128xbf16>, vector<128x512xbf16>, vector<16x512xf32> -> vector<16x512xf32>
    %109 = vector.extract_strided_slice %108 {offsets = [0, 0], sizes = [16, 256], strides = [1, 1]} : vector<16x512xf32> to vector<16x256xf32>
    %110 = arith.mulf %109, %109 : vector<16x256xf32>
    %111 = arith.mulf %109, %110 : vector<16x256xf32>
    %cst_38 = arith.constant 4.471500e-02 : f32
    %112 = vector.broadcast %cst_38 : f32 to vector<16x256xf32>
    %113 = arith.mulf %112, %111 : vector<16x256xf32>
    %114 = arith.addf %109, %113 : vector<16x256xf32>
    %cst_39 = arith.constant 0.797884583 : f32
    %115 = vector.broadcast %cst_39 : f32 to vector<16x256xf32>
    %116 = arith.mulf %115, %114 : vector<16x256xf32>
    %117 = math.tanh %116 : vector<16x256xf32>
    %cst_40 = arith.constant 1.000000e+00 : f32
    %118 = vector.broadcast %cst_40 : f32 to vector<16x256xf32>
    %119 = arith.addf %118, %117 : vector<16x256xf32>
    %cst_41 = arith.constant 5.000000e-01 : f32
    %120 = vector.broadcast %cst_41 : f32 to vector<16x256xf32>
    %121 = arith.mulf %120, %119 : vector<16x256xf32>
    %122 = arith.mulf %109, %121 : vector<16x256xf32>
    %123 = vector.extract_strided_slice %108 {offsets = [0, 256], sizes = [16, 256], strides = [1, 1]} : vector<16x512xf32> to vector<16x256xf32>
    %124 = arith.mulf %122, %123 : vector<16x256xf32>
    %125 = arith.truncf %124 : vector<16x256xf32> to vector<16x256xbf16>
    %c0_42 = arith.constant 0 : index
    %c0_43 = arith.constant 0 : index
    %c0_44 = arith.constant 0 : index
    %126 = vector.load %arg9[%c0_42, %c0_43, %c0_44] : memref<1x256x128xbf16, #tpu.memory_space<vmem>>, vector<1x256x128xbf16>
    %127 = vector.shape_cast %126 : vector<1x256x128xbf16> to vector<256x128xbf16>
    %cst_45 = arith.constant dense<0.000000e+00> : vector<16x128xf32>
    %128 = tpu.matmul %125, %127, %cst_45 {dimension_numbers = #tpu.dot_dimension_numbers<[1], [0], [0], [1], [0, 0, 1, 1], [], []>} : vector<16x256xbf16>, vector<256x128xbf16>, vector<16x128xf32> -> vector<16x128xf32>
    %129 = arith.addf %90, %128 : vector<16x128xf32>
    %c1_i32 = arith.constant 1 : i32
    %130 = arith.cmpi ne, %arg0, %c1_i32 : i32
    %131 = arith.extui %130 : i1 to i32
    %c0_i32_46 = arith.constant 0 : i32
    %132 = arith.cmpi ne, %131, %c0_i32_46 : i32
    scf.if %132 {
      %c0_49 = arith.constant 0 : index
      %c0_50 = arith.constant 0 : index
      %136 = vector.load %arg11[%c0_49, %c0_50] : memref<16x128xf32, #tpu.memory_space<vmem>>, vector<16x128xf32>
      tpu.vector_store %arg11[%c0_49, %c0_50], %129 {strides = array<i32>} : memref<16x128xf32, #tpu.memory_space<vmem>>, vector<16x128xf32>,
    } else {
    }
    %c1_i32_47 = arith.constant 1 : i32
    %133 = arith.cmpi eq, %arg0, %c1_i32_47 : i32
    %134 = arith.extui %133 : i1 to i32
    %c0_i32_48 = arith.constant 0 : i32
    %135 = arith.cmpi ne, %134, %c0_i32_48 : i32
    scf.if %135 {
      %c0_49 = arith.constant 0 : index
      %c0_50 = arith.constant 0 : index
      %136 = vector.load %arg10[%c0_49, %c0_50] : memref<1x128xf32, #tpu.memory_space<vmem>>, vector<1x128xf32>
      %137 = arith.mulf %129, %129 : vector<16x128xf32>
      %cst_51 = arith.constant dense<0.000000e+00> : vector<16xf32>
      %138 = vector.multi_reduction <add>, %137, %cst_51 [1] : vector<16x128xf32> to vector<16xf32>
      %139 = vector.shape_cast %138 : vector<16xf32> to vector<16x1xf32>
      %cst_52 = arith.constant 1.280000e+02 : f32
      %140 = vector.broadcast %cst_52 : f32 to vector<16x1xf32>
      %141 = arith.divf %139, %140 : vector<16x1xf32>
      %cst_53 = arith.constant 9.99999997E-7 : f32
      %142 = vector.broadcast %cst_53 : f32 to vector<16x1xf32>
      %143 = arith.addf %141, %142 : vector<16x1xf32>
      %144 = math.rsqrt %143 : vector<16x1xf32>
      %145 = vector.broadcast %144 : vector<16x1xf32> to vector<16x128xf32>
      %146 = arith.mulf %129, %145 : vector<16x128xf32>
      %147 = vector.broadcast %136 : vector<1x128xf32> to vector<16x128xf32>
      %148 = arith.mulf %146, %147 : vector<16x128xf32>
      %c0_54 = arith.constant 0 : index
      %c0_55 = arith.constant 0 : index
      %149 = vector.load %arg11[%c0_54, %c0_55] : memref<16x128xf32, #tpu.memory_space<vmem>>, vector<16x128xf32>
      tpu.vector_store %arg11[%c0_54, %c0_55], %148 {strides = array<i32>} : memref<16x128xf32, #tpu.memory_space<vmem>>, vector<16x128xf32>,
    } else {
    }
    return
  }
  func.func @transform_0(%arg0: i32) -> (i32, i32) {
    %c0_i32 = arith.constant 0 : i32
    %c0_i32_0 = arith.constant 0 : i32
    %c0_i32_1 = arith.constant 0 : i32
    return %c0_i32, %c0_i32_0 : i32, i32
  }
  func.func @transform_1(%arg0: i32) -> (i32, i32, i32) {
    %c0_i32 = arith.constant 0 : i32
    %c0_i32_0 = arith.constant 0 : i32
    %c0_i32_1 = arith.constant 0 : i32
    %c0_i32_2 = arith.constant 0 : i32
    return %c0_i32, %c0_i32_0, %c0_i32_1 : i32, i32, i32
  }
  func.func @transform_2(%arg0: i32) -> (i32, i32) {
    %c0_i32 = arith.constant 0 : i32
    %c0_i32_0 = arith.constant 0 : i32
    %c0_i32_1 = arith.constant 0 : i32
    return %c0_i32, %c0_i32_0 : i32, i32
  }
  func.func @transform_3(%arg0: i32) -> (i32, i32, i32) {
    %c0_i32 = arith.constant 0 : i32
    %c0_i32_0 = arith.constant 0 : i32
    %c0_i32_1 = arith.constant 0 : i32
    return %arg0, %c0_i32, %c0_i32_0 : i32, i32, i32
  }
  func.func @transform_4(%arg0: i32) -> (i32, i32, i32) {
    %c0_i32 = arith.constant 0 : i32
    %c0_i32_0 = arith.constant 0 : i32
    %c0_i32_1 = arith.constant 0 : i32
    return %arg0, %c0_i32, %c0_i32_0 : i32, i32, i32
  }
  func.func @transform_5(%arg0: i32) -> (i32, i32, i32) {
    %c0_i32 = arith.constant 0 : i32
    %c0_i32_0 = arith.constant 0 : i32
    %c0_i32_1 = arith.constant 0 : i32
    return %arg0, %c0_i32, %c0_i32_0 : i32, i32, i32
  }
  func.func @transform_6(%arg0: i32) -> (i32, i32, i32) {
    %c0_i32 = arith.constant 0 : i32
    %c0_i32_0 = arith.constant 0 : i32
    %c0_i32_1 = arith.constant 0 : i32
    return %arg0, %c0_i32, %c0_i32_0 : i32, i32, i32
  }
  func.func @transform_7(%arg0: i32) -> (i32, i32, i32) {
    %c0_i32 = arith.constant 0 : i32
    %c0_i32_0 = arith.constant 0 : i32
    %c0_i32_1 = arith.constant 0 : i32
    return %arg0, %c0_i32, %c0_i32_0 : i32, i32, i32
  }
  func.func @transform_8(%arg0: i32) -> (i32, i32, i32) {
    %c0_i32 = arith.constant 0 : i32
    %c0_i32_0 = arith.constant 0 : i32
    %c0_i32_1 = arith.constant 0 : i32
    return %arg0, %c0_i32, %c0_i32_0 : i32, i32, i32
  }
  func.func @transform_9(%arg0: i32) -> (i32, i32) {
    %c0_i32 = arith.constant 0 : i32
    %c0_i32_0 = arith.constant 0 : i32
    %c0_i32_1 = arith.constant 0 : i32
    return %c0_i32, %c0_i32_0 : i32, i32
  }
  func.func @transform_10(%arg0: i32) -> (i32, i32) {
    %c0_i32 = arith.constant 0 : i32
    %c0_i32_0 = arith.constant 0 : i32
    %c0_i32_1 = arith.constant 0 : i32
    return %c0_i32, %c0_i32_0 : i32, i32
  }
}

</mosaic_0001>

<bundles_post_ra>
// kernel: text_encoder_forward.1
= control target key start
LH: loop header
LB: loop body
LE: loop exit
PB: predicated region body
PF: predicated region fallthrough
CT: control target
= control target key end

     0   :  { %s11008_s0 = inlined_call_operand.vmem [shape: f32[16,128], index: 0, kind: input, shape index: {}]   ;;  %s11009_s1 = inlined_call_operand.vmem [shape: f32[8,8,8], index: 1, kind: input, shape index: {}]   ;;  %s11010_s2 = inlined_call_operand.vmem [shape: f32[2,8], index: 2, kind: input, shape index: {}]   ;;  %s11011_s3 = inlined_call_operand.vmem [shape: f32[2,1,128], index: 3, kind: input, shape index: {}]   ;;  %s11012_s4 = inlined_call_operand.hbm [shape: bf16[2,128,384], index: 4, kind: input, shape index: {}]   ;;  %s11013_s5 = inlined_call_operand.hbm [shape: bf16[2,128,128], index: 5, kind: input, shape index: {}]   ;;  %s11014_s6 = inlined_call_operand.vmem [shape: f32[2,1,128], index: 6, kind: input, shape index: {}]   ;;  %s11015_s7 = inlined_call_operand.vmem [shape: bf16[2,128,512], index: 7, kind: input, shape index: {}]   ;;  %s11016_s8 = inlined_call_operand.vmem [shape: bf16[2,256,128], index: 8, kind: input, shape index: {}]   ;;  %s11017_s9 = inlined_call_operand.vmem [shape: f32[1,128], index: 9, kind: input, shape index: {}]   ;;  %s11018_s10 = inlined_call_operand.hbm [shape: f32[16,128], index: 10, kind: output, shape index: {}]  }
   0x1   :  { %11020 = sst [smem:[#allocation12_spill]] %s11012_s4 }
   0x2   :  { %15 = vsyncpa [#allocation3], 0 }
   0x3   :  { %17 = vsyncpa [#allocation3 + $0x1], 0 }
   0x4   :  { %18 = vsyncpa [#allocation6], 0 }
   0x5   :  { %20 = vsyncpa [#allocation6 + $0x1], 0 }
   0x6   :  { %21 = vsyncpa [#allocation4], 0  ;;  %s9383_s13 = smov 0   ;;  %s9385_s14 = smov 0  }
   0x7   :  { %s9387_s15 = smov 0   ;;  %s9389_s16 = smov 0  }
   0x8 LB: > { %s9402_s17 = sadd.s32 4294967295, %s9305_s16   ;;  %s9405_s18 = sadd.s32 1, %s9305_s16   ;;  %s9305_s16 = sphi %s9389_s16, %s11033_s16   ;;  %s9301_s15 = sphi %s9387_s15, %s11032_s15   ;;  %s9297_s14 = sphi %s9385_s14, %s11031_s14   ;;  %s9293_s13 = sphi %s9383_s13, %s11030_s13  }
   0x9   : > { %s120_s19 = ssub.s32 %s9305_s16, %s9405_s18  ;;  %s123_s20 = sadd.s32 1, %s9301_s15 }
   0xa   : > { %p121_p0 = scmp.eq.s32.totalorder %s120_s19, 0  ;;  %p130_p1 = scmp.ne.s32.totalorder %s9301_s15, %s9297_s14 }
   0xb   : > { %p131_p2 = scmp.eq.s32.totalorder %s9305_s16, 0  ;;  %p136_p3 = scmp.ne.s32.totalorder %s9297_s14, %s9293_s13 }
   0xc   : > { %s9415_s21 = scalar_select %p121_p0, %s9301_s15, %s123_s20  }
   0xd   : > { %p132_p4 = por %p131_p2, %p130_p1  ;;  %p137_p5 = scmp.eq.s32.totalorder %s9402_s17, 0 }
   0xe   : > { %11021 = sst [smem:[#allocation11_spill]] %s9415_s21  ;;  %p8895_p6 = scmp.lt.s32.totalorder %s9305_s16, 2 }
   0xf   : > { %p9419_p7 = por %p137_p5, %p136_p3  ;;  %s9424_s23 = sand.u32 1, %s9301_s15  }
  0x10   : > { %s8877_s24 = smul.u32 192, %s9424_s23  ;;  %p9428_p8 = pnand %p8895_p6, %p132_p4 }
  0x11   : > { %s11022_s22 = scalar_select %p9419_p7, 1, 0 }
  0x12   : > { %s8878_s25 = smul.u32 3072, %s9305_s16  ;;  %s11024_s4 = sld [smem:[#allocation12_spill]] }
  0x13   : > { %s328_s30 = scalar_lea.vmem [#allocation2], %s8877_s24  ;;  %s325_s12 = scalar_lea.sflag [#allocation3], %s9424_s23 }
  0x14   : > { %s335_s11 = sshll.u32 %s328_s30, 4  ;;  %p9185_p11 = pneg %p9428_p8  ;;  %s9437_s11 = int_to_ptr.vmem [resolvable:$true] %s335_s11 }
  0x18   : > { %s9435_s29 = scalar_lea.hbm %s11024_s4, %s8878_s25  ;;  %s9188_s25 = scalar_lea.hbm %s11024_s4, 6144 }
  0x19   : > { %s9183_s13 = scalar_lea.hbm %s9435_s29, 3072  ;;  %p9189_p0 = scmp.lt.s32.totalorder %s9435_s29, %s11024_s4 }
  0x1a   : > { %p9184_p10 = scmp.ne.s32.totalorder %s9435_s29, %s9183_s13  ;;  %p9190_p1 = scmp.lt.s32.totalorder %s9188_s25, %s9183_s13 }
  0x1c   : > { %p9186_p12 = pnand %p9185_p11, %p9184_p10  ;;  %p9191_p2 = por %p9190_p1, %p9189_p0 }
  0x1e   : > { %p9187_p13 = pneg %p9186_p12 }
  0x20   : > { %p9192_p3 = pnand %p9191_p2, %p9187_p13 }
  0x22   : > { %9195 = shalt.err (!%p9192_p3)
}
  0x23   : > { %s9196_s24 = scalar_lea.vmem %s9437_s11, 3072  ;;  %s9307_s30 = smov [#allocation2]  }
  0x24   : > { %p9197_p4 = scmp.ne.s32.totalorder %s9437_s11, %s9196_s24  ;;  %s9201_s19 = sshll.u32 %s9307_s30, 4  ;;  %s9202_s19 = int_to_ptr.vmem [resolvable:$false] %s9201_s19 }
  0x25   : > { %s9203_s20 = scalar_lea.vmem %s9202_s19, 6144  ;;  %p9204_p10 = scmp.lt.s32.totalorder %s9437_s11, %s9202_s19 }
  0x26   : > { %p9199_p5 = pnand %p9197_p4, %p9185_p11  ;;  %p9205_p12 = scmp.lt.s32.totalorder %s9203_s20, %s9196_s24 }
  0x28   : > { %p9200_p6 = pneg %p9199_p5  ;;  %p9206_p9 = por %p9205_p12, %p9204_p10 }
  0x2a   : > { %p9207_p0 = pnand %p9206_p9, %p9200_p6 }
  0x2c   : > { %9210 = shalt.err (!%p9207_p0)
}
  0x2d   : > { %s9308_s13 = smov 192   ;;  %s9309_s25 = smov 12  }
  0x2e   : > { %8891 = dma.hbm_to_vmem [thread:$0]  (!%p9428_p8), %s9435_s29, 3072, %s9437_s11, %s325_s12, %s9308_s13, %s9308_s13, %s9309_s25  }
  0x2f   : > { %p386_p13 = scmp.lt.s32.totalorder %s9305_s16, 3  ;;  %s8383_s27 = sshll.u32 %s9424_s23, 6 }
  0x30   : > { %s8538_s28 = sshll.u32 %s9305_s16, 10  ;;  %p11025_p9 = scmp.ge.s32.totalorder %s9305_s16, 1 }
  0x31   : > { %s9479_s20 = scalar_lea.hbm %s11013_s5, %s8538_s28  ;;  %s349_s4 = scalar_lea.vmem [#allocation5], %s8383_s27 }
  0x32   : > { %p9472_p1 = pnand %p11025_p9, %p386_p13  ;;  %s356_s21 = sshll.u32 %s349_s4, 4  ;;  %s9481_s21 = int_to_ptr.vmem [resolvable:$true] %s356_s21 }
  0x33   : > { %s346_s29 = scalar_lea.sflag [#allocation6], %s9424_s23  ;;  %s9211_s11 = scalar_lea.hbm %s9479_s20, 1024 }
  0x34   : > { %p9212_p2 = scmp.ne.s32.totalorder %s9479_s20, %s9211_s11  ;;  %s9216_s13 = scalar_lea.hbm %s11013_s5, 2048 }
  0x35   : > { %p9217_p5 = scmp.lt.s32.totalorder %s9479_s20, %s11013_s5  ;;  %p9218_p6 = scmp.lt.s32.totalorder %s9216_s13, %s9211_s11 }
  0x36   : > { %p9214_p3 = pnand %p9212_p2, %p9185_p11 }
  0x37   : > { %p9219_p10 = por %p9218_p6, %p9217_p5 }
  0x38   : > { %p9215_p4 = pneg %p9214_p3 }
  0x3a   : > { %p9220_p12 = pnand %p9219_p10, %p9215_p4 }
  0x3c   : > { %9223 = shalt.err (!%p9220_p12)
}
  0x3d   : > { %s9224_s4 = scalar_lea.vmem %s9481_s21, 1024  ;;  %s9310_s27 = smov [#allocation5]  }
  0x3e   : > { %p9225_p0 = scmp.ne.s32.totalorder %s9481_s21, %s9224_s4  ;;  %s9229_s30 = sshll.u32 %s9310_s27, 4  ;;  %s9230_s30 = int_to_ptr.vmem [resolvable:$false] %s9229_s30 }
  0x3f   : > { %s9231_s19 = scalar_lea.vmem %s9230_s30, 2048  ;;  %p9232_p2 = scmp.lt.s32.totalorder %s9481_s21, %s9230_s30 }
  0x40   : > { %p9227_p13 = pnand %p9225_p0, %p9185_p11  ;;  %p9233_p3 = scmp.lt.s32.totalorder %s9231_s19, %s9224_s4 }
  0x42   : > { %p9228_p9 = pneg %p9227_p13  ;;  %p9234_p7 = por %p9233_p3, %p9232_p2 }
  0x44   : > { %p9235_p5 = pnand %p9234_p7, %p9228_p9 }
  0x46   : > { %9238 = shalt.err (!%p9235_p5)
}
  0x47   : > { %s9311_s11 = smov 64   ;;  %s9312_s16 = smov 4  }
  0x48   : > { %8894 = dma.hbm_to_vmem [thread:$0]  (!%p9428_p8), %s9479_s20, 1024, %s9481_s21, %s346_s29, %s9311_s11, %s9311_s11, %s9312_s16  }
  0x49   : > { %390 = sbr.rel (%p9472_p1) target bundleno = 3584 (0xe00), region = 60  ;;  %s392_s12 = sand.u32 (!%p9472_p1), 1, %s9297_s14  }
  0x4a   : > { %s8879_s13 = smul.u32 (!%p9472_p1), 192, %s392_s12  ;;  %s393_s25 = scalar_lea.sflag (!%p9472_p1), [#allocation3], %s392_s12 }
  0x4b   : > { %p11027_p7 = scmp.ne.s32.totalorder (!%p9472_p1), %s11022_s22, 0 }
  0x4c   : > { %s9511_s28 = scalar_lea.vmem (!%p9472_p1), [#allocation2], %s8879_s13 }
  0x4e   : > { %9280 = dma.done.wait (%p11027_p7), %s393_s25, 3072  }
  0x4f   : > { %9282 = vsyncadd (%p11027_p7), %s393_s25, 4294964224  ;;  %s8387_s4 = sshll.u32 %s392_s12, 6  ;;  %s402_s26 = scalar_lea.sflag [#allocation6], %s392_s12 }
  0x50   : > { %s9517_s23 = scalar_lea.vmem [#allocation5], %s8387_s4 }
  0x51   : > { %9284 = dma.done.wait (%p11027_p7), %s402_s26, 1024  }
  0x52   : > { %9286 = vsyncadd (%p11027_p7), %s402_s26, 4294966272  ;;  %p458_p8 = scmp.lt.s32.totalorder %s9402_s17, 1  ;;  %p8392_p11 = scmp.ne.s32.totalorder %s9402_s17, 0 }
  0x54   : > { %s9525_s21 = scalar_select %p458_p8, %s9402_s17, 1 }
  0x55   : > { %478 = sbr.rel (%p8392_p11) target bundleno = 92 (0x5c), region = 72 }
  0x56   : > { %s460_s29 = scalar_lea.vmem %s11011_s3, %s9525_s21  ;;  %s8539_s11 = sshll.u32 %s9525_s21, 8 }
  0x57   : > { %s8540_s22 = sshll.u32 %s9525_s21, 7  ;;  %s9540_s13 = scalar_lea.vmem %s11015_s7, %s8539_s11 }
  0x58   : > { %s9545_s26 = scalar_lea.vmem %s11016_s8, %s8540_s22 }
  0x5a   : > { %v479_v0 = vld [vmem:[%s11008_s0] sm:$0xff]  ;;  %v480_v1 = vld [vmem:[%s11008_s0 + $0x8] sm:$0xff] }
  0x5b   : > { %481 = vst [vmem:[#allocation7] sm:$0xff] %v479_v0  ;;  %482 = vst [vmem:[#allocation7 + $0x8] sm:$0xff] %v480_v1 }
  0x5c PF: > { %v8984_v5 = vld [vmem:[%s9511_s28 + $0xac] ss:$12 sps:$4 sm:$0xff]   ;;  %v9313_v6 = vmov 0.0   ;;  %v8986_v7 = vld [vmem:[%s9511_s28 + $0xa8] ss:$12 sps:$4 sm:$0xff]   ;;  %v9314_v28 = vmov 0   ;;  %v790_v58 = vlaneseq }
  0x5d   : > { %8645 = vmatprep.subr.bf16.mxu1 %v9313_v6  ;;  %v8987_v8 = vld [vmem:[%s9511_s28 + $0xb0] ss:$12 sps:$4 sm:$0xff]   ;;  %679 = vmatprep.subr.bf16.mxu0 %v8984_v5  ;;  %v8988_v10 = vld [vmem:[%s9511_s28 + $0x94] ss:$12 sps:$4 sm:$0xff]   ;;  %v8991_v12 = vld [vmem:[%s9511_s28 + $0x98] ss:$12 sps:$4 sm:$0xff]  }
  0x5e   : > { %680 = vmatpush1.bf16.msra.mxu0 %v8986_v7  ;;  %8646 = vmatpush3.bf16.msra.mxu1 %v8987_v8  ;;  %v8990_v11 = vld [vmem:[%s9511_s28 + $0x90] ss:$12 sps:$4 sm:$0xff]   ;;  %v8994_v14 = vld [vmem:[%s9511_s28 + $0x78] ss:$12 sps:$4 sm:$0xff]   ;;  %v8995_v15 = vld [vmem:[%s9511_s28 + $0x80] ss:$12 sps:$4 sm:$0xff]  }
  0x5f   : > { %8647 = vmatprep.subr.bf16.mxu1 %v9313_v6  ;;  %681 = vmatprep.subr.bf16.mxu0 %v8988_v10  ;;  %v8992_v13 = vld [vmem:[%s9511_s28 + $0x7c] ss:$12 sps:$4 sm:$0xff]   ;;  %v8996_v16 = vld [vmem:[%s9511_s28 + $0x64] ss:$12 sps:$4 sm:$0xff]   ;;  %v8998_v17 = vld [vmem:[%s9511_s28 + $0x60] ss:$12 sps:$4 sm:$0xff]  }
  0x60   : > { %v8999_v18 = vld [vmem:[%s9511_s28 + $0x68] ss:$12 sps:$4 sm:$0xff]   ;;  %v9000_v19 = vld [vmem:[%s9511_s28 + $0x4c] ss:$12 sps:$4 sm:$0xff]   ;;  %v9003_v21 = vld [vmem:[%s9511_s28 + $0x50] ss:$12 sps:$4 sm:$0xff]   ;;  %711 = vmatprep.mubr.bf16.mxu0 %v9314_v28 }
  0x61   : > { %v9002_v20 = vld [vmem:[%s9511_s28 + $0x48] ss:$12 sps:$4 sm:$0xff]   ;;  %v9006_v23 = vld [vmem:[%s9511_s28 + $0x30] ss:$12 sps:$4 sm:$0xff]   ;;  %v9007_v24 = vld [vmem:[%s9511_s28 + $0x38] ss:$12 sps:$4 sm:$0xff]  }
  0x62   : > { %v9554_v2 = vld [vmem:[#allocation7] sm:$0xff]  ;;  %v9556_v3 = vld [vmem:[#allocation7 + $0x8] sm:$0xff]  ;;  %682 = vmatpush1.bf16.msra.mxu0 %v8990_v11  ;;  %8648 = vmatpush3.bf16.msra.mxu1 %v8991_v12  ;;  %vm9315_vm0 = vmmov 0   ;;  %s9317_s22 = smov 112   ;;  %s9318_s16 = smov 96   ;;  %v9635_v61 = vshrl.u32 %v790_v58, 7 }
  0x63   : > { %v495_v4 = vmul.f32 %v9554_v2, %v9554_v2  ;;  %v496_v9 = vmul.f32 %v9556_v3, %v9556_v3  ;;  %8649 = vmatprep.subr.bf16.mxu1 %v9313_v6  ;;  %683 = vmatprep.subr.bf16.mxu0 %v8992_v13  ;;  %v9004_v22 = vld [vmem:[%s9511_s28 + $0x34] ss:$12 sps:$4 sm:$0xff]   ;;  %v9008_v25 = vld [vmem:[%s9511_s28 + $0x1c] ss:$12 sps:$4 sm:$0xff]   ;;  %v9010_v26 = vld [vmem:[%s9511_s28 + $0x18] ss:$12 sps:$4 sm:$0xff]  }
  0x64   : > { %v9011_v27 = vld [vmem:[%s9511_s28 + $0x20] ss:$12 sps:$4 sm:$0xff]   ;;  %8661 = vmatprep.mubr.msk.bf16.mxu1 %vm9315_vm0, %v9313_v6  ;;  %v9012_v29 = vld [vmem:[%s9511_s28 + $0x4] ss:$12 sps:$4 sm:$0xff]   ;;  %v9015_v31 = vld [vmem:[%s9511_s28 + $0x8] ss:$12 sps:$4 sm:$0xff]  }
  0x65   : > { %497 = vadd.xlane.f32.xlu0 %v495_v4  ;;  %v9014_v30 = vld [vmem:[%s9511_s28] ss:$12 sps:$4 sm:$0xff]   ;;  %s9319_s12 = smov 48   ;;  %s9320_s25 = smov 64   ;;  %v9323_v56 = vmov 1983009808  }
  0x66   : > { %684 = vmatpush1.bf16.msra.mxu0 %v8994_v14  ;;  %8650 = vmatpush3.bf16.msra.mxu1 %v8995_v15  ;;  %v8393_v41 = vld [vmem:[%s460_s29] ss:$0 sm:$0xff]  ;;  %s9316_s29 = smov 80   ;;  %s9321_s4 = smov 32   ;;  %v788_v57 = vunpack.c.l.s4 %v9323_v56  ;;  %v9324_v1 = vmov 1934713408  }
  0x67   : > { %8651 = vmatprep.subr.bf16.mxu1 %v9313_v6  ;;  %685 = vmatprep.subr.bf16.mxu0 %v8996_v16  ;;  %s9322_s24 = smov 16   ;;  %vm2065_vm1 = vcmask 130048   ;;  %vm2422_vm2 = vcmask 64512   ;;  %vm4172_vm3 = vcmask 261120   ;;  %vm4174_vm4 = vcmask 392192   ;;  %p8531_p1 = scmp.eq.s32.totalorder %s9402_s17, 1 }
  0x68   : > { %v789_v60 = vunpack.c.0.s8 %v788_v57  ;;  %vm4176_vm5 = vcmask 523264   ;;  %vm4178_vm6 = vcmask 654336   ;;  %vm4180_vm7 = vcmask 785408  }
  0x69   : > { %499 = vadd.xlane.f32.xlu0 %v496_v9  ;;  %vm4182_vm8 = vcmask 916480  }
  0x6a   : > { %686 = vmatpush1.bf16.msra.mxu0 %v8998_v17  ;;  %8652 = vmatpush3.bf16.msra.mxu1 %v8999_v18 }
  0x6b   : > { %687 = vmatprep.subr.bf16.mxu0 %v9000_v19  ;;  %8653 = vmatprep.subr.bf16.mxu1 %v9313_v6 }
  0x6e   : > { %688 = vmatpush1.bf16.msra.mxu0 %v9002_v20  ;;  %8654 = vmatpush3.bf16.msra.mxu1 %v9003_v21 }
  0x6f   : > { %689 = vmatprep.subr.bf16.mxu0 %v9004_v22  ;;  %8655 = vmatprep.subr.bf16.mxu1 %v9313_v6 }
  0x72   : > { %690 = vmatpush1.bf16.msra.mxu0 %v9006_v23  ;;  %8656 = vmatpush3.bf16.msra.mxu1 %v9007_v24 }
  0x73   : > { %691 = vmatprep.subr.bf16.mxu0 %v9008_v25  ;;  %8657 = vmatprep.subr.bf16.mxu1 %v9313_v6 }
  0x76   : > { %692 = vmatpush1.bf16.msra.mxu0 %v9010_v26  ;;  %8658 = vmatpush3.bf16.msra.mxu1 %v9011_v27 }
  0x77   : > { %693 = vmatprep.subr.bf16.mxu0 %v9012_v29  ;;  %8659 = vmatprep.subr.bf16.mxu1 %v9313_v6 }
  0x7a   : > { %694 = vmatpush1.bf16.msra.mxu0 %v9014_v30  ;;  %8660 = vmatpush3.bf16.msra.mxu1 %v9015_v31 }
  0x7b   : > { %8665 = vmatprep.subr.bf16.mxu0 %v9313_v6  ;;  %8671 = vmatprep.subr.bf16.mxu1 %v9313_v6 }
  0xee   : > { %v498_v32 = vpop.xlane.xlu0 %497 }
  0xef   : > { %v502_v33 = vmul.f32 0.0078125, %v498_v32 }
  0xf1   : > { %v504_v34 = vadd.f32 1e-06, %v502_v33 }
  0xf2   : > { %v500_v35 = vpop.xlane.xlu0 %499 }
  0xf3   : > { %9088 = vrsqrt.f32 %v504_v34  ;;  %v503_v36 = vmul.f32 0.0078125, %v500_v35 }
  0xf5   : > { %v505_v37 = vadd.f32 1e-06, %v503_v36 }
  0xf7   : > { %9090 = vrsqrt.f32 %v505_v37 }
 0x100   : > { %v9089_v38 = vpop.eup %9088 }
 0x101   : > { %v508_v39 = vmul.f32 %v9089_v38, %v9554_v2  ;;  %v852_v2 = vunpack.c.l.s4 %v9324_v1 }
 0x103   : > { %v516_v43 = vmul.f32 %v8393_v41, %v508_v39  ;;  %v853_v9 = vunpack.c.0.s8 %v852_v2 }
 0x104   : > { %v9091_v40 = vpop.eup %9090 }
 0x105   : > { %v509_v42 = vmul.f32 %v9091_v40, %v9556_v3  ;;  %v9638_v3 = vsub.s32 %v789_v60, %v9635_v61  ;;  %v9646_v19 = vsub.s32 %v853_v9, %v9635_v61 }
 0x107   : > { %v517_v44 = vmul.f32 %v8393_v41, %v509_v42 }
 0x109   : > { %v518_v45 = vpack.c.bf16 %v517_v44, %v516_v43 }
 0x10b   : > { %712 = vmatmul.mubr.bf16.vlgmr.msra.gmra.mxu0 %v518_v45  ;;  %8662 = vmatmul.mubr.bf16.vlgmr.msra.gmra.mxu1 %v518_v45 }
 0x10c   : > { %8667 = vmatprep.mubr.msk.bf16.mxu0 %vm9315_vm0, %v9313_v6  ;;  %8673 = vmatprep.mubr.msk.bf16.mxu1 %vm9315_vm0, %v9313_v6 }
 0x1cb   : > { %v9610_v46 = vpop.f32.mrf.mxu0  ;;  %v9612_v47 = vpop.f32.mrf.mxu1 }
 0x1cd   : > { %v715_v48 = vpop.f32.mrf.mxu0  ;;  %v8663_v49 = vpop.f32.mrf.mxu1 }
 0x1ce   : > { %928 = vrot.lane.b32.xlu0 %v715_v48, %s9316_s29  ;;  %922 = vrot.lane.b32.xlu1 %v715_v48, %s9317_s22 }
 0x1cf   : > { %v9616_v50 = vpop.f32.mrf.mxu1 }
 0x1d1   : > { %v8664_v51 = vpop.f32.mrf.mxu1 }
 0x1d2   : > { %767 = vrot.lane.b32.xlu0 %v9610_v46, %s9318_s16  ;;  %925 = vrot.lane.b32.xlu1 %v715_v48, %s9318_s16 }
 0x1d6   : > { %776 = vrot.lane.b32.xlu0 %v9610_v46, %s9319_s12  ;;  %764 = vrot.lane.b32.xlu1 %v9610_v46, %s9317_s22 }
 0x1da   : > { %931 = vrot.lane.b32.xlu1 %v715_v48, %s9320_s25 }
 0x1de   : > { %934 = vrot.lane.b32.xlu1 %v715_v48, %s9319_s12 }
 0x1e2   : > { %937 = vrot.lane.b32.xlu1 %v715_v48, %s9321_s4 }
 0x1e6   : > { %940 = vrot.lane.b32.xlu1 %v715_v48, %s9322_s24 }
 0x1ea   : > { %770 = vrot.lane.b32.xlu1 %v9610_v46, %s9316_s29 }
 0x1ee   : > { %773 = vrot.lane.b32.xlu1 %v9610_v46, %s9320_s25 }
 0x240   : > { %v923_v52 = vpop.permute.xlu1 %922  ;;  %v929_v62 = vpop.permute.xlu0 %928 }
 0x241   : > { %v959_v4 = vcombine.low %v923_v52, %v929_v62  ;;  %v960_v18 = vcombine.high %v923_v52, %v929_v62 }
 0x243   : > { %v967_v13 = vrot.slane %v959_v4, %v9638_v3  ;;  %v974_v29 = vrot.slane %v960_v18, %v9638_v3 }
 0x244   : > { %v926_v53 = vpop.permute.xlu1 %925  ;;  %v9663_v60 = vpop.permute.xlu0 %767 }
 0x245   : > { %v943_v63 = vcombine.low %v715_v48, %v926_v53  ;;  %v944_v14 = vcombine.high %v715_v48, %v926_v53 }
 0x247   : > { %v951_v7 = vrot.slane %v943_v63, %v9638_v3  ;;  %v958_v24 = vrot.slane %v944_v14, %v9638_v3 }
 0x248   : > { %v9633_v54 = vpop.permute.xlu1 %764  ;;  %v9667_v63 = vpop.permute.xlu0 %776 }
 0x249   : > { %v1007_v20 = vcombine.low %v951_v7, %v967_v13  ;;  %v1008_v25 = vcombine.high %v951_v7, %v967_v13  ;;  %v1023_v35 = vcombine.low %v958_v24, %v974_v29  ;;  %v1024_v43 = vcombine.high %v958_v24, %v974_v29 }
 0x24b   : > { %v1015_v30 = vrot.slane %v1007_v20, %v9646_v19  ;;  %v1022_v34 = vrot.slane %v1008_v25, %v9646_v19  ;;  %v1031_v42 = vrot.slane %v1023_v35, %v9646_v19  ;;  %v1038_v52 = vrot.slane %v1024_v43, %v9646_v19 }
 0x24c   : > { %v932_v55 = vpop.permute.xlu1 %931 }
 0x250   : > { %v935_v59 = vpop.permute.xlu1 %934 }
 0x254   : > { %v938_v0 = vpop.permute.xlu1 %937 }
 0x255   : > { %v975_v5 = vcombine.low %v932_v55, %v938_v0  ;;  %v976_v10 = vcombine.high %v932_v55, %v938_v0 }
 0x257   : > { %v983_v15 = vrot.slane %v975_v5, %v9638_v3  ;;  %v990_v21 = vrot.slane %v976_v10, %v9638_v3 }
 0x258   : > { %v941_v8 = vpop.permute.xlu1 %940 }
 0x259   : > { %v991_v11 = vcombine.low %v935_v59, %v941_v8  ;;  %v992_v12 = vcombine.high %v935_v59, %v941_v8 }
 0x25b   : > { %v999_v16 = vrot.slane %v991_v11, %v9638_v3  ;;  %v1006_v17 = vrot.slane %v992_v12, %v9638_v3 }
 0x25c   : > { %v9665_v62 = vpop.permute.xlu1 %770 }
 0x25d   : > { %v1039_v22 = vcombine.low %v983_v15, %v999_v16  ;;  %v1040_v23 = vcombine.high %v983_v15, %v999_v16  ;;  %v1055_v27 = vcombine.low %v990_v21, %v1006_v17  ;;  %v1056_v37 = vcombine.high %v990_v21, %v1006_v17 }
 0x25f   : > { %v1047_v26 = vrot.slane %v1039_v22, %v9646_v19  ;;  %v1054_v31 = vrot.slane %v1040_v23, %v9646_v19  ;;  %v1063_v36 = vrot.slane %v1055_v27, %v9646_v19  ;;  %v1070_v44 = vrot.slane %v1056_v37, %v9646_v19 }
 0x260   : > { %v9669_v0 = vpop.permute.xlu1 %773 }
 0x261   : > { %v1072_v32 = vcombine.high %v1015_v30, %v1047_v26  ;;  %v1071_v33 = vcombine.low %v1015_v30, %v1047_v26  ;;  %v1074_v40 = vcombine.high %v1022_v34, %v1054_v31  ;;  %v1073_v41 = vcombine.low %v1022_v34, %v1054_v31 }
 0x262   : > { %v1076_v49 = vcombine.high %v1031_v42, %v1063_v36  ;;  %v1075_v51 = vcombine.low %v1031_v42, %v1063_v36  ;;  %v1078_v56 = vcombine.high %v1038_v52, %v1070_v44  ;;  %v1077_v57 = vcombine.low %v1038_v52, %v1070_v44 }
 0x263   : > { %v1246_v38 = vpack.c.bf16 %v1072_v32, %v1072_v32  ;;  %v1245_v39 = vpack.c.bf16 %v1071_v33, %v1071_v33  ;;  %v1248_v45 = vpack.c.bf16 %v1074_v40, %v1074_v40  ;;  %v1247_v48 = vpack.c.bf16 %v1073_v41, %v1073_v41 }
 0x264   : > { %v1250_v53 = vpack.c.bf16 %v1076_v49, %v1076_v49  ;;  %v1249_v55 = vpack.c.bf16 %v1075_v51, %v1075_v51  ;;  %v1252_v58 = vpack.c.bf16 %v1078_v56, %v1078_v56  ;;  %v1251_v59 = vpack.c.bf16 %v1077_v57, %v1077_v57 }
 0x265   : > { %1361 = vxpose.xlu0.c.b16.start.end [1/1] (short) (narrow) %v1246_v38, 16  ;;  %1345 = vxpose.xlu1.c.b16.start.end [1/1] (short) (narrow) %v1245_v39, 16 }
 0x269   : > { %1393 = vxpose.xlu0.c.b16.start.end [1/1] (short) (narrow) %v1248_v45, 16  ;;  %1377 = vxpose.xlu1.c.b16.start.end [1/1] (short) (narrow) %v1247_v48, 16 }
 0x26d   : > { %1425 = vxpose.xlu0.c.b16.start.end [1/1] (short) (narrow) %v1250_v53, 16  ;;  %1409 = vxpose.xlu1.c.b16.start.end [1/1] (short) (narrow) %v1249_v55, 16 }
 0x271   : > { %1457 = vxpose.xlu0.c.b16.start.end [1/1] (short) (narrow) %v1252_v58, 16  ;;  %1441 = vxpose.xlu1.c.b16.start.end [1/1] (short) (narrow) %v1251_v59, 16 }
 0x275   : > { %779 = vrot.lane.b32.xlu1 %v9610_v46, %s9321_s4 }
 0x27a   : > { %782 = vrot.lane.b32.xlu0 %v9610_v46, %s9322_s24 }
 0x2c7   : > { %v1369_v1 = vpop.trf.xlu0  ;;  %v1353_v2 = vpop.trf.xlu1 }
 0x2c8   : > { %v1478_v7 = vshrl.u32 %v1369_v1, 16  ;;  %v1477_v8 = vshrl.u32 %v1353_v2, 16  ;;  %v1475_v14 = vpack.i.b16 %v1369_v1, %v1353_v2 }
 0x2ca   : > { %v1479_v18 = vpack.i.b16 %v1478_v7, %v1477_v8 }
 0x2cb   : > { %v1401_v4 = vpop.trf.xlu0  ;;  %v1385_v5 = vpop.trf.xlu1 }
 0x2cc   : > { %v1486_v15 = vshrl.u32 %v1401_v4, 16  ;;  %v1485_v16 = vshrl.u32 %v1385_v5, 16  ;;  %v1483_v23 = vpack.i.b16 %v1401_v4, %v1385_v5 }
 0x2ce   : > { %v1487_v27 = vpack.i.b16 %v1486_v15, %v1485_v16  ;;  %v9705_v16 = vpop.f32.mrf.mxu0 }
 0x2cf   : > { %v1433_v9 = vpop.trf.xlu0  ;;  %v1417_v10 = vpop.trf.xlu1 }
 0x2d0   : > { %v1494_v11 = vshrl.u32 %v1433_v9, 16  ;;  %v1491_v12 = vpack.i.b16 %v1433_v9, %v1417_v10  ;;  %v1493_v13 = vshrl.u32 %v1417_v10, 16 }
 0x2d2   : > { %v1495_v17 = vpack.i.b16 %v1494_v11, %v1493_v13  ;;  %v1505_v20 = vcombine.low %v1475_v14, %v1491_v12  ;;  %v1506_v29 = vcombine.high %v1475_v14, %v1491_v12 }
 0x2d3   : > { %v1465_v21 = vpop.trf.xlu0  ;;  %v1449_v22 = vpop.trf.xlu1 }
 0x2d4   : > { %v1502_v24 = vshrl.u32 %v1465_v21, 16  ;;  %v1499_v25 = vpack.i.b16 %v1465_v21, %v1449_v22  ;;  %v1501_v26 = vshrl.u32 %v1449_v22, 16  ;;  %v1573_v33 = vcombine.low %v1479_v18, %v1495_v17 }
 0x2d5   : > { %v1513_v34 = vrot.slane %v1505_v20, %v9638_v3  ;;  %v1520_v39 = vrot.slane %v1506_v29, %v9638_v3  ;;  %v1574_v40 = vcombine.high %v1479_v18, %v1495_v17  ;;  %v9711_v17 = vpop.f32.mrf.mxu0  ;;  %v802_v29 = vcombine.high %v9633_v54, %v9665_v62 }
 0x2d6   : > { %v1503_v30 = vpack.i.b16 %v1502_v24, %v1501_v26  ;;  %v1521_v31 = vcombine.low %v1483_v23, %v1499_v25  ;;  %v1522_v32 = vcombine.high %v1483_v23, %v1499_v25  ;;  %v1581_v43 = vrot.slane %v1573_v33, %v9638_v3 }
 0x2d7   : > { %v1588_v53 = vrot.slane %v1574_v40, %v9638_v3  ;;  %v786_v33 = vcombine.high %v9610_v46, %v9663_v60 }
 0x2d8   : > { %v1529_v35 = vrot.slane %v1521_v31, %v9638_v3  ;;  %v1536_v36 = vrot.slane %v1522_v32, %v9638_v3  ;;  %v1589_v37 = vcombine.low %v1487_v27, %v1503_v30  ;;  %v1590_v38 = vcombine.high %v1487_v27, %v1503_v30 }
 0x2d9   : > { %v801_v27 = vcombine.low %v9633_v54, %v9665_v62  ;;  %v785_v32 = vcombine.low %v9610_v46, %v9663_v60  ;;  %v816_v54 = vrot.slane %v802_v29, %v9638_v3 }
 0x2da   : > { %v1538_v41 = vcombine.high %v1513_v34, %v1529_v35  ;;  %v1537_v42 = vcombine.low %v1513_v34, %v1529_v35  ;;  %v1597_v44 = vrot.slane %v1589_v37, %v9638_v3  ;;  %v1553_v45 = vcombine.low %v1520_v39, %v1536_v36 }
 0x2db   : > { %v1604_v52 = vrot.slane %v1590_v38, %v9638_v3  ;;  %v1554_v57 = vcombine.high %v1520_v39, %v1536_v36  ;;  %v809_v37 = vrot.slane %v801_v27, %v9638_v3  ;;  %v793_v38 = vrot.slane %v785_v32, %v9638_v3 }
 0x2dc   : > { %v1552_v48 = vrot.slane %v1538_v41, %v9646_v19  ;;  %v1545_v49 = vrot.slane %v1537_v42, %v9646_v19  ;;  %v1606_v51 = vcombine.high %v1581_v43, %v1597_v44  ;;  %v1561_v55 = vrot.slane %v1553_v45, %v9646_v19 }
 0x2dd   : > { %v1621_v58 = vcombine.low %v1588_v53, %v1604_v52  ;;  %v1568_v59 = vrot.slane %v1554_v57, %v9646_v19  ;;  %v1605_v2 = vcombine.low %v1581_v43, %v1597_v44  ;;  %v1622_v4 = vcombine.high %v1588_v53, %v1604_v52 }
 0x2de   : > { %1705 = vxpose.xlu0.c.b16.start.end [1/1] (short) (narrow) %v1552_v48, 16  ;;  %1641 = vxpose.xlu1.c.b16.start.end [1/1] (short) (narrow) %v1545_v49, 16  ;;  %v1620_v56 = vrot.slane %v1606_v51, %v9646_v19  ;;  %v1569_v9 = vcombine.high %v1545_v49, %v9314_v28  ;;  %v1570_v11 = vcombine.high %v1552_v48, %v9314_v28 }
 0x2df   : > { %v1629_v1 = vrot.slane %v1621_v58, %v9646_v19  ;;  %v1613_v5 = vrot.slane %v1605_v2, %v9646_v19  ;;  %v1636_v7 = vrot.slane %v1622_v4, %v9646_v19  ;;  %v1571_v13 = vcombine.high %v1561_v55, %v9314_v28 }
 0x2e0   : > { %v1638_v10 = vcombine.high %v1620_v56, %v9314_v28  ;;  %v1572_v15 = vcombine.high %v1568_v59, %v9314_v28  ;;  %v800_v39 = vrot.slane %v786_v33, %v9638_v3  ;;  %v849_v44 = vcombine.low %v793_v38, %v809_v37 }
 0x2e1   : > { %v1637_v8 = vcombine.high %v1613_v5, %v9314_v28  ;;  %v1639_v12 = vcombine.high %v1629_v1, %v9314_v28  ;;  %v1640_v14 = vcombine.high %v1636_v7, %v9314_v28  ;;  %v850_v45 = vcombine.high %v793_v38, %v809_v37 }
 0x2e2   : > { %1769 = vxpose.xlu0.c.b16.start.end [1/1] (short) (narrow) %v1561_v55, 16  ;;  %1721 = vxpose.xlu1.c.b16.start.end [1/1] (short) (narrow) %v1620_v56, 16  ;;  %v865_v48 = vcombine.low %v800_v39, %v816_v54  ;;  %v866_v49 = vcombine.high %v800_v39, %v816_v54  ;;  %v857_v58 = vrot.slane %v849_v44, %v9646_v19 }
 0x2e4   : > { %v880_v2 = vrot.slane %v866_v49, %v9646_v19 }
 0x2e6   : > { %1833 = vxpose.xlu0.c.b16.start.end [1/1] (short) (narrow) %v1568_v59, 16  ;;  %1785 = vxpose.xlu1.c.b16.start.end [1/1] (short) (narrow) %v1629_v1, 16  ;;  %v864_v59 = vrot.slane %v850_v45, %v9646_v19  ;;  %v873_v1 = vrot.slane %v865_v48, %v9646_v19 }
 0x2e7   : > { %v780_v18 = vpop.permute.xlu1 %779 }
 0x2e8   : > { %v817_v30 = vcombine.low %v9669_v0, %v780_v18  ;;  %v818_v31 = vcombine.high %v9669_v0, %v780_v18 }
 0x2ea   : > { %1657 = vxpose.xlu0.c.b16.start.end [1/1] (short) (narrow) %v1613_v5, 16  ;;  %1849 = vxpose.xlu1.c.b16.start.end [1/1] (short) (narrow) %v1636_v7, 16  ;;  %v825_v62 = vrot.slane %v817_v30, %v9638_v3  ;;  %v832_v0 = vrot.slane %v818_v31, %v9638_v3 }
 0x2ec   : > { %v783_v20 = vpop.permute.xlu0 %782 }
 0x2ed   : > { %v833_v23 = vcombine.low %v9667_v63, %v783_v20  ;;  %v834_v24 = vcombine.high %v9667_v63, %v783_v20 }
 0x2ee   : > { %1689 = vxpose.xlu1.c.b16.start.end [1/1] (short) (narrow) %v1637_v8, 16  ;;  %1673 = vxpose.xlu0.c.b16.start.end [1/1] (short) (narrow) %v1569_v9, 16 }
 0x2ef   : > { %v841_v63 = vrot.slane %v833_v23, %v9638_v3  ;;  %v848_v34 = vrot.slane %v834_v24, %v9638_v3 }
 0x2f1   : > { %v881_v46 = vcombine.low %v825_v62, %v841_v63  ;;  %v882_v60 = vcombine.high %v825_v62, %v841_v63  ;;  %v897_v40 = vcombine.low %v832_v0, %v848_v34  ;;  %v898_v43 = vcombine.high %v832_v0, %v848_v34 }
 0x2f2   : > { %1753 = vxpose.xlu1.c.b16.start.end [1/1] (short) (narrow) %v1638_v10, 16  ;;  %1737 = vxpose.xlu0.c.b16.start.end [1/1] (short) (narrow) %v1570_v11, 16 }
 0x2f3   : > { %v889_v51 = vrot.slane %v881_v46, %v9646_v19  ;;  %v896_v52 = vrot.slane %v882_v60, %v9646_v19  ;;  %v905_v53 = vrot.slane %v897_v40, %v9646_v19  ;;  %v912_v57 = vrot.slane %v898_v43, %v9646_v19 }
 0x2f5   : > { %v913_v4 = vcombine.low %v857_v58, %v889_v51  ;;  %v914_v5 = vcombine.high %v857_v58, %v889_v51  ;;  %v915_v7 = vcombine.low %v864_v59, %v896_v52  ;;  %v917_v8 = vcombine.low %v873_v1, %v905_v53 }
 0x2f6   : > { %1817 = vxpose.xlu1.c.b16.start.end [1/1] (short) (narrow) %v1639_v12, 16  ;;  %1801 = vxpose.xlu0.c.b16.start.end [1/1] (short) (narrow) %v1571_v13, 16  ;;  %v916_v11 = vcombine.high %v864_v59, %v896_v52  ;;  %v918_v12 = vcombine.high %v873_v1, %v905_v53  ;;  %v919_v13 = vcombine.low %v880_v2, %v912_v57 }
 0x2f7   : > { %v8418_v20 = vpack.c.bf16 %v917_v8, %v913_v4 }
 0x2f8   : > { %v8419_v27 = vpack.c.bf16 %v919_v13, %v915_v7  ;;  %v8420_v29 = vpack.c.bf16 %v918_v12, %v914_v5 }
 0x2f9   : > { %v9768_v37 = vrot.slane %v8418_v20, %v9638_v3 }
 0x2fa   : > { %1881 = vxpose.xlu1.c.b16.start.end [1/1] (short) (narrow) %v1640_v14, 16  ;;  %1865 = vxpose.xlu0.c.b16.start.end [1/1] (short) (narrow) %v1572_v15, 16  ;;  %v920_v14 = vcombine.high %v880_v2, %v912_v57  ;;  %v9774_v0 = vrot.slane %v8419_v27, %v9638_v3  ;;  %v9777_v38 = vrot.slane %v8420_v29, %v9638_v3 }
 0x2fc   : > { %v8421_v30 = vpack.c.bf16 %v920_v14, %v916_v11  ;;  %v1269_v43 = vcombine.low %v9768_v37, %v9774_v0 }
 0x2fe   : > { %1083 = vrot.lane.b32.xlu1 %v9612_v47, %s9318_s16  ;;  %v1277_v57 = vrot.slane %v1269_v43, %v9646_v19 }
 0x300   : > { %v1324_v12 = vshrl.u32 %v1277_v57, 16 }
 0x302   : > { %1086 = vrot.lane.b32.xlu1 %v9612_v47, %s9316_s29 }
 0x303   : > { %1080 = vrot.lane.b32.xlu0 %v9612_v47, %s9317_s22 }
 0x306   : > { %1092 = vrot.lane.b32.xlu1 %v9612_v47, %s9319_s12 }
 0x307   : > { %1089 = vrot.lane.b32.xlu0 %v9612_v47, %s9320_s25 }
 0x30a   : > { %1098 = vrot.lane.b32.xlu1 %v9612_v47, %s9322_s24 }
 0x30b   : > { %1095 = vrot.lane.b32.xlu0 %v9612_v47, %s9321_s4 }
 0x30e   : > { %4343 = vrot.lane.b32.xlu1 %v9711_v17, %s9317_s22 }
 0x30f   : > { %4346 = vrot.lane.b32.xlu0 %v9711_v17, %s9318_s16 }
 0x312   : > { %4349 = vrot.lane.b32.xlu1 %v9711_v17, %s9316_s29 }
 0x313   : > { %4355 = vrot.lane.b32.xlu0 %v9711_v17, %s9319_s12 }
 0x316   : > { %4352 = vrot.lane.b32.xlu1 %v9711_v17, %s9320_s25 }
 0x317   : > { %4361 = vrot.lane.b32.xlu0 %v9711_v17, %s9322_s24 }
 0x31a   : > { %4358 = vrot.lane.b32.xlu1 %v9711_v17, %s9321_s4 }
 0x340   : > { %v9727_v21 = vpop.trf.xlu0  ;;  %v9729_v22 = vpop.trf.xlu1 }
 0x341   : > { %v1897_v32 = vcombine.low %v9729_v22, %v9727_v21  ;;  %v9780_v21 = vrot.slane %v8421_v30, %v9638_v3 }
 0x343   : > { %v1904_v39 = vrot.slane %v1897_v32, %v9638_v3  ;;  %v1303_v44 = vcombine.low %v9777_v38, %v9780_v21 }
 0x344   : > { %v9733_v25 = vpop.trf.xlu0  ;;  %v1729_v26 = vpop.trf.xlu1 }
 0x345   : > { %v1311_v58 = vrot.slane %v1303_v44, %v9646_v19 }
 0x347   : > { %v1325_v13 = vshrl.u32 %v1311_v58, 16  ;;  %v1319_v32 = vcombine.high %v1311_v58, %v9314_v28 }
 0x348   : > { %v9747_v35 = vpop.trf.xlu0  ;;  %v1793_v36 = vpop.trf.xlu1 }
 0x349   : > { %v1326_v30 = vpack.i.b16 %v1325_v13, %v1324_v12 }
 0x34c   : > { %v1665_v41 = vpop.trf.xlu0  ;;  %v1857_v42 = vpop.trf.xlu1 }
 0x34d   : > { %v1965_v15 = vcombine.low %v1665_v41, %v1729_v26  ;;  %v1981_v63 = vcombine.low %v1793_v36, %v1857_v42  ;;  %v1913_v26 = vcombine.low %v9733_v25, %v9747_v35 }
 0x34f   : > { %v1972_v33 = vrot.slane %v1965_v15, %v9638_v3  ;;  %v1988_v60 = vrot.slane %v1981_v63, %v9638_v3  ;;  %v1920_v40 = vrot.slane %v1913_v26, %v9638_v3 }
 0x350   : > { %v1681_v55 = vpop.trf.xlu0  ;;  %v1697_v56 = vpop.trf.xlu1 }
 0x354   : > { %v1745_v9 = vpop.trf.xlu0  ;;  %v1761_v10 = vpop.trf.xlu1 }
 0x355   : > { %v1973_v18 = vcombine.low %v1697_v56, %v1761_v10  ;;  %v1905_v23 = vcombine.low %v1681_v55, %v1745_v9 }
 0x357   : > { %v1980_v34 = vrot.slane %v1973_v18, %v9638_v3  ;;  %v1912_v54 = vrot.slane %v1905_v23, %v9638_v3  ;;  %v1323_v23 = vpack.i.b16 %v1311_v58, %v1277_v57 }
 0x358   : > { %v1825_v24 = vpop.trf.xlu1  ;;  %v1809_v31 = vpop.trf.xlu0 }
 0x359   : > { %v1997_v25 = vcombine.low %v1972_v33, %v1980_v34  ;;  %v1929_v41 = vcombine.low %v1904_v39, %v1912_v54  ;;  %v1930_v7 = vcombine.high %v1904_v39, %v1912_v54  ;;  %v1998_v8 = vcombine.high %v1972_v33, %v1980_v34 }
 0x35a   : > { %v1270_v54 = vcombine.high %v9768_v37, %v9774_v0 }
 0x35b   : > { %v2005_v49 = vrot.slane %v1997_v25, %v9646_v19  ;;  %v1937_v52 = vrot.slane %v1929_v41, %v9646_v19  ;;  %v2012_v27 = vrot.slane %v1998_v8, %v9646_v19 }
 0x35c   : > { %v1889_v62 = vpop.trf.xlu1  ;;  %v1873_v22 = vpop.trf.xlu0  ;;  %v1284_v41 = vrot.slane %v1270_v54, %v9646_v19 }
 0x35d   : > { %v1989_v36 = vcombine.low %v1825_v24, %v1889_v62  ;;  %v1921_v46 = vcombine.low %v1809_v31, %v1873_v22  ;;  %v1944_v24 = vrot.slane %v1930_v7, %v9646_v19  ;;  %v1285_v31 = vcombine.high %v1277_v57, %v9314_v28 }
 0x35e   : > { %v1304_v62 = vcombine.high %v9777_v38, %v9780_v21  ;;  %v1336_v44 = vshrl.u32 %v1284_v41, 16  ;;  %v1286_v58 = vcombine.high %v1284_v41, %v9314_v28 }
 0x35f   : > { %v1996_v35 = vrot.slane %v1989_v36, %v9638_v3  ;;  %v1928_v42 = vrot.slane %v1921_v46, %v9638_v3  ;;  %v1330_v22 = vshrl.u32 %v1285_v31, 16  ;;  %v1331_v36 = vshrl.u32 %v1319_v32, 16 }
 0x361   : > { %v2013_v45 = vcombine.low %v1988_v60, %v1996_v35  ;;  %v1945_v48 = vcombine.low %v1920_v40, %v1928_v42  ;;  %v2014_v55 = vcombine.high %v1988_v60, %v1996_v35  ;;  %v1946_v59 = vcombine.high %v1920_v40, %v1928_v42 }
 0x362   : > { %v1329_v60 = vpack.i.b16 %v1319_v32, %v1285_v31  ;;  %v1332_v40 = vpack.i.b16 %v1331_v36, %v1330_v22  ;;  %v1318_v42 = vrot.slane %v1304_v62, %v9646_v19 }
 0x363   : > { %v2021_v51 = vrot.slane %v2013_v45, %v9646_v19  ;;  %v1953_v53 = vrot.slane %v1945_v48, %v9646_v19  ;;  %v2028_v11 = vrot.slane %v2014_v55, %v9646_v19  ;;  %v1960_v14 = vrot.slane %v1946_v59, %v9646_v19 }
 0x364   : > { %v1337_v45 = vshrl.u32 %v1318_v42, 16 }
 0x365   : > { %v2029_v56 = vcombine.low %v2005_v49, %v2021_v51  ;;  %v1961_v1 = vcombine.low %v1937_v52, %v1953_v53  ;;  %v1962_v2 = vcombine.high %v1937_v52, %v1953_v53  ;;  %v2030_v4 = vcombine.high %v2005_v49, %v2021_v51 }
 0x366   : > { %v1963_v63 = vcombine.low %v1944_v24, %v1960_v14  ;;  %v2031_v34 = vcombine.low %v2012_v27, %v2028_v11  ;;  %v1964_v38 = vcombine.high %v1944_v24, %v1960_v14  ;;  %v2032_v21 = vcombine.high %v2012_v27, %v2028_v11 }
 0x367   : > { %v2038_v5 = vshrl.u32 %v2029_v56, 16  ;;  %v2035_v9 = vpack.i.b16 %v2029_v56, %v1961_v1  ;;  %v2037_v10 = vshrl.u32 %v1961_v1, 16  ;;  %v2045_v18 = vshrl.u32 %v1962_v2, 16 }
 0x368   : > { %v2046_v20 = vshrl.u32 %v2030_v4, 16  ;;  %v2043_v29 = vpack.i.b16 %v2030_v4, %v1962_v2  ;;  %v2053_v39 = vshrl.u32 %v1963_v63, 16  ;;  %v2054_v46 = vshrl.u32 %v2031_v34, 16 }
 0x369   : > { %8666 = vmatpush3.bf16.msra.mxu0 %v2035_v9  ;;  %v2039_v15 = vpack.i.b16 %v2038_v5, %v2037_v10  ;;  %v2051_v25 = vpack.i.b16 %v2031_v34, %v1963_v63  ;;  %v2061_v51 = vshrl.u32 %v1964_v38, 16  ;;  %v2062_v52 = vshrl.u32 %v2032_v21, 16 }
 0x36a   : > { %8677 = vmatprep.subr.bf16.mxu0 %v9313_v6  ;;  %v2047_v33 = vpack.i.b16 %v2046_v20, %v2045_v18  ;;  %v2055_v0 = vpack.i.b16 %v2054_v46, %v2053_v39  ;;  %v1335_v53 = vpack.i.b16 %v1318_v42, %v1284_v41  ;;  %v2059_v56 = vpack.i.b16 %v2032_v21, %v1964_v38 }
 0x36b   : > { %8672 = vmatpush3.bf16.msra.mxu1 %v2039_v15  ;;  %v1338_v2 = vpack.i.b16 %v1337_v45, %v1336_v44  ;;  %v1320_v4 = vcombine.high %v1318_v42, %v9314_v28  ;;  %v2063_v8 = vpack.i.b16 %v2062_v52, %v2061_v51  ;;  %v1342_v18 = vshrl.u32 %v1286_v58, 16 }
 0x36c   : > { %8668 = vmatmul.mubr.msk.bf16.vlgmr.msra.gmra.mxu0 %vm2065_vm1, %v1323_v23  ;;  %8683 = vmatprep.subr.bf16.mxu1 %v9313_v6 }
 0x36d   : > { %8678 = vmatpush3.bf16.msra.mxu0 %v2043_v29  ;;  %8679 = vmatprep.mubr.msk.bf16.mxu0 %vm9315_vm0, %v9313_v6  ;;  %v1343_v27 = vshrl.u32 %v1320_v4, 16  ;;  %v1341_v32 = vpack.i.b16 %v1320_v4, %v1286_v58 }
 0x36e   : > { %8674 = vmatmul.mubr.msk.bf16.vlgmr.msra.gmra.mxu1 %vm2065_vm1, %v1326_v30  ;;  %8689 = vmatprep.subr.bf16.mxu0 %v9313_v6 }
 0x36f   : > { %8684 = vmatpush3.bf16.msra.mxu1 %v2047_v33  ;;  %8685 = vmatprep.mubr.msk.bf16.mxu1 %vm9315_vm0, %v9313_v6  ;;  %v1344_v54 = vpack.i.b16 %v1343_v27, %v1342_v18 }
 0x370   : > { %v9810_v26 = vpop.permute.xlu1 %1083  ;;  %8695 = vmatprep.subr.bf16.mxu1 %v9313_v6 }
 0x371   : > { %v1101_v55 = vcombine.low %v9612_v47, %v9810_v26  ;;  %v1102_v13 = vcombine.high %v9612_v47, %v9810_v26 }
 0x373   : > { %v1109_v14 = vrot.slane %v1101_v55, %v9638_v3  ;;  %v1116_v26 = vrot.slane %v1102_v13, %v9638_v3 }
 0x374   : > { %v1087_v35 = vpop.permute.xlu1 %1086  ;;  %8680 = vmatmul.mubr.msk.bf16.vlgmr.msra.gmra.mxu0 %vm2065_vm1, %v1329_v60 }
 0x375   : > { %8690 = vmatpush3.bf16.msra.mxu0 %v2051_v25  ;;  %v1081_v37 = vpop.permute.xlu0 %1080  ;;  %8691 = vmatprep.mubr.msk.bf16.mxu0 %vm9315_vm0, %v9313_v6 }
 0x376   : > { %8686 = vmatmul.mubr.msk.bf16.vlgmr.msra.gmra.mxu1 %vm2065_vm1, %v1332_v40  ;;  %8701 = vmatprep.subr.bf16.mxu0 %v9313_v6  ;;  %v1117_v48 = vcombine.low %v1081_v37, %v1087_v35  ;;  %v1118_v9 = vcombine.high %v1081_v37, %v1087_v35 }
 0x377   : > { %8696 = vmatpush3.bf16.msra.mxu1 %v2055_v0  ;;  %8697 = vmatprep.mubr.msk.bf16.mxu1 %vm9315_vm0, %v9313_v6 }
 0x378   : > { %v1093_v43 = vpop.permute.xlu1 %1092  ;;  %8707 = vmatprep.subr.bf16.mxu1 %v9313_v6  ;;  %v1125_v5 = vrot.slane %v1117_v48, %v9638_v3  ;;  %v1132_v30 = vrot.slane %v1118_v9, %v9638_v3 }
 0x379   : > { %v1090_v49 = vpop.permute.xlu0 %1089 }
 0x37a   : > { %v1165_v47 = vcombine.low %v1109_v14, %v1125_v5  ;;  %v1166_v34 = vcombine.high %v1109_v14, %v1125_v5  ;;  %v1181_v25 = vcombine.low %v1116_v26, %v1132_v30  ;;  %v1182_v37 = vcombine.high %v1116_v26, %v1132_v30 }
 0x37c   : > { %v1099_v57 = vpop.permute.xlu1 %1098  ;;  %8692 = vmatmul.mubr.msk.bf16.vlgmr.msra.gmra.mxu0 %vm2065_vm1, %v1335_v53  ;;  %v1173_v36 = vrot.slane %v1165_v47, %v9646_v19  ;;  %v1180_v42 = vrot.slane %v1166_v34, %v9646_v19  ;;  %v1189_v53 = vrot.slane %v1181_v25, %v9646_v19 }
 0x37d   : > { %v1149_v59 = vcombine.low %v1093_v43, %v1099_v57  ;;  %v1150_v1 = vcombine.high %v1093_v43, %v1099_v57  ;;  %8702 = vmatpush3.bf16.msra.mxu0 %v2059_v56  ;;  %v1096_v7 = vpop.permute.xlu0 %1095  ;;  %8703 = vmatprep.mubr.msk.bf16.mxu0 %vm9315_vm0, %v9313_v6  ;;  %v1196_v56 = vrot.slane %v1182_v37, %v9646_v19 }
 0x37e   : > { %v1133_v11 = vcombine.low %v1090_v49, %v1096_v7  ;;  %v1134_v12 = vcombine.high %v1090_v49, %v1096_v7  ;;  %8698 = vmatmul.mubr.msk.bf16.vlgmr.msra.gmra.mxu1 %vm2065_vm1, %v1338_v2  ;;  %8713 = vmatprep.subr.bf16.mxu0 %v9313_v6 }
 0x37f   : > { %v1157_v10 = vrot.slane %v1149_v59, %v9638_v3  ;;  %8708 = vmatpush3.bf16.msra.mxu1 %v2063_v8  ;;  %8709 = vmatprep.mubr.msk.bf16.mxu1 %vm9315_vm0, %v9313_v6  ;;  %v1164_v20 = vrot.slane %v1150_v1, %v9638_v3 }
 0x380   : > { %v9842_v15 = vpop.permute.xlu1 %4343  ;;  %v1141_v23 = vrot.slane %v1133_v11, %v9638_v3  ;;  %v1148_v24 = vrot.slane %v1134_v12, %v9638_v3  ;;  %8719 = vmatprep.subr.bf16.mxu1 %v9313_v6 }
 0x381   : > { %v9851_v29 = vpop.permute.xlu0 %4346 }
 0x382   : > { %v1197_v31 = vcombine.low %v1141_v23, %v1157_v10  ;;  %v1198_v33 = vcombine.high %v1141_v23, %v1157_v10  ;;  %v1213_v62 = vcombine.low %v1148_v24, %v1164_v20  ;;  %v4364_v0 = vcombine.low %v9711_v17, %v9851_v29 }
 0x383   : > { %v1214_v21 = vcombine.high %v1148_v24, %v1164_v20  ;;  %v4365_v13 = vcombine.high %v9711_v17, %v9851_v29 }
 0x384   : > { %v4350_v63 = vpop.permute.xlu1 %4349  ;;  %8704 = vmatmul.mubr.msk.bf16.vlgmr.msra.gmra.mxu0 %vm2065_vm1, %v1341_v32  ;;  %v1205_v39 = vrot.slane %v1197_v31, %v9646_v19  ;;  %v1212_v46 = vrot.slane %v1198_v33, %v9646_v19  ;;  %v1221_v38 = vrot.slane %v1213_v62, %v9646_v19  ;;  %v4372_v57 = vrot.slane %v4364_v0, %v9638_v3 }
 0x385   : > { %v4356_v22 = vpop.permute.xlu0 %4355  ;;  %8715 = vmatprep.mubr.msk.bf16.mxu0 %vm9315_vm0, %v9313_v6  ;;  %v4380_v60 = vcombine.low %v9842_v15, %v4350_v63  ;;  %v1228_v1 = vrot.slane %v1214_v21, %v9646_v19  ;;  %v4381_v8 = vcombine.high %v9842_v15, %v4350_v63  ;;  %v4379_v17 = vrot.slane %v4365_v13, %v9638_v3 }
 0x386   : > { %8710 = vmatmul.mubr.msk.bf16.vlgmr.msra.gmra.mxu1 %vm2065_vm1, %v1344_v54  ;;  %v1230_v40 = vcombine.high %v1173_v36, %v1205_v39  ;;  %v1229_v41 = vcombine.low %v1173_v36, %v1205_v39  ;;  %v1231_v48 = vcombine.low %v1180_v42, %v1212_v46  ;;  %v1232_v49 = vcombine.high %v1180_v42, %v1212_v46 }
 0x387   : > { %8721 = vmatprep.mubr.msk.bf16.mxu1 %vm9315_vm0, %v9313_v6  ;;  %v4388_v51 = vrot.slane %v4380_v60, %v9638_v3  ;;  %v1233_v59 = vcombine.low %v1189_v53, %v1221_v38  ;;  %v1234_v7 = vcombine.high %v1189_v53, %v1221_v38  ;;  %v1235_v14 = vcombine.low %v1196_v56, %v1228_v1 }
 0x388   : > { %v4353_v35 = vpop.permute.xlu1 %4352  ;;  %v2520_v44 = vpack.c.bf16 %v1230_v40, %v1230_v40  ;;  %v2519_v45 = vpack.c.bf16 %v1229_v41, %v1229_v41  ;;  %v2521_v4 = vpack.c.bf16 %v1231_v48, %v1231_v48  ;;  %v2522_v5 = vpack.c.bf16 %v1232_v49, %v1232_v49 }
 0x389   : > { %v4362_v43 = vpop.permute.xlu0 %4361  ;;  %v4428_v11 = vcombine.low %v4372_v57, %v4388_v51  ;;  %v1236_v18 = vcombine.high %v1196_v56, %v1228_v1  ;;  %v2523_v24 = vpack.c.bf16 %v1233_v59, %v1233_v59  ;;  %v2524_v27 = vpack.c.bf16 %v1234_v7, %v1234_v7 }
 0x38a   : > { %v4412_v52 = vcombine.low %v4356_v22, %v4362_v43  ;;  %2543 = vxpose.xlu0.c.b16.start.end [1/1] (short) (narrow) %v2520_v44, 16  ;;  %2527 = vxpose.xlu1.c.b16.start.end [1/1] (short) (narrow) %v2519_v45, 16  ;;  %v4413_v12 = vcombine.high %v4356_v22, %v4362_v43  ;;  %v4395_v15 = vrot.slane %v4381_v8, %v9638_v3 }
 0x38b   : > { %v4436_v30 = vrot.slane %v4428_v11, %v9646_v19  ;;  %v4429_v33 = vcombine.high %v4372_v57, %v4388_v51  ;;  %v2525_v34 = vpack.c.bf16 %v1235_v14, %v1235_v14  ;;  %v2526_v26 = vpack.c.bf16 %v1236_v18, %v1236_v18 }
 0x38c   : > { %v4359_v55 = vpop.permute.xlu1 %4358  ;;  %v4420_v9 = vrot.slane %v4412_v52, %v9638_v3  ;;  %v4427_v32 = vrot.slane %v4413_v12, %v9638_v3  ;;  %v4444_v22 = vcombine.low %v4379_v17, %v4395_v15  ;;  %v4445_v42 = vcombine.high %v4379_v17, %v4395_v15 }
 0x38d   : > { %v4396_v58 = vcombine.low %v4353_v35, %v4359_v55  ;;  %v4397_v2 = vcombine.high %v4353_v35, %v4359_v55  ;;  %v4443_v46 = vrot.slane %v4429_v33, %v9646_v19 }
 0x38e   : > { %2559 = vxpose.xlu0.c.b16.start.end [1/1] (short) (narrow) %v2521_v4, 16  ;;  %2575 = vxpose.xlu1.c.b16.start.end [1/1] (short) (narrow) %v2522_v5, 16  ;;  %v4452_v41 = vrot.slane %v4444_v22, %v9646_v19  ;;  %v4459_v44 = vrot.slane %v4445_v42, %v9646_v19 }
 0x38f   : > { %v4404_v10 = vrot.slane %v4396_v58, %v9638_v3  ;;  %v4411_v23 = vrot.slane %v4397_v2, %v9638_v3 }
 0x391   : > { %v4460_v20 = vcombine.low %v4404_v10, %v4420_v9  ;;  %v4461_v47 = vcombine.high %v4404_v10, %v4420_v9  ;;  %v4476_v62 = vcombine.low %v4411_v23, %v4427_v32  ;;  %v4477_v60 = vcombine.high %v4411_v23, %v4427_v32 }
 0x392   : > { %2591 = vxpose.xlu0.c.b16.start.end [1/1] (short) (narrow) %v2523_v24, 16  ;;  %2607 = vxpose.xlu1.c.b16.start.end [1/1] (short) (narrow) %v2524_v27, 16 }
 0x393   : > { %v4468_v31 = vrot.slane %v4460_v20, %v9646_v19  ;;  %v4475_v54 = vrot.slane %v4461_v47, %v9646_v19  ;;  %v4484_v40 = vrot.slane %v4476_v62, %v9646_v19  ;;  %v4491_v37 = vrot.slane %v4477_v60, %v9646_v19 }
 0x395   : > { %v4493_v29 = vcombine.high %v4436_v30, %v4468_v31  ;;  %v4492_v63 = vcombine.low %v4436_v30, %v4468_v31  ;;  %v4495_v25 = vcombine.high %v4443_v46, %v4475_v54  ;;  %v4494_v35 = vcombine.low %v4443_v46, %v4475_v54 }
 0x396   : > { %2623 = vxpose.xlu0.c.b16.start.end [1/1] (short) (narrow) %v2525_v34, 16  ;;  %2639 = vxpose.xlu1.c.b16.start.end [1/1] (short) (narrow) %v2526_v26, 16  ;;  %v4497_v21 = vcombine.high %v4452_v41, %v4484_v40  ;;  %v4496_v43 = vcombine.low %v4452_v41, %v4484_v40  ;;  %v4499_v49 = vcombine.high %v4459_v44, %v4491_v37 }
 0x397   : > { %v4667_v36 = vpack.c.bf16 %v4493_v29, %v4493_v29  ;;  %v4666_v39 = vpack.c.bf16 %v4492_v63, %v4492_v63  ;;  %v4669_v0 = vpack.c.bf16 %v4495_v25, %v4495_v25  ;;  %v4668_v38 = vpack.c.bf16 %v4494_v35, %v4494_v35 }
 0x398   : > { %v4671_v45 = vpack.c.bf16 %v4497_v21, %v4497_v21  ;;  %v4670_v48 = vpack.c.bf16 %v4496_v43, %v4496_v43  ;;  %v4498_v51 = vcombine.low %v4459_v44, %v4491_v37  ;;  %v4673_v52 = vpack.c.bf16 %v4499_v49, %v4499_v49 }
 0x39a   : > { %4782 = vxpose.xlu1.c.b16.start.end [1/1] (short) (narrow) %v4667_v36, 16  ;;  %4766 = vxpose.xlu0.c.b16.start.end [1/1] (short) (narrow) %v4666_v39, 16  ;;  %v4672_v53 = vpack.c.bf16 %v4498_v51, %v4498_v51 }
 0x39e   : > { %4814 = vxpose.xlu1.c.b16.start.end [1/1] (short) (narrow) %v4669_v0, 16  ;;  %4798 = vxpose.xlu0.c.b16.start.end [1/1] (short) (narrow) %v4668_v38, 16 }
 0x3a2   : > { %4846 = vxpose.xlu1.c.b16.start.end [1/1] (short) (narrow) %v4671_v45, 16  ;;  %4830 = vxpose.xlu0.c.b16.start.end [1/1] (short) (narrow) %v4670_v48, 16 }
 0x3a6   : > { %4878 = vxpose.xlu1.c.b16.start.end [1/1] (short) (narrow) %v4673_v52, 16  ;;  %4862 = vxpose.xlu0.c.b16.start.end [1/1] (short) (narrow) %v4672_v53, 16 }
 0x3ec   : > { %v2551_v55 = vpop.trf.xlu0  ;;  %v2535_v56 = vpop.trf.xlu1 }
 0x3ed   : > { %v2660_v59 = vshrl.u32 %v2551_v55, 16  ;;  %v2659_v1 = vshrl.u32 %v2535_v56, 16  ;;  %v9893_v9 = vpack.i.b16 %v2551_v55, %v2535_v56 }
 0x3ef   : > { %v9897_v13 = vpack.i.b16 %v2660_v59, %v2659_v1 }
 0x3f0   : > { %v2567_v57 = vpop.trf.xlu0  ;;  %v2583_v58 = vpop.trf.xlu1 }
 0x3f1   : > { %v2667_v10 = vshrl.u32 %v2567_v57, 16  ;;  %v2668_v11 = vshrl.u32 %v2583_v58, 16  ;;  %v2665_v14 = vpack.i.b16 %v2583_v58, %v2567_v57 }
 0x3f3   : > { %v2669_v15 = vpack.i.b16 %v2668_v11, %v2667_v10 }
 0x3f4   : > { %v2599_v2 = vpop.trf.xlu0  ;;  %v2615_v4 = vpop.trf.xlu1 }
 0x3f5   : > { %v2675_v5 = vshrl.u32 %v2599_v2, 16  ;;  %v9891_v7 = vpack.i.b16 %v2615_v4, %v2599_v2  ;;  %v2676_v8 = vshrl.u32 %v2615_v4, 16 }
 0x3f7   : > { %v9895_v12 = vpack.i.b16 %v2676_v8, %v2675_v5  ;;  %v2687_v23 = vcombine.low %v9893_v9, %v9891_v7  ;;  %v2688_v35 = vcombine.high %v9893_v9, %v9891_v7 }
 0x3f8   : > { %v2631_v18 = vpop.trf.xlu0  ;;  %v2647_v20 = vpop.trf.xlu1 }
 0x3f9   : > { %v2683_v24 = vshrl.u32 %v2631_v18, 16  ;;  %v2681_v27 = vpack.i.b16 %v2647_v20, %v2631_v18  ;;  %v2684_v47 = vshrl.u32 %v2647_v20, 16  ;;  %v2755_v32 = vcombine.low %v9897_v13, %v9895_v12 }
 0x3fa   : > { %v2695_v29 = vrot.slane %v2687_v23, %v9638_v3  ;;  %v2756_v44 = vcombine.high %v9897_v13, %v9895_v12  ;;  %v2702_v10 = vrot.slane %v2688_v35, %v9638_v3 }
 0x3fb   : > { %v2685_v30 = vpack.i.b16 %v2684_v47, %v2683_v24  ;;  %v2703_v31 = vcombine.low %v2665_v14, %v2681_v27  ;;  %v2763_v54 = vrot.slane %v2755_v32, %v9638_v3  ;;  %v2704_v60 = vcombine.high %v2665_v14, %v2681_v27 }
 0x3fc   : > { %v4774_v33 = vpop.trf.xlu0  ;;  %v4790_v17 = vpop.trf.xlu1  ;;  %v2770_v24 = vrot.slane %v2756_v44, %v9638_v3 }
 0x3fd   : > { %v2711_v63 = vrot.slane %v2703_v31, %v9638_v3  ;;  %v2771_v34 = vcombine.low %v2669_v15, %v2685_v30  ;;  %v4898_v41 = vshrl.u32 %v4774_v33, 16  ;;  %v4899_v42 = vshrl.u32 %v4790_v17, 16 }
 0x3fe   : > { %v4896_v21 = vpack.i.b16 %v4790_v17, %v4774_v33  ;;  %v2718_v45 = vrot.slane %v2704_v60, %v9638_v3  ;;  %v2772_v51 = vcombine.high %v2669_v15, %v2685_v30 }
 0x3ff   : > { %v2719_v26 = vcombine.low %v2695_v29, %v2711_v63  ;;  %v2779_v62 = vrot.slane %v2771_v34, %v9638_v3  ;;  %v2720_v40 = vcombine.high %v2695_v29, %v2711_v63  ;;  %v4900_v58 = vpack.i.b16 %v4899_v42, %v4898_v41 }
 0x400   : > { %v4806_v22 = vpop.trf.xlu0  ;;  %v4822_v36 = vpop.trf.xlu1  ;;  %v2786_v12 = vrot.slane %v2772_v51, %v9638_v3  ;;  %v2735_v47 = vcombine.low %v2702_v10, %v2718_v45 }
 0x401   : > { %v2727_v39 = vrot.slane %v2719_v26, %v9646_v19  ;;  %v2787_v46 = vcombine.low %v2763_v54, %v2779_v62  ;;  %v2788_v53 = vcombine.high %v2763_v54, %v2779_v62  ;;  %v4906_v55 = vshrl.u32 %v4806_v22, 16 }
 0x402   : > { %v4907_v56 = vshrl.u32 %v4822_v36, 16  ;;  %v2734_v57 = vrot.slane %v2720_v40, %v9646_v19  ;;  %v4904_v5 = vpack.i.b16 %v4822_v36, %v4806_v22  ;;  %v2803_v33 = vcombine.low %v2770_v24, %v2786_v12 }
 0x403   : > { %2823 = vxpose.xlu0.c.b16.start.end [1/1] (short) (narrow) %v2727_v39, 16  ;;  %v2795_v25 = vrot.slane %v2787_v46, %v9646_v19  ;;  %v2751_v38 = vcombine.high %v2727_v39, %v9314_v28  ;;  %v2802_v13 = vrot.slane %v2788_v53, %v9646_v19  ;;  %v2743_v63 = vrot.slane %v2735_v47, %v9646_v19 }
 0x404   : > { %v4838_v37 = vpop.trf.xlu0  ;;  %v4854_v0 = vpop.trf.xlu1  ;;  %v4908_v14 = vpack.i.b16 %v4907_v56, %v4906_v55  ;;  %v2752_v27 = vcombine.high %v2734_v57, %v9314_v28  ;;  %v2811_v62 = vrot.slane %v2803_v33, %v9646_v19  ;;  %v2736_v39 = vcombine.high %v2702_v10, %v2718_v45  ;;  %v485_v10 = vld [vmem:[%s11009_s1] sm:$0xff] }
 0x405   : > { %2839 = vxpose.xlu1.c.b16.start.end [1/1] (short) (narrow) %v2795_v25, 16  ;;  %v4914_v43 = vshrl.u32 %v4838_v37, 16  ;;  %v4912_v48 = vpack.i.b16 %v4854_v0, %v4838_v37  ;;  %v4915_v49 = vshrl.u32 %v4854_v0, 16  ;;  %v2819_v52 = vcombine.high %v2795_v25, %v9314_v28 }
 0x406   : > { %v2820_v32 = vcombine.high %v2802_v13, %v9314_v28  ;;  %v2753_v36 = vcombine.high %v2743_v63, %v9314_v28  ;;  %v2821_v46 = vcombine.high %v2811_v62, %v9314_v28  ;;  %v2804_v60 = vcombine.high %v2770_v24, %v2786_v12 }
 0x407   : > { %2855 = vxpose.xlu0.c.b16.start.end [1/1] (short) (narrow) %v2751_v38, 16  ;;  %v4916_v59 = vpack.i.b16 %v4915_v49, %v4914_v43  ;;  %v4927_v1 = vcombine.high %v4896_v21, %v4912_v48  ;;  %v4926_v54 = vcombine.low %v4896_v21, %v4912_v48  ;;  %v2750_v40 = vrot.slane %v2736_v39, %v9646_v19 }
 0x408   : > { %v4870_v2 = vpop.trf.xlu0  ;;  %v4886_v4 = vpop.trf.xlu1  ;;  %v2818_v41 = vrot.slane %v2804_v60, %v9646_v19 }
 0x409   : > { %2871 = vxpose.xlu1.c.b16.start.end [1/1] (short) (narrow) %v2819_v52, 16  ;;  %v4922_v7 = vshrl.u32 %v4870_v2, 16  ;;  %v4920_v8 = vpack.i.b16 %v4886_v4, %v4870_v2  ;;  %v4923_v9 = vshrl.u32 %v4886_v4, 16  ;;  %v4995_v11 = vcombine.high %v4900_v58, %v4916_v59 }
 0x40a   : > { %v9921_v23 = vrot.slane %v4927_v1, %v9638_v3  ;;  %v9946_v25 = vrot.slane %v4926_v54, %v9638_v3  ;;  %v4994_v37 = vcombine.low %v4900_v58, %v4916_v59  ;;  %v2754_v38 = vcombine.high %v2750_v40, %v9314_v28 }
 0x40b   : > { %2887 = vxpose.xlu0.c.b16.start.end [1/1] (short) (narrow) %v2734_v57, 16  ;;  %v4924_v18 = vpack.i.b16 %v4923_v9, %v4922_v7  ;;  %v4943_v20 = vcombine.high %v4904_v5, %v4920_v8  ;;  %v9929_v31 = vrot.slane %v4995_v11, %v9638_v3  ;;  %v4942_v22 = vcombine.low %v4904_v5, %v4920_v8  ;;  %v493_v11 = vld [vmem:[%s11010_s2] sm:$0x3] }
 0x40c   : > { %v2822_v21 = vcombine.high %v2818_v41, %v9314_v28  ;;  %v5002_v44 = vrot.slane %v4994_v37, %v9638_v3  ;;  %v2412_v7 = vsub.s32 0, %v9635_v61 }
 0x40d   : > { %2903 = vxpose.xlu1.c.b16.start.end [1/1] (short) (narrow) %v2802_v13, 16  ;;  %v9926_v15 = vrot.slane %v4943_v20, %v9638_v3  ;;  %v5011_v30 = vcombine.high %v4908_v14, %v4924_v18  ;;  %v9949_v35 = vrot.slane %v4942_v22, %v9638_v3  ;;  %v5010_v0 = vcombine.low %v4908_v14, %v4924_v18 }
 0x40e   : > { %v9981_v18 = vrot.slane %v493_v11, %v2412_v7 }
 0x40f   : > { %2919 = vxpose.xlu0.c.b16.start.end [1/1] (short) (narrow) %v2752_v27, 16  ;;  %v9933_v17 = vrot.slane %v5011_v30, %v9638_v3  ;;  %v4975_v29 = vcombine.high %v9921_v23, %v9926_v15  ;;  %v4958_v42 = vcombine.low %v9946_v25, %v9949_v35  ;;  %v5018_v45 = vrot.slane %v5010_v0, %v9638_v3  ;;  %v487_v27 = vld [vmem:[%s11009_s1 + $0x10] sm:$0xff] }
 0x410   : > { %v491_v0 = vld [vmem:[%s11009_s1 + $0x30] sm:$0xff]  ;;  %v4974_v7 = vcombine.low %v9921_v23, %v9926_v15 }
 0x411   : > { %2935 = vxpose.xlu1.c.b16.start.end [1/1] (short) (narrow) %v2820_v32, 16  ;;  %v5042_v34 = vcombine.low %v9929_v31, %v9933_v17  ;;  %v5043_v26 = vcombine.high %v9929_v31, %v9933_v17  ;;  %v4966_v43 = vrot.slane %v4958_v42, %v9646_v19  ;;  %v5027_v49 = vcombine.high %v5002_v44, %v5018_v45 }
 0x412   : > { %v5026_v51 = vcombine.low %v5002_v44, %v5018_v45 }
 0x413   : > { %2951 = vxpose.xlu0.c.b16.start.end [1/1] (short) (narrow) %v2743_v63, 16  ;;  %v4990_v48 = vcombine.high %v4966_v43, %v9314_v28  ;;  %v5041_v52 = vrot.slane %v5027_v49, %v9646_v19 }
 0x414   : > { %v9965_v53 = vrot.slane %v5026_v51, %v9646_v19 }
 0x415   : > { %2967 = vxpose.xlu1.c.b16.start.end [1/1] (short) (narrow) %v2811_v62, 16  ;;  %v5059_v2 = vcombine.high %v5041_v52, %v9314_v28  ;;  %v489_v62 = vld [vmem:[%s11009_s1 + $0x20] sm:$0xff] }
 0x416   : > { %v5058_v56 = vcombine.high %v9965_v53, %v9314_v28 }
 0x417   : > { %2983 = vxpose.xlu0.c.b16.start.end [1/1] (short) (narrow) %v2753_v36, 16 }
 0x419   : > { %2999 = vxpose.xlu1.c.b16.start.end [1/1] (short) (narrow) %v2821_v46, 16 }
 0x41b   : > { %3015 = vxpose.xlu0.c.b16.start.end [1/1] (short) (narrow) %v2750_v40, 16 }
 0x41d   : > { %3031 = vxpose.xlu1.c.b16.start.end [1/1] (short) (narrow) %v2818_v41, 16 }
 0x41f   : > { %3047 = vxpose.xlu0.c.b16.start.end [1/1] (short) (narrow) %v2754_v38, 16 }
 0x421   : > { %3063 = vxpose.xlu1.c.b16.start.end [1/1] (short) (narrow) %v2822_v21, 16 }
 0x423   : > { %5062 = vxpose.xlu0.c.b16.start.end [1/1] (short) (narrow) %v4966_v43, 16 }
 0x425   : > { %4188 = vrot.lane.b32.xlu1 %v9705_v16, %s9318_s16 }
 0x427   : > { %5094 = vxpose.xlu0.c.b16.start.end [1/1] (short) (narrow) %v4990_v48, 16  ;;  %v492_v48 = vld [vmem:[%s11009_s1 + $0x38] sm:$0xff] }
 0x429   : > { %4191 = vrot.lane.b32.xlu1 %v9705_v16, %s9316_s29 }
 0x42b   : > { %5142 = vxpose.xlu0.c.b16.start.end [1/1] (short) (narrow) %v5041_v52, 16  ;;  %v4959_v52 = vcombine.high %v9946_v25, %v9949_v35 }
 0x42c   : > { %v2103_v55 = vpop.f32.mrf.mxu0 }
 0x42d   : > { %v2104_v14 = vadd.f32 %v2103_v55, %v485_v10 }
 0x42e   : > { %v8669_v57 = vpop.f32.mrf.mxu0  ;;  %v9971_v58 = vpop.f32.mrf.mxu1 }
 0x42f   : > { %5110 = vxpose.xlu0.c.b16.start.end [1/1] (short) (narrow) %v5058_v56, 16  ;;  %v9987_v54 = vadd.f32 %v9981_v18, %v2104_v14 }
 0x430   : > { %v2106_v59 = vpop.f32.mrf.mxu0  ;;  %v8675_v1 = vpop.f32.mrf.mxu1 }
 0x431   : > { %v2423_v60 = vsel %vm2422_vm2, %v9987_v54, -inf }
 0x432   : > { %v8670_v4 = vpop.f32.mrf.mxu0  ;;  %v2149_v5 = vpop.f32.mrf.mxu1 }
 0x433   : > { %5174 = vxpose.xlu0.c.b16.start.end [1/1] (short) (narrow) %v5059_v2, 16  ;;  %v4973_v5 = vrot.slane %v4959_v52, %v9646_v19 }
 0x434   : > { %v8676_v8 = vpop.f32.mrf.mxu1  ;;  %v2189_v9 = vpop.f32.mrf.mxu0 }
 0x435   : > { %v2190_v32 = vadd.f32 %v2189_v9, %v487_v27  ;;  %v10024_v9 = vrot.slane %v4974_v7, %v9646_v19  ;;  %v4991_v11 = vcombine.high %v4973_v5, %v9314_v28 }
 0x436   : > { %v8681_v12 = vpop.f32.mrf.mxu0  ;;  %v2232_v13 = vpop.f32.mrf.mxu1 }
 0x437   : > { %v9995_v41 = vadd.f32 %v9981_v18, %v2190_v32  ;;  %v486_v12 = vld [vmem:[%s11009_s1 + $0x8] sm:$0xff]  ;;  %v4992_v31 = vcombine.high %v10024_v9, %v9314_v28 }
 0x438   : > { %v2192_v20 = vpop.f32.mrf.mxu0  ;;  %v8687_v24 = vpop.f32.mrf.mxu1  ;;  %v2147_v14 = vadd.f32 %v9971_v58, %v486_v12 }
 0x439   : > { %v2429_v21 = vsel %vm2422_vm2, %v9995_v41, -inf  ;;  %v488_v20 = vld [vmem:[%s11009_s1 + $0x18] sm:$0xff] }
 0x43a   : > { %v8682_v47 = vpop.f32.mrf.mxu0  ;;  %v2235_v30 = vpop.f32.mrf.mxu1  ;;  %v10039_v24 = vadd.f32 %v9981_v18, %v2147_v14  ;;  %v2233_v27 = vadd.f32 %v2232_v13, %v488_v20 }
 0x43c   : > { %v8688_v33 = vpop.f32.mrf.mxu1  ;;  %v2275_v63 = vpop.f32.mrf.mxu0  ;;  %v10045_v47 = vadd.f32 %v9981_v18, %v2233_v27  ;;  %v2426_v32 = vsel %vm2422_vm2, %v10039_v24, -inf }
 0x43d   : > { %v2276_v39 = vadd.f32 %v2275_v63, %v489_v62  ;;  %v10060_v63 = vrot.slane %v5042_v34, %v9646_v19 }
 0x43e   : > { %v8693_v22 = vpop.f32.mrf.mxu0  ;;  %v2318_v36 = vpop.f32.mrf.mxu1  ;;  %v2432_v33 = vsel %vm2422_vm2, %v10045_v47, -inf }
 0x43f   : > { %v10003_v44 = vadd.f32 %v9981_v18, %v2276_v39 }
 0x440   : > { %v8699_v46 = vpop.f32.mrf.mxu1  ;;  %v2278_v40 = vpop.f32.mrf.mxu0  ;;  %2424 = vmax.xlane.f32.xlu0 %v2423_v60 }
 0x441   : > { %v2435_v57 = vsel %vm2422_vm2, %v10003_v44, -inf }
 0x442   : > { %v8694_v42 = vpop.f32.mrf.mxu0  ;;  %v2321_v37 = vpop.f32.mrf.mxu1 }
 0x444   : > { %v8700_v38 = vpop.f32.mrf.mxu1  ;;  %v2361_v43 = vpop.f32.mrf.mxu0  ;;  %2430 = vmax.xlane.f32.xlu0 %v2429_v21 }
 0x445   : > { %v2362_v45 = vadd.f32 %v2361_v43, %v491_v0 }
 0x446   : > { %v8705_v49 = vpop.f32.mrf.mxu0  ;;  %v2404_v51 = vpop.f32.mrf.mxu1 }
 0x447   : > { %v2405_v55 = vadd.f32 %v2404_v51, %v492_v48  ;;  %v10013_v1 = vadd.f32 %v9981_v18, %v2362_v45 }
 0x448   : > { %v8711_v56 = vpop.f32.mrf.mxu1  ;;  %v2364_v59 = vpop.f32.mrf.mxu0  ;;  %2436 = vmax.xlane.f32.xlu0 %v2435_v57 }
 0x449   : > { %v10019_v8 = vadd.f32 %v9981_v18, %v2405_v55  ;;  %v2441_v35 = vsel %vm2422_vm2, %v10013_v1, -inf }
 0x44a   : > { %v8706_v2 = vpop.f32.mrf.mxu0  ;;  %v2407_v4 = vpop.f32.mrf.mxu1 }
 0x44b   : > { %v2444_v10 = vsel %vm2422_vm2, %v10019_v8, -inf }
 0x44c   : > { %v8712_v25 = vpop.f32.mrf.mxu1  ;;  %5126 = vxpose.xlu1.c.b16.start.end [1/1] (short) (narrow) %v4973_v5, 16  ;;  %2442 = vmax.xlane.f32.xlu0 %v2441_v35 }
 0x450   : > { %5190 = vxpose.xlu1.c.b16.start.end [1/1] (short) (narrow) %v10024_v9, 16  ;;  %2445 = vmax.xlane.f32.xlu0 %v2444_v10 }
 0x454   : > { %5078 = vxpose.xlu1.c.b16.start.end [1/1] (short) (narrow) %v9965_v53, 16  ;;  %v490_v53 = vld [vmem:[%s11009_s1 + $0x28] sm:$0xff] }
 0x455   : > { %v2319_v30 = vadd.f32 %v2318_v36, %v490_v53 }
 0x457   : > { %v10050_v58 = vadd.f32 %v9981_v18, %v2319_v30 }
 0x458   : > { %5158 = vxpose.xlu1.c.b16.start.end [1/1] (short) (narrow) %v4991_v11, 16 }
 0x459   : > { %v2438_v13 = vsel %vm2422_vm2, %v10050_v58, -inf }
 0x465   : > { %2427 = vmax.xlane.f32.xlu1 %v2426_v32  ;;  %v10062_v62 = vpop.trf.xlu0 }
 0x467   : > { %v10077_v60 = vpop.trf.xlu1 }
 0x469   : > { %2433 = vmax.xlane.f32.xlu1 %v2432_v33  ;;  %v10067_v18 = vpop.trf.xlu0 }
 0x46b   : > { %v10081_v40 = vpop.trf.xlu1 }
 0x46d   : > { %2439 = vmax.xlane.f32.xlu1 %v2438_v13  ;;  %v10069_v22 = vpop.trf.xlu0 }
 0x46e   : > { %v3079_v17 = vcombine.low %v10062_v62, %v10069_v22 }
 0x46f   : > { %v10085_v37 = vpop.trf.xlu1 }
 0x471   : > { %v10071_v36 = vpop.trf.xlu0 }
 0x473   : > { %v10089_v38 = vpop.trf.xlu1 }
 0x475   : > { %v10073_v39 = vpop.trf.xlu0 }
 0x477   : > { %v10093_v43 = vpop.trf.xlu1 }
 0x479   : > { %v10075_v46 = vpop.trf.xlu0 }
 0x47b   : > { %v10097_v48 = vpop.trf.xlu1 }
 0x47d   : > { %5206 = vxpose.xlu0.c.b16.start.end [1/1] (short) (narrow) %v10060_v63, 16  ;;  %v10079_v34 = vpop.trf.xlu0 }
 0x47e   : > { %4197 = vrot.lane.b32.xlu1 %v9705_v16, %s9319_s12  ;;  %v3095_v62 = vcombine.low %v10073_v39, %v10079_v34 }
 0x47f   : > { %v10101_v51 = vpop.trf.xlu1 }
 0x481   : > { %v10083_v42 = vpop.trf.xlu0 }
 0x482   : > { %v3103_v22 = vcombine.low %v10075_v46, %v10083_v42  ;;  %v3102_v46 = vrot.slane %v3095_v62, %v9638_v3 }
 0x483   : > { %v10105_v55 = vpop.trf.xlu1 }
 0x484   : > { %v3171_v9 = vcombine.low %v10097_v48, %v10105_v55  ;;  %v3110_v42 = vrot.slane %v3103_v22, %v9638_v3 }
 0x485   : > { %v10087_v0 = vpop.trf.xlu0 }
 0x486   : > { %v3178_v34 = vrot.slane %v3171_v9, %v9638_v3 }
 0x489   : > { %v10091_v21 = vpop.trf.xlu0 }
 0x48d   : > { %v10095_v45 = vpop.trf.xlu0 }
 0x491   : > { %v10099_v49 = vpop.trf.xlu0 }
 0x495   : > { %v10103_v52 = vpop.trf.xlu0 }
 0x497   : > { %v10108_v4 = vpop.permute.xlu1 %4188 }
 0x49b   : > { %v10112_v10 = vpop.permute.xlu1 %4191 }
 0x4ae   : > { %v10114_v12 = vpop.trf.xlu1 }
 0x4b2   : > { %v10120_v20 = vpop.trf.xlu1 }
 0x4b6   : > { %v10128_v53 = vpop.trf.xlu1 }
 0x4ba   : > { %v10132_v32 = vpop.trf.xlu1 }
 0x4c9   : > { %v2425_v56 = vpop.xlane.xlu0 %2424 }
 0x4ca   : > { %v2447_v57 = vsub.f32 %v9987_v54, %v2425_v56 }
 0x4cc   : > { %v2455_v59 = vmul.f32 1.442695, %v2447_v57 }
 0x4cd   : > { %v2431_v2 = vpop.xlane.xlu0 %2430 }
 0x4ce   : > { %9092 = vpow2.f32 %v2455_v59  ;;  %v2449_v5 = vsub.f32 %v9995_v41, %v2431_v2 }
 0x4d0   : > { %v2459_v7 = vmul.f32 1.442695, %v2449_v5 }
 0x4d1   : > { %v2437_v25 = vpop.xlane.xlu0 %2436 }
 0x4d2   : > { %9094 = vpow2.f32 %v2459_v7  ;;  %v2451_v35 = vsub.f32 %v10003_v44, %v2437_v25 }
 0x4d4   : > { %v2463_v11 = vmul.f32 1.442695, %v2451_v35 }
 0x4d6   : > { %9096 = vpow2.f32 %v2463_v11  ;;  %v2443_v11 = vpop.xlane.xlu0 %2442 }
 0x4db   : > { %v10116_v14 = vpop.eup %9092 }
 0x4dc   : > { %v2471_v54 = vsel %vm2422_vm2, %v10116_v14, 0.0 }
 0x4dd   : > { %2472 = vadd.xlane.f32.xlu0 %v2471_v54 }
 0x4df   : > { %v10122_v41 = vpop.eup %9094 }
 0x4e0   : > { %v2477_v27 = vsel %vm2422_vm2, %v10122_v41, 0.0 }
 0x4e1   : > { %2478 = vadd.xlane.f32.xlu0 %v2477_v27  ;;  %v2453_v27 = vsub.f32 %v10013_v1, %v2443_v11  ;;  %v3155_v11 = vcombine.low %v10081_v40, %v10089_v38  ;;  %v3086_v40 = vrot.slane %v3079_v17, %v9638_v3 }
 0x4e3   : > { %v10126_v44 = vpop.eup %9096 }
 0x4e4   : > { %v2483_v30 = vsel %vm2422_vm2, %v10126_v44, 0.0 }
 0x4e5   : > { %2484 = vadd.xlane.f32.xlu0 %v2483_v30 }
 0x4ee   : > { %v2428_v33 = vpop.xlane.xlu1 %2427 }
 0x4ef   : > { %v2448_v13 = vsub.f32 %v10039_v24, %v2428_v33  ;;  %v2467_v33 = vmul.f32 1.442695, %v2453_v27  ;;  %v3087_v27 = vcombine.low %v10067_v18, %v10071_v36  ;;  %v3162_v36 = vrot.slane %v3155_v11, %v9638_v3 }
 0x4f1   : > { %v2457_v56 = vmul.f32 1.442695, %v2448_v13 }
 0x4f2   : > { %v2434_v57 = vpop.xlane.xlu1 %2433 }
 0x4f3   : > { %9098 = vpow2.f32 %v2457_v56  ;;  %v2450_v59 = vsub.f32 %v10045_v47, %v2434_v57  ;;  %v2446_v57 = vpop.xlane.xlu0 %2445 }
 0x4f5   : > { %v2461_v2 = vmul.f32 1.442695, %v2450_v59  ;;  %v2454_v59 = vsub.f32 %v10019_v8, %v2446_v57 }
 0x4f6   : > { %v2440_v5 = vpop.xlane.xlu1 %2439 }
 0x4f7   : > { %9100 = vpow2.f32 %v2461_v2  ;;  %v2452_v7 = vsub.f32 %v10050_v58, %v2440_v5  ;;  %v2469_v2 = vmul.f32 1.442695, %v2454_v59 }
 0x4f9   : > { %v2465_v25 = vmul.f32 1.442695, %v2452_v7  ;;  %v5060_v7 = vcombine.high %v10060_v63, %v9314_v28  ;;  %v3147_v63 = vcombine.low %v10077_v60, %v10085_v37  ;;  %v4989_v60 = vrot.slane %v4975_v29, %v9646_v19 }
 0x4fa   : > { %v3094_v37 = vrot.slane %v3087_v27, %v9638_v3  ;;  %v3128_v27 = vcombine.high %v3102_v46, %v3110_v42 }
 0x4fb   : > { %9102 = vpow2.f32 %v2465_v25  ;;  %4185 = vrot.lane.b32.xlu0 %v9705_v16, %s9317_s22  ;;  %v5057_v25 = vrot.slane %v5043_v26, %v9646_v19  ;;  %v3154_v18 = vrot.slane %v3147_v63, %v9638_v3  ;;  %v4993_v23 = vcombine.high %v4989_v60, %v9314_v28 }
 0x4fc   : > { %9104 = vpow2.f32 %v2467_v33  ;;  %v3111_v15 = vcombine.low %v3086_v40, %v3094_v37  ;;  %v3112_v11 = vcombine.high %v3086_v40, %v3094_v37  ;;  %v10247_v40 = vrot.slane %v3128_v27, %v9646_v19 }
 0x4fd   : > { %9106 = vpow2.f32 %v2469_v2  ;;  %v5061_v8 = vcombine.high %v5057_v25, %v9314_v28  ;;  %v3180_v63 = vcombine.high %v3154_v18, %v3162_v36 }
 0x4fe   : > { %v3119_v33 = vrot.slane %v3111_v15, %v9646_v19 }
 0x4ff   : > { %4194 = vrot.lane.b32.xlu0 %v9705_v16, %s9320_s25 }
 0x500   : > { %v10141_v35 = vpop.eup %9098 }
 0x501   : > { %v2474_v24 = vsel %vm2422_vm2, %v10141_v35, 0.0 }
 0x502   : > { %2475 = vadd.xlane.f32.xlu1 %v2474_v24  ;;  %v10176_v24 = vpop.trf.xlu0 }
 0x503   : > { %4200 = vrot.lane.b32.xlu0 %v9705_v16, %s9321_s4 }
 0x504   : > { %v10147_v47 = vpop.eup %9100 }
 0x505   : > { %v2480_v58 = vsel %vm2422_vm2, %v10147_v47, 0.0 }
 0x506   : > { %2481 = vadd.xlane.f32.xlu1 %v2480_v58 }
 0x508   : > { %v10151_v54 = vpop.eup %9102 }
 0x509   : > { %v2486_v30 = vsel %vm2422_vm2, %v10151_v54, 0.0  ;;  %v10158_v13 = vpop.eup %9104 }
 0x50a   : > { %2487 = vadd.xlane.f32.xlu1 %v2486_v30  ;;  %v2489_v56 = vsel %vm2422_vm2, %v10158_v13, 0.0  ;;  %v10163_v1 = vpop.eup %9106  ;;  %v3163_v30 = vcombine.low %v10093_v43, %v10101_v51  ;;  %v3179_v43 = vcombine.low %v3154_v18, %v3162_v36  ;;  %v3127_v51 = vcombine.low %v3102_v46, %v3110_v42 }
 0x50b   : > { %v2492_v5 = vsel %vm2422_vm2, %v10163_v1, 0.0  ;;  %v10241_v18 = vrot.slane %v3180_v63, %v9646_v19 }
 0x50c   : > { %v3170_v39 = vrot.slane %v3163_v30, %v9638_v3  ;;  %v3187_v57 = vrot.slane %v3179_v43, %v9646_v19  ;;  %v3135_v2 = vrot.slane %v3127_v51, %v9646_v19 }
 0x50e   : > { %v3195_v48 = vcombine.low %v3170_v39, %v3178_v34  ;;  %v3196_v30 = vcombine.high %v3170_v39, %v3178_v34  ;;  %v3144_v62 = vcombine.high %v3119_v33, %v3135_v2 }
 0x510   : > { %v3203_v59 = vrot.slane %v3195_v48, %v9646_v19  ;;  %v10244_v36 = vrot.slane %v3196_v30, %v9646_v19 }
 0x512   : > { %v3212_v9 = vcombine.high %v3187_v57, %v3203_v59  ;;  %v3213_v34 = vcombine.low %v10241_v18, %v10244_v36 }
 0x514   : > { %v3223_v37 = vpack.i.b16 %v3212_v9, %v3144_v62 }
 0x51b   : > { %4203 = vrot.lane.b32.xlu1 %v9705_v16, %s9322_s24 }
 0x522   : > { %2490 = vadd.xlane.f32.xlu0 %v2489_v56 }
 0x53f   : > { %2493 = vadd.xlane.f32.xlu1 %v2492_v5 }
 0x54f   : > { %5238 = vxpose.xlu0.c.b16.start.end [1/1] (short) (narrow) %v5060_v7, 16 }
 0x553   : > { %5270 = vxpose.xlu0.c.b16.start.end [1/1] (short) (narrow) %v5057_v25, 16 }
 0x557   : > { %5302 = vxpose.xlu0.c.b16.start.end [1/1] (short) (narrow) %v5061_v8, 16  ;;  %v3211_v8 = vcombine.low %v3187_v57, %v3203_v59 }
 0x559   : > { %v3219_v57 = vshrl.u32 %v3211_v8, 16 }
 0x560   : > { %4504 = vrot.lane.b32.xlu0 %v9616_v50, %s9318_s16 }
 0x564   : > { %4513 = vrot.lane.b32.xlu0 %v9616_v50, %s9319_s12 }
 0x566   : > { %v2473_v58 = vpop.xlane.xlu0 %2472 }
 0x567   : > { %9108 = vrcp.f32 %v2473_v58 }
 0x568   : > { %4519 = vrot.lane.b32.xlu0 %v9616_v50, %s9322_s24 }
 0x56a   : > { %v2479_v26 = vpop.xlane.xlu0 %2478 }
 0x56b   : > { %9110 = vrcp.f32 %v2479_v26 }
 0x56c   : > { %5222 = vxpose.xlu1.c.b16.start.end [1/1] (short) (narrow) %v4992_v31, 16 }
 0x56e   : > { %v2485_v38 = vpop.xlane.xlu0 %2484 }
 0x56f   : > { %9112 = vrcp.f32 %v2485_v38 }
 0x570   : > { %5254 = vxpose.xlu1.c.b16.start.end [1/1] (short) (narrow) %v4989_v60, 16  ;;  %v10236_v60 = vrot.slane %v3112_v11, %v9646_v19 }
 0x572   : > { %v3145_v46 = vcombine.low %v10236_v60, %v10247_v40  ;;  %v4186_v48 = vpop.permute.xlu0 %4185 }
 0x574   : > { %v9109_v29 = vpop.eup %9108  ;;  %5286 = vxpose.xlu1.c.b16.start.end [1/1] (short) (narrow) %v4993_v23, 16  ;;  %v3229_v23 = vpack.i.b16 %v3213_v34, %v3145_v46  ;;  %v3230_v63 = vshrl.u32 %v3145_v46, 16  ;;  %v10289_v46 = vcombine.high %v10236_v60, %v10247_v40 }
 0x575   : > { %v2503_v55 = vmul.f32 %v9109_v29, %v10116_v14  ;;  %v3143_v14 = vcombine.low %v3119_v33, %v3135_v2 }
 0x576   : > { %v4195_v2 = vpop.permute.xlu0 %4194 }
 0x577   : > { %v2511_v5 = vpack.c.bf16 %v2503_v55, %v2503_v55  ;;  %v3217_v17 = vpack.i.b16 %v3211_v8, %v3143_v14  ;;  %v3218_v59 = vshrl.u32 %v3143_v14, 16  ;;  %v3224_v8 = vshrl.u32 %v3144_v62, 16 }
 0x578   : > { %v9111_v56 = vpop.eup %9110  ;;  %4501 = vrot.lane.b32.xlu1 %v9616_v50, %s9317_s22 }
 0x579   : > { %v3243_v7 = vsel %vm2422_vm2, %v2511_v5, 0  ;;  %v2505_v25 = vmul.f32 %v9111_v56, %v10122_v41 }
 0x57a   : > { %8714 = vmatpush3.bf16.xpose.msra.mxu0 %v3243_v7 }
 0x57b   : > { %8725 = vmatprep.subr.bf16.mxu0 %v9313_v6  ;;  %v2513_v58 = vpack.c.bf16 %v2505_v25, %v2505_v25  ;;  %v3220_v25 = vpack.i.b16 %v3219_v57, %v3218_v59 }
 0x57c   : > { %4507 = vrot.lane.b32.xlu1 %v9616_v50, %s9316_s29  ;;  %v9113_v31 = vpop.eup %9112 }
 0x57d   : > { %v3337_v26 = vsel %vm2422_vm2, %v2513_v58, 0  ;;  %v2507_v41 = vmul.f32 %v9113_v31, %v10126_v44  ;;  %v10238_v44 = vpop.permute.xlu1 %4197  ;;  %v4201_v58 = vpop.permute.xlu0 %4200 }
 0x57f   : > { %v2515_v22 = vpack.c.bf16 %v2507_v41, %v2507_v41 }
 0x580   : > { %4510 = vrot.lane.b32.xlu1 %v9616_v50, %s9320_s25 }
 0x581   : > { %8716 = vmatmul.mubr.msk.bf16.vlgmr.msra.gmra.mxu0 %vm2422_vm2, %v3217_v17  ;;  %v3431_v38 = vsel %vm2422_vm2, %v2515_v22, 0 }
 0x582   : > { %8726 = vmatpush3.bf16.xpose.msra.mxu0 %v3337_v26  ;;  %8727 = vmatprep.mubr.msk.bf16.mxu0 %vm9315_vm0, %v9313_v6 }
 0x583   : > { %8737 = vmatprep.subr.bf16.mxu0 %v9313_v6 }
 0x584   : > { %4516 = vrot.lane.b32.xlu1 %v9616_v50, %s9321_s4 }
 0x589   : > { %8728 = vmatmul.mubr.msk.bf16.vlgmr.msra.gmra.mxu0 %vm2422_vm2, %v3223_v37 }
 0x58a   : > { %8738 = vmatpush3.bf16.xpose.msra.mxu0 %v3431_v38  ;;  %8739 = vmatprep.mubr.msk.bf16.mxu0 %vm9315_vm0, %v9313_v6 }
 0x58b   : > { %v2476_v39 = vpop.xlane.xlu1 %2475  ;;  %8749 = vmatprep.subr.bf16.mxu0 %v9313_v6 }
 0x58c   : > { %9114 = vrcp.f32 %v2476_v39 }
 0x58f   : > { %v2482_v42 = vpop.xlane.xlu1 %2481 }
 0x590   : > { %9116 = vrcp.f32 %v2482_v42  ;;  %v4238_v42 = vcombine.low %v4195_v2, %v4201_v58 }
 0x591   : > { %8740 = vmatmul.mubr.msk.bf16.vlgmr.msra.gmra.mxu0 %vm2422_vm2, %v3229_v23  ;;  %v4223_v23 = vcombine.high %v4186_v48, %v10112_v10 }
 0x592   : > { %8751 = vmatprep.mubr.msk.bf16.mxu0 %vm9315_vm0, %v9313_v6 }
 0x593   : > { %v2488_v15 = vpop.xlane.xlu1 %2487 }
 0x594   : > { %9118 = vrcp.f32 %v2488_v15  ;;  %v4239_v15 = vcombine.high %v4195_v2, %v4201_v58 }
 0x599   : > { %v9115_v29 = vpop.eup %9114 }
 0x59a   : > { %v2504_v43 = vmul.f32 %v9115_v29, %v10141_v35 }
 0x59c   : > { %v2512_v55 = vpack.c.bf16 %v2504_v43, %v2504_v43 }
 0x59d   : > { %v9117_v51 = vpop.eup %9116 }
 0x59e   : > { %v3290_v33 = vsel %vm2422_vm2, %v2512_v55, 0  ;;  %v2506_v56 = vmul.f32 %v9117_v51, %v10147_v47  ;;  %v3225_v47 = vshrl.u32 %v3212_v9, 16  ;;  %v4204_v9 = vpop.permute.xlu1 %4203  ;;  %v4246_v51 = vrot.slane %v4238_v42, %v9638_v3 }
 0x59f   : > { %8720 = vmatpush3.bf16.xpose.msra.mxu1 %v3290_v33  ;;  %v4254_v37 = vcombine.low %v10238_v44, %v4204_v9  ;;  %v4255_v39 = vcombine.high %v10238_v44, %v4204_v9  ;;  %v4206_v44 = vcombine.low %v9705_v16, %v10108_v4  ;;  %v5318_v42 = vcombine.low %v10087_v0, %v10114_v12 }
 0x5a0   : > { %8731 = vmatprep.subr.bf16.mxu1 %v9313_v6  ;;  %v2514_v5 = vpack.c.bf16 %v2506_v56, %v2506_v56  ;;  %v3226_v26 = vpack.i.b16 %v3225_v47, %v3224_v8 }
 0x5a1   : > { %v9119_v7 = vpop.eup %9118  ;;  %v4262_v29 = vrot.slane %v4254_v37, %v9638_v3  ;;  %v4214_v55 = vrot.slane %v4206_v44, %v9638_v3  ;;  %v5325_v12 = vrot.slane %v5318_v42, %v9638_v3 }
 0x5a2   : > { %v3384_v35 = vsel %vm2422_vm2, %v2514_v5, 0  ;;  %v2508_v31 = vmul.f32 %v9119_v7, %v10151_v54  ;;  %v3231_v54 = vshrl.u32 %v3213_v34, 16  ;;  %v10285_v34 = vcombine.high %v10241_v18, %v10244_v36 }
 0x5a3   : > { %v4207_v18 = vcombine.high %v9705_v16, %v10108_v4  ;;  %v4269_v36 = vrot.slane %v4255_v39, %v9638_v3  ;;  %v4302_v33 = vcombine.low %v4246_v51, %v4262_v29  ;;  %v4303_v4 = vcombine.high %v4246_v51, %v4262_v29 }
 0x5a4   : > { %v2516_v17 = vpack.c.bf16 %v2508_v31, %v2508_v31  ;;  %v3232_v11 = vpack.i.b16 %v3231_v54, %v3230_v63  ;;  %v3235_v40 = vpack.i.b16 %v10285_v34, %v10289_v46  ;;  %v5386_v63 = vcombine.low %v10128_v53, %v10095_v45 }
 0x5a5   : > { %v4221_v16 = vrot.slane %v4207_v18, %v9638_v3  ;;  %v4317_v31 = vrot.slane %v4303_v4, %v9646_v19  ;;  %v5326_v45 = vcombine.low %v10091_v21, %v10132_v32 }
 0x5a6   : > { %8722 = vmatmul.mubr.msk.bf16.vlgmr.msra.gmra.mxu1 %vm2422_vm2, %v3220_v25  ;;  %v3478_v41 = vsel %vm2422_vm2, %v2516_v17, 0 }
 0x5a7   : > { %8732 = vmatpush3.bf16.xpose.msra.mxu1 %v3384_v35  ;;  %8733 = vmatprep.mubr.msk.bf16.mxu1 %vm9315_vm0, %v9313_v6  ;;  %v4310_v35 = vrot.slane %v4302_v33, %v9646_v19  ;;  %v5333_v21 = vrot.slane %v5326_v45, %v9638_v3 }
 0x5a8   : > { %8743 = vmatprep.subr.bf16.mxu1 %v9313_v6 }
 0x5a9   : > { %v5350_v4 = vcombine.low %v5325_v12, %v5333_v21 }
 0x5ab   : > { %v2491_v14 = vpop.xlane.xlu0 %2490 }
 0x5ac   : > { %9120 = vrcp.f32 %v2491_v14 }
 0x5ae   : > { %8734 = vmatmul.mubr.msk.bf16.vlgmr.msra.gmra.mxu1 %vm2422_vm2, %v3226_v26  ;;  %v5394_v26 = vcombine.low %v10099_v49, %v10103_v52 }
 0x5af   : > { %8744 = vmatpush3.bf16.xpose.msra.mxu1 %v3478_v41  ;;  %8745 = vmatprep.mubr.msk.bf16.mxu1 %vm9315_vm0, %v9313_v6 }
 0x5b0   : > { %8755 = vmatprep.subr.bf16.mxu1 %v9313_v6  ;;  %v10332_v53 = vrot.slane %v5394_v26, %v9638_v3 }
 0x5b1   : > { %v5246_v22 = vpop.trf.xlu0 }
 0x5b5   : > { %v5278_v60 = vpop.trf.xlu0 }
 0x5b6   : > { %8746 = vmatmul.mubr.msk.bf16.vlgmr.msra.gmra.mxu1 %vm2422_vm2, %v3232_v11 }
 0x5b7   : > { %8757 = vmatprep.mubr.msk.bf16.mxu1 %vm9315_vm0, %v9313_v6 }
 0x5b9   : > { %v9121_v27 = vpop.eup %9120  ;;  %v5310_v25 = vpop.trf.xlu0 }
 0x5ba   : > { %v2509_v30 = vmul.f32 %v9121_v27, %v10158_v13  ;;  %v4222_v13 = vcombine.low %v4186_v48, %v10112_v10  ;;  %v4237_v10 = vrot.slane %v4223_v23, %v9638_v3  ;;  %v4253_v48 = vrot.slane %v4239_v15, %v9638_v3 }
 0x5bb   : > { %v5410_v17 = vcombine.low %v5246_v22, %v5310_v25 }
 0x5bc   : > { %v2517_v62 = vpack.c.bf16 %v2509_v30, %v2509_v30  ;;  %v4230_v43 = vrot.slane %v4222_v13, %v9638_v3  ;;  %v4318_v56 = vcombine.low %v4253_v48, %v4269_v36  ;;  %v4319_v59 = vcombine.high %v4253_v48, %v4269_v36 }
 0x5bd   : > { %v4286_v7 = vcombine.low %v4221_v16, %v4237_v10  ;;  %v4287_v58 = vcombine.high %v4221_v16, %v4237_v10  ;;  %v5402_v30 = vcombine.low %v10176_v24, %v5278_v60  ;;  %v10325_v52 = vrot.slane %v5410_v17, %v9638_v3 }
 0x5be   : > { %v3525_v38 = vsel %vm2422_vm2, %v2517_v62, 0  ;;  %v4270_v57 = vcombine.low %v4214_v55, %v4230_v43  ;;  %v4271_v5 = vcombine.high %v4214_v55, %v4230_v43  ;;  %v4326_v47 = vrot.slane %v4318_v56, %v9646_v19 }
 0x5bf   : > { %8750 = vmatpush3.bf16.xpose.msra.mxu0 %v3525_v38  ;;  %v4333_v14 = vrot.slane %v4319_v59, %v9646_v19  ;;  %v4294_v54 = vrot.slane %v4286_v7, %v9646_v19  ;;  %v4301_v11 = vrot.slane %v4287_v58, %v9646_v19  ;;  %v10335_v24 = vrot.slane %v5386_v63, %v9638_v3 }
 0x5c0   : > { %8761 = vmatprep.subr.bf16.mxu0 %v9313_v6  ;;  %v4278_v8 = vrot.slane %v4270_v57, %v9646_v19  ;;  %v4285_v41 = vrot.slane %v4271_v5, %v9646_v19  ;;  %v10338_v23 = vrot.slane %v5402_v30, %v9638_v3 }
 0x5c1   : > { %v4338_v22 = vcombine.low %v4294_v54, %v4326_v47  ;;  %v4339_v39 = vcombine.high %v4294_v54, %v4326_v47  ;;  %v4340_v13 = vcombine.low %v4301_v11, %v4333_v14  ;;  %v4341_v49 = vcombine.high %v4301_v11, %v4333_v14 }
 0x5c2   : > { %v4334_v27 = vcombine.low %v4278_v8, %v4310_v35  ;;  %v4335_v62 = vcombine.high %v4278_v8, %v4310_v35  ;;  %v4336_v37 = vcombine.low %v4285_v41, %v4317_v31  ;;  %v4337_v38 = vcombine.high %v4285_v41, %v4317_v31 }
 0x5c3   : > { %v5434_v0 = vcombine.low %v10338_v23, %v10325_v52  ;;  %v5358_v35 = vrot.slane %v5350_v4, %v9646_v19  ;;  %v3237_v47 = vshrl.u32 %v10285_v34, 16  ;;  %v3236_v8 = vshrl.u32 %v10289_v46, 16 }
 0x5c4   : > { %v8446_v44 = vpack.c.bf16 %v4338_v22, %v4334_v27  ;;  %v8447_v29 = vpack.c.bf16 %v4340_v13, %v4336_v37  ;;  %v8448_v18 = vpack.c.bf16 %v4339_v39, %v4335_v62  ;;  %v8449_v36 = vpack.c.bf16 %v4341_v49, %v4337_v38 }
 0x5c5   : > { %v3238_v30 = vpack.i.b16 %v3237_v47, %v3236_v8  ;;  %v5435_v62 = vcombine.high %v10338_v23, %v10325_v52  ;;  %v5419_v38 = vcombine.high %v10335_v24, %v10332_v53 }
 0x5c6   : > { %8752 = vmatmul.mubr.msk.bf16.vlgmr.msra.gmra.mxu0 %vm2422_vm2, %v3235_v40  ;;  %v5418_v40 = vcombine.low %v10335_v24, %v10332_v53  ;;  %v10348_v51 = vrot.slane %v8446_v44, %v9638_v3  ;;  %v10352_v55 = vrot.slane %v8447_v29, %v9638_v3  ;;  %v10355_v33 = vrot.slane %v8448_v18, %v9638_v3 }
 0x5c7   : > { %8763 = vmatprep.mubr.msk.bf16.mxu0 %vm9315_vm0, %v9313_v6  ;;  %v10358_v16 = vrot.slane %v8449_v36, %v9638_v3  ;;  %v5449_v45 = vrot.slane %v5435_v62, %v9646_v19 }
 0x5c8   : > { %v2494_v2 = vpop.xlane.xlu1 %2493  ;;  %v4690_v5 = vcombine.low %v10348_v51, %v10352_v55 }
 0x5c9   : > { %9122 = vrcp.f32 %v2494_v2  ;;  %v5426_v2 = vrot.slane %v5418_v40, %v9646_v19  ;;  %v4724_v7 = vcombine.low %v10355_v33, %v10358_v16 }
 0x5ca   : > { %v4698_v26 = vrot.slane %v4690_v5, %v9646_v19 }
 0x5cb   : > { %v4732_v41 = vrot.slane %v4724_v7, %v9646_v19 }
 0x5cc   : > { %v4745_v49 = vshrl.u32 %v4698_v26, 16  ;;  %v4706_v24 = vcombine.high %v4698_v26, %v9314_v28 }
 0x5cd   : > { %v4744_v37 = vpack.i.b16 %v4732_v41, %v4698_v26  ;;  %v4746_v52 = vshrl.u32 %v4732_v41, 16  ;;  %v4740_v23 = vcombine.high %v4732_v41, %v9314_v28 }
 0x5ce   : > { %v5230_v9 = vpop.trf.xlu1 }
 0x5cf   : > { %v4747_v36 = vpack.i.b16 %v4746_v52, %v4745_v49  ;;  %v4750_v40 = vpack.i.b16 %v4740_v23, %v4706_v24 }
 0x5d2   : > { %v5262_v15 = vpop.trf.xlu1  ;;  %v10385_v13 = vpop.permute.xlu0 %4504 }
 0x5d3   : > { %v5334_v32 = vcombine.low %v10120_v20, %v5262_v15  ;;  %v5442_v20 = vrot.slane %v5434_v0, %v9646_v19  ;;  %v5433_v15 = vrot.slane %v5419_v38, %v9646_v19 }
 0x5d5   : > { %v5341_v56 = vrot.slane %v5334_v32, %v9638_v3  ;;  %v5450_v25 = vcombine.low %v5426_v2, %v5442_v20  ;;  %v5451_v34 = vcombine.high %v5426_v2, %v5442_v20  ;;  %v5452_v0 = vcombine.low %v5433_v15, %v5449_v45 }
 0x5d6   : > { %v9123_v60 = vpop.eup %9122  ;;  %v5294_v43 = vpop.trf.xlu1  ;;  %v4725_v32 = vcombine.high %v10355_v33, %v10358_v16  ;;  %v4752_v20 = vshrl.u32 %v4740_v23, 16  ;;  %v5453_v5 = vcombine.high %v5433_v15, %v5449_v45 }
 0x5d7   : > { %v5342_v10 = vcombine.low %v5230_v9, %v5294_v43  ;;  %v2510_v48 = vmul.f32 %v9123_v60, %v10163_v1  ;;  %v5459_v17 = vshrl.u32 %v5450_v25, 16  ;;  %v5351_v9 = vcombine.high %v5325_v12, %v5333_v21  ;;  %v4514_v60 = vpop.permute.xlu0 %4513 }
 0x5d8   : > { %v5467_v29 = vshrl.u32 %v5451_v34, 16  ;;  %v4691_v21 = vcombine.high %v10348_v51, %v10352_v55  ;;  %v4739_v33 = vrot.slane %v4725_v32, %v9646_v19 }
 0x5d9   : > { %v5349_v57 = vrot.slane %v5342_v10, %v9638_v3  ;;  %v2518_v59 = vpack.c.bf16 %v2510_v48, %v2510_v48  ;;  %v5365_v42 = vrot.slane %v5351_v9, %v9646_v19  ;;  %v4751_v48 = vshrl.u32 %v4706_v24, 16 }
 0x5da   : > { %v4705_v55 = vrot.slane %v4691_v21, %v9646_v19  ;;  %v4758_v26 = vshrl.u32 %v4739_v33, 16  ;;  %v4741_v62 = vcombine.high %v4739_v33, %v9314_v28 }
 0x5db   : > { %v5366_v1 = vcombine.low %v5341_v56, %v5349_v57  ;;  %v3572_v58 = vsel %vm2422_vm2, %v2518_v59, 0  ;;  %v5367_v54 = vcombine.high %v5341_v56, %v5349_v57  ;;  %v5475_v56 = vshrl.u32 %v5452_v0, 16  ;;  %v4520_v59 = vpop.permute.xlu0 %4519 }
 0x5dc   : > { %8756 = vmatpush3.bf16.xpose.msra.mxu1 %v3572_v58  ;;  %v4522_v57 = vcombine.low %v9616_v50, %v10385_v13  ;;  %v4570_v58 = vcombine.low %v4514_v60, %v4520_v59  ;;  %v4757_v47 = vshrl.u32 %v4705_v55, 16  ;;  %v4707_v9 = vcombine.high %v4705_v55, %v9314_v28 }
 0x5dd   : > { %v5374_v31 = vrot.slane %v5366_v1, %v9646_v19  ;;  %8767 = vmatprep.subr.bf16.mxu1 %v9313_v6  ;;  %v5381_v22 = vrot.slane %v5367_v54, %v9646_v19  ;;  %v4753_v1 = vpack.i.b16 %v4752_v20, %v4751_v48 }
 0x5de   : > { %v4530_v8 = vrot.slane %v4522_v57, %v9638_v3  ;;  %v4762_v24 = vpack.i.b16 %v4741_v62, %v4707_v9 }
 0x5df   : > { %v5382_v14 = vcombine.low %v5358_v35, %v5374_v31  ;;  %v5383_v63 = vcombine.high %v5358_v35, %v5374_v31  ;;  %v5384_v44 = vcombine.low %v5365_v42, %v5381_v22  ;;  %v5385_v16 = vcombine.high %v5365_v42, %v5381_v22 }
 0x5e1   : > { %v5456_v11 = vpack.i.b16 %v5450_v25, %v5382_v14  ;;  %v5458_v27 = vshrl.u32 %v5382_v14, 16  ;;  %v5464_v39 = vpack.i.b16 %v5451_v34, %v5383_v63  ;;  %v5466_v53 = vshrl.u32 %v5383_v63, 16 }
 0x5e2   : > { %v5472_v43 = vpack.i.b16 %v5452_v0, %v5384_v44  ;;  %v5474_v51 = vshrl.u32 %v5384_v44, 16  ;;  %v4756_v25 = vpack.i.b16 %v4739_v33, %v4705_v55  ;;  %v5480_v31 = vpack.i.b16 %v5453_v5, %v5385_v16 }
 0x5e3   : > { %8762 = vmatpush3.bf16.msra.mxu0 %v5456_v11  ;;  %v5460_v46 = vpack.i.b16 %v5459_v17, %v5458_v27  ;;  %8758 = vmatmul.mubr.msk.bf16.vlgmr.msra.gmra.mxu1 %vm2422_vm2, %v3238_v30  ;;  %v5468_v12 = vpack.i.b16 %v5467_v29, %v5466_v53  ;;  %v4571_v14 = vcombine.high %v4514_v60, %v4520_v59  ;;  %v5482_v41 = vshrl.u32 %v5385_v16, 16 }
 0x5e4   : > { %8773 = vmatprep.subr.bf16.mxu0 %v9313_v6  ;;  %8769 = vmatprep.mubr.msk.bf16.mxu1 %vm9315_vm0, %v9313_v6  ;;  %v5476_v7 = vpack.i.b16 %v5475_v56, %v5474_v51  ;;  %v4523_v27 = vcombine.high %v9616_v50, %v10385_v13  ;;  %v5483_v30 = vshrl.u32 %v5453_v5, 16  ;;  %v4578_v34 = vrot.slane %v4570_v58, %v9638_v3 }
 0x5e5   : > { %8768 = vmatpush3.bf16.msra.mxu1 %v5460_v46  ;;  %v4585_v22 = vrot.slane %v4571_v14, %v9638_v3  ;;  %v4763_v29 = vshrl.u32 %v4707_v9, 16 }
 0x5e6   : > { %8764 = vmatmul.mubr.msk.bf16.vlgmr.msra.gmra.mxu0 %vm2065_vm1, %v4744_v37  ;;  %8779 = vmatprep.subr.bf16.mxu1 %v9313_v6  ;;  %v5484_v49 = vpack.i.b16 %v5483_v30, %v5482_v41  ;;  %v4537_v45 = vrot.slane %v4523_v27, %v9638_v3 }
 0x5e7   : > { %8774 = vmatpush3.bf16.msra.mxu0 %v5464_v39  ;;  %8775 = vmatprep.mubr.msk.bf16.mxu0 %vm9315_vm0, %v9313_v6  ;;  %v4759_v39 = vpack.i.b16 %v4758_v26, %v4757_v47 }
 0x5e8   : > { %8785 = vmatprep.subr.bf16.mxu0 %v9313_v6 }
 0x5ea   : > { %v10397_v18 = vpop.permute.xlu1 %4501 }
 0x5eb   : > { %8770 = vmatmul.mubr.msk.bf16.vlgmr.msra.gmra.mxu1 %vm2065_vm1, %v4747_v36 }
 0x5ec   : > { %8780 = vmatpush3.bf16.msra.mxu1 %v5468_v12  ;;  %8781 = vmatprep.mubr.msk.bf16.mxu1 %vm9315_vm0, %v9313_v6 }
 0x5ed   : > { %8791 = vmatprep.subr.bf16.mxu1 %v9313_v6 }
 0x5ee   : > { %v4508_v10 = vpop.permute.xlu1 %4507  ;;  %8776 = vmatmul.mubr.msk.bf16.vlgmr.msra.gmra.mxu0 %vm2065_vm1, %v4750_v40 }
 0x5ef   : > { %8786 = vmatpush3.bf16.msra.mxu0 %v5472_v43  ;;  %8787 = vmatprep.mubr.msk.bf16.mxu0 %vm9315_vm0, %v9313_v6  ;;  %v4538_v4 = vcombine.low %v10397_v18, %v4508_v10  ;;  %v4539_v54 = vcombine.high %v10397_v18, %v4508_v10  ;;  %v4764_v18 = vshrl.u32 %v4741_v62, 16 }
 0x5f0   : > { %8797 = vmatprep.subr.bf16.mxu0 %v9313_v6 }
 0x5f1   : > { %v4546_v35 = vrot.slane %v4538_v4, %v9638_v3  ;;  %v4553_v50 = vrot.slane %v4539_v54, %v9638_v3  ;;  %v4765_v20 = vpack.i.b16 %v4764_v18, %v4763_v29 }
 0x5f2   : > { %v4511_v2 = vpop.permute.xlu1 %4510 }
 0x5f3   : > { %8782 = vmatmul.mubr.msk.bf16.vlgmr.msra.gmra.mxu1 %vm2065_vm1, %v4753_v1  ;;  %v4586_v46 = vcombine.low %v4530_v8, %v4546_v35  ;;  %v4587_v13 = vcombine.high %v4530_v8, %v4546_v35  ;;  %v4602_v36 = vcombine.low %v4537_v45, %v4553_v50  ;;  %v4603_v51 = vcombine.high %v4537_v45, %v4553_v50 }
 0x5f4   : > { %8792 = vmatpush3.bf16.msra.mxu1 %v5476_v7  ;;  %8793 = vmatprep.mubr.msk.bf16.mxu1 %vm9315_vm0, %v9313_v6 }
 0x5f5   : > { %8803 = vmatprep.subr.bf16.mxu1 %v9313_v6  ;;  %v4594_v23 = vrot.slane %v4586_v46, %v9646_v19  ;;  %v4601_v21 = vrot.slane %v4587_v13, %v9646_v19  ;;  %v4610_v55 = vrot.slane %v4602_v36, %v9646_v19  ;;  %v4617_v59 = vrot.slane %v4603_v51, %v9646_v19 }
 0x5f6   : > { %v4517_v17 = vpop.permute.xlu1 %4516  ;;  %8788 = vmatmul.mubr.msk.bf16.vlgmr.msra.gmra.mxu0 %vm2065_vm1, %v4756_v25 }
 0x5f7   : > { %v4554_v63 = vcombine.low %v4511_v2, %v4517_v17  ;;  %v4555_v11 = vcombine.high %v4511_v2, %v4517_v17  ;;  %8798 = vmatpush3.bf16.msra.mxu0 %v5480_v31  ;;  %8799 = vmatprep.mubr.msk.bf16.mxu0 %vm9315_vm0, %v9313_v6 }
 0x5f8   : > { %8809 = vmatprep.subr.bf16.mxu0 %v9313_v6 }
 0x5f9   : > { %v4562_v37 = vrot.slane %v4554_v63, %v9638_v3  ;;  %v4569_v38 = vrot.slane %v4555_v11, %v9638_v3 }
 0x5fb   : > { %v4618_v52 = vcombine.low %v4562_v37, %v4578_v34  ;;  %v4619_v42 = vcombine.high %v4562_v37, %v4578_v34  ;;  %v4634_v53 = vcombine.low %v4569_v38, %v4585_v22  ;;  %8794 = vmatmul.mubr.msk.bf16.vlgmr.msra.gmra.mxu1 %vm2065_vm1, %v4759_v39  ;;  %v4635_v32 = vcombine.high %v4569_v38, %v4585_v22 }
 0x5fc   : > { %8804 = vmatpush3.bf16.msra.mxu1 %v5484_v49  ;;  %8805 = vmatprep.mubr.msk.bf16.mxu1 %vm9315_vm0, %v9313_v6 }
 0x5fd   : > { %v4626_v15 = vrot.slane %v4618_v52, %v9646_v19  ;;  %v4633_v44 = vrot.slane %v4619_v42, %v9646_v19  ;;  %8815 = vmatprep.subr.bf16.mxu1 %v9313_v6  ;;  %v4642_v60 = vrot.slane %v4634_v53, %v9646_v19  ;;  %v4649_v33 = vrot.slane %v4635_v32, %v9646_v19 }
 0x5fe   : > { %8800 = vmatmul.mubr.msk.bf16.vlgmr.msra.gmra.mxu0 %vm2065_vm1, %v4762_v24 }
 0x5ff   : > { %v4651_v0 = vcombine.high %v4594_v23, %v4626_v15  ;;  %v4650_v12 = vcombine.low %v4594_v23, %v4626_v15  ;;  %8811 = vmatprep.mubr.msk.bf16.mxu0 %vm9315_vm0, %v9313_v6  ;;  %v4653_v10 = vcombine.high %v4601_v21, %v4633_v44  ;;  %v4652_v48 = vcombine.low %v4601_v21, %v4633_v44 }
 0x600   : > { %v4655_v56 = vcombine.high %v4610_v55, %v4642_v60  ;;  %v4654_v57 = vcombine.low %v4610_v55, %v4642_v60  ;;  %v4657_v5 = vcombine.high %v4617_v59, %v4649_v33  ;;  %v4656_v7 = vcombine.low %v4617_v59, %v4649_v33 }
 0x601   : > { %v5939_v40 = vpack.c.bf16 %v4651_v0, %v4651_v0  ;;  %v5938_v43 = vpack.c.bf16 %v4650_v12, %v4650_v12  ;;  %v5941_v16 = vpack.c.bf16 %v4653_v10, %v4653_v10  ;;  %v5940_v4 = vpack.c.bf16 %v4652_v48, %v4652_v48 }
 0x602   : > { %v5943_v2 = vpack.c.bf16 %v4655_v56, %v4655_v56  ;;  %v5942_v1 = vpack.c.bf16 %v4654_v57, %v4654_v57  ;;  %v5945_v25 = vpack.c.bf16 %v4657_v5, %v4657_v5  ;;  %v5944_v58 = vpack.c.bf16 %v4656_v7, %v4656_v7 }
 0x603   : > { %5962 = vxpose.xlu1.c.b16.start.end [1/1] (short) (narrow) %v5939_v40, 16  ;;  %5946 = vxpose.xlu0.c.b16.start.end [1/1] (short) (narrow) %v5938_v43, 16 }
 0x604   : > { %8806 = vmatmul.mubr.msk.bf16.vlgmr.msra.gmra.mxu1 %vm2065_vm1, %v4765_v20 }
 0x605   : > { %8817 = vmatprep.mubr.msk.bf16.mxu1 %vm9315_vm0, %v9313_v6 }
 0x607   : > { %5994 = vxpose.xlu1.c.b16.start.end [1/1] (short) (narrow) %v5941_v16, 16  ;;  %5978 = vxpose.xlu0.c.b16.start.end [1/1] (short) (narrow) %v5940_v4, 16 }
 0x60b   : > { %6026 = vxpose.xlu1.c.b16.start.end [1/1] (short) (narrow) %v5943_v2, 16  ;;  %6010 = vxpose.xlu0.c.b16.start.end [1/1] (short) (narrow) %v5942_v1, 16 }
 0x60f   : > { %6058 = vxpose.xlu1.c.b16.start.end [1/1] (short) (narrow) %v5945_v25, 16  ;;  %6042 = vxpose.xlu0.c.b16.start.end [1/1] (short) (narrow) %v5944_v58, 16 }
 0x641   : > { %v10455_v35 = vpop.f32.mrf.mxu0 }
 0x643   : > { %v8717_v31 = vpop.f32.mrf.mxu0 }
 0x645   : > { %v10457_v47 = vpop.f32.mrf.mxu0 }
 0x647   : > { %v8718_v8 = vpop.f32.mrf.mxu0 }
 0x649   : > { %v10459_v14 = vpop.f32.mrf.mxu0 }
 0x64b   : > { %v8729_v17 = vpop.f32.mrf.mxu0 }
 0x64d   : > { %v10461_v26 = vpop.f32.mrf.mxu0 }
 0x64f   : > { %v8730_v41 = vpop.f32.mrf.mxu0 }
 0x651   : > { %v10463_v54 = vpop.f32.mrf.mxu0 }
 0x653   : > { %v8741_v63 = vpop.f32.mrf.mxu0 }
 0x655   : > { %v10465_v11 = vpop.f32.mrf.mxu0 }
 0x657   : > { %v8742_v27 = vpop.f32.mrf.mxu0 }
 0x665   : > { %v5970_v30 = vpop.trf.xlu1  ;;  %v5954_v9 = vpop.trf.xlu0 }
 0x666   : > { %v10467_v62 = vpop.f32.mrf.mxu1  ;;  %v6079_v38 = vshrl.u32 %v5970_v30, 16  ;;  %v6078_v22 = vshrl.u32 %v5954_v9, 16  ;;  %v6076_v49 = vpack.i.b16 %v5970_v30, %v5954_v9 }
 0x668   : > { %v8723_v34 = vpop.f32.mrf.mxu1  ;;  %v6080_v45 = vpack.i.b16 %v6079_v38, %v6078_v22 }
 0x669   : > { %v6002_v46 = vpop.trf.xlu1  ;;  %v5986_v37 = vpop.trf.xlu0 }
 0x66a   : > { %v10469_v39 = vpop.f32.mrf.mxu1  ;;  %v6087_v15 = vshrl.u32 %v6002_v46, 16  ;;  %v6086_v44 = vshrl.u32 %v5986_v37, 16  ;;  %v6084_v12 = vpack.i.b16 %v6002_v46, %v5986_v37 }
 0x66c   : > { %v8724_v50 = vpop.f32.mrf.mxu1  ;;  %v6088_v10 = vpack.i.b16 %v6087_v15, %v6086_v44 }
 0x66d   : > { %v6034_v13 = vpop.trf.xlu1  ;;  %v6018_v42 = vpop.trf.xlu0 }
 0x66e   : > { %v6095_v52 = vshrl.u32 %v6034_v13, 16  ;;  %v6092_v53 = vpack.i.b16 %v6034_v13, %v6018_v42  ;;  %v6094_v24 = vshrl.u32 %v6018_v42, 16  ;;  %v10471_v23 = vpop.f32.mrf.mxu1 }
 0x670   : > { %v6096_v29 = vpack.i.b16 %v6095_v52, %v6094_v24  ;;  %v6106_v18 = vcombine.low %v6076_v49, %v6092_v53  ;;  %v8735_v36 = vpop.f32.mrf.mxu1  ;;  %v6107_v21 = vcombine.high %v6076_v49, %v6092_v53 }
 0x671   : > { %v6066_v0 = vpop.trf.xlu1  ;;  %v6050_v60 = vpop.trf.xlu0 }
 0x672   : > { %v6103_v32 = vshrl.u32 %v6066_v0, 16  ;;  %v6174_v40 = vcombine.low %v6080_v45, %v6096_v29  ;;  %v10473_v43 = vpop.f32.mrf.mxu1  ;;  %v6100_v48 = vpack.i.b16 %v6066_v0, %v6050_v60  ;;  %v6102_v20 = vshrl.u32 %v6050_v60, 16 }
 0x673   : > { %v6114_v51 = vrot.slane %v6106_v18, %v9638_v3  ;;  %v6175_v55 = vcombine.high %v6080_v45, %v6096_v29  ;;  %v10477_v16 = vrot.slane %v6107_v21, %v9638_v3 }
 0x674   : > { %v8736_v33 = vpop.f32.mrf.mxu1  ;;  %v6104_v4 = vpack.i.b16 %v6103_v32, %v6102_v20  ;;  %v6122_v56 = vcombine.low %v6084_v12, %v6100_v48  ;;  %v6123_v57 = vcombine.high %v6084_v12, %v6100_v48  ;;  %v6182_v59 = vrot.slane %v6174_v40, %v9638_v3  ;;  %v9168_v32 = vld [vmem:[%s11010_s2] sm:$0x3] }
 0x675   : > { %v10487_v58 = vrot.slane %v6175_v55, %v9638_v3  ;;  %v5832_v12 = vsub.s32 1, %v9635_v61  ;;  %v9169_v48 = vld [vmem:[%s11009_s1] sm:$0xff] }
 0x676   : > { %v10480_v2 = vpop.f32.mrf.mxu1  ;;  %v6130_v1 = vrot.slane %v6122_v56, %v9638_v3  ;;  %v10484_v5 = vrot.slane %v6123_v57, %v9638_v3  ;;  %v6190_v7 = vcombine.low %v6088_v10, %v6104_v4  ;;  %v6191_v25 = vcombine.high %v6088_v10, %v6104_v4 }
 0x677   : > { %v10526_v60 = vrot.slane %v9168_v32, %v5832_v12 }
 0x678   : > { %v8747_v31 = vpop.f32.mrf.mxu1  ;;  %v6155_v8 = vcombine.high %v10477_v16, %v10484_v5  ;;  %v6198_v17 = vrot.slane %v6190_v7, %v9638_v3  ;;  %v10493_v41 = vrot.slane %v6191_v25, %v9638_v3  ;;  %v6138_v63 = vcombine.low %v6114_v51, %v6130_v1 }
 0x679   : > { %v6139_v22 = vcombine.high %v6114_v51, %v6130_v1  ;;  %v6154_v15 = vcombine.low %v10477_v16, %v10484_v5  ;;  %v9170_v1 = vld [vmem:[%s11009_s1 + $0x8] sm:$0xff] }
 0x67a   : > { %v10495_v27 = vpop.f32.mrf.mxu1  ;;  %v6146_v30 = vrot.slane %v6138_v63, %v9646_v19  ;;  %v6206_v9 = vcombine.low %v6182_v59, %v6198_v17  ;;  %v6223_v46 = vcombine.high %v10487_v58, %v10493_v41  ;;  %v6207_v50 = vcombine.high %v6182_v59, %v6198_v17  ;;  %v9171_v63 = vld [vmem:[%s11009_s1 + $0x10] sm:$0xff] }
 0x67b   : > { %v6153_v13 = vrot.slane %v6139_v22, %v9646_v19  ;;  %v6222_v29 = vcombine.low %v10487_v58, %v10493_v41  ;;  %v10516_v18 = vrot.slane %v6154_v15, %v9646_v19 }
 0x67c   : > { %v8748_v34 = vpop.f32.mrf.mxu1  ;;  %6242 = vxpose.xlu0.c.b16.start.end [1/1] (short) (narrow) %v6146_v30, 16  ;;  %v6214_v37 = vrot.slane %v6206_v9, %v9646_v19  ;;  %v6170_v38 = vcombine.high %v6146_v30, %v9314_v28  ;;  %v6221_v52 = vrot.slane %v6207_v50, %v9646_v19 }
 0x67d   : > { %v6171_v45 = vcombine.high %v6153_v13, %v9314_v28  ;;  %v6230_v0 = vrot.slane %v6222_v29, %v9646_v19 }
 0x67e   : > { %6258 = vxpose.xlu1.c.b16.start.end [1/1] (short) (narrow) %v6214_v37, 16  ;;  %v6238_v49 = vcombine.high %v6214_v37, %v9314_v28  ;;  %v6239_v24 = vcombine.high %v6221_v52, %v9314_v28 }
 0x680   : > { %6274 = vxpose.xlu0.c.b16.start.end [1/1] (short) (narrow) %v6170_v38, 16 }
 0x682   : > { %6290 = vxpose.xlu1.c.b16.start.end [1/1] (short) (narrow) %v6238_v49, 16 }
 0x684   : > { %6306 = vxpose.xlu0.c.b16.start.end [1/1] (short) (narrow) %v6153_v13, 16 }
 0x686   : > { %v10505_v42 = vpop.f32.mrf.mxu0  ;;  %6322 = vxpose.xlu1.c.b16.start.end [1/1] (short) (narrow) %v6221_v52, 16 }
 0x688   : > { %v8753_v53 = vpop.f32.mrf.mxu0  ;;  %6338 = vxpose.xlu0.c.b16.start.end [1/1] (short) (narrow) %v6171_v45, 16  ;;  %v9172_v45 = vld [vmem:[%s11009_s1 + $0x18] sm:$0xff] }
 0x68a   : > { %v10511_v44 = vpop.f32.mrf.mxu0  ;;  %6354 = vxpose.xlu1.c.b16.start.end [1/1] (short) (narrow) %v6239_v24, 16 }
 0x68c   : > { %v8754_v36 = vpop.f32.mrf.mxu0  ;;  %6370 = vxpose.xlu0.c.b16.start.end [1/1] (short) (narrow) %v10516_v18, 16 }
 0x68e   : > { %6386 = vxpose.xlu1.c.b16.start.end [1/1] (short) (narrow) %v6230_v0, 16 }
 0x6a3   : > { %v10521_v21 = vpop.f32.mrf.mxu1 }
 0x6a5   : > { %v8759_v40 = vpop.f32.mrf.mxu1 }
 0x6a6   : > { %v5523_v10 = vpop.f32.mrf.mxu0 }
 0x6a7   : > { %v5524_v20 = vadd.f32 %v9169_v48, %v5523_v10  ;;  %v10531_v51 = vpop.f32.mrf.mxu1 }
 0x6a8   : > { %v8765_v55 = vpop.f32.mrf.mxu0 }
 0x6a9   : > { %v10534_v61 = vadd.f32 %v10526_v60, %v5524_v20  ;;  %v8760_v33 = vpop.f32.mrf.mxu1 }
 0x6aa   : > { %v5526_v4 = vpop.f32.mrf.mxu0 }
 0x6ab   : > { %v5842_v56 = vsel %vm2422_vm2, %v10534_v61, -inf  ;;  %v5566_v57 = vpop.f32.mrf.mxu1 }
 0x6ac   : > { %5843 = vmax.xlane.f32.xlu1 %v5842_v56  ;;  %v8766_v59 = vpop.f32.mrf.mxu0  ;;  %v5567_v7 = vadd.f32 %v9170_v1, %v5566_v57 }
 0x6ad   : > { %v8771_v25 = vpop.f32.mrf.mxu1 }
 0x6ae   : > { %v5609_v31 = vpop.f32.mrf.mxu0  ;;  %v10542_v17 = vadd.f32 %v10526_v60, %v5567_v7 }
 0x6af   : > { %v5610_v30 = vadd.f32 %v9171_v63, %v5609_v31  ;;  %v5569_v9 = vpop.f32.mrf.mxu1 }
 0x6b0   : > { %v8777_v34 = vpop.f32.mrf.mxu0  ;;  %v5845_v38 = vsel %vm2422_vm2, %v10542_v17, -inf }
 0x6b1   : > { %v10548_v37 = vadd.f32 %v10526_v60, %v5610_v30  ;;  %v8772_v22 = vpop.f32.mrf.mxu1  ;;  %5846 = vmax.xlane.f32.xlu0 %v5845_v38  ;;  %v6240_v30 = vcombine.high %v6230_v0, %v9314_v28  ;;  %v9174_v0 = vld [vmem:[%s11009_s1 + $0x38] sm:$0xff] }
 0x6b2   : > { %v5612_v49 = vpop.f32.mrf.mxu0  ;;  %v6172_v22 = vcombine.high %v10516_v18, %v9314_v28  ;;  %v9175_v18 = vld [vmem:[%s11009_s1 + $0x28] sm:$0xff] }
 0x6b3   : > { %v5848_v50 = vsel %vm2422_vm2, %v10548_v37, -inf  ;;  %v5652_v13 = vpop.f32.mrf.mxu1  ;;  %v9173_v49 = vld [vmem:[%s11009_s1 + $0x20] sm:$0xff] }
 0x6b4   : > { %5849 = vmax.xlane.f32.xlu1 %v5848_v50  ;;  %v8778_v52 = vpop.f32.mrf.mxu0  ;;  %v5653_v53 = vadd.f32 %v9172_v45, %v5652_v13 }
 0x6b5   : > { %v8783_v24 = vpop.f32.mrf.mxu1 }
 0x6b6   : > { %v5695_v15 = vpop.f32.mrf.mxu0  ;;  %v10558_v29 = vadd.f32 %v10526_v60, %v5653_v53 }
 0x6b7   : > { %v5655_v36 = vpop.f32.mrf.mxu1  ;;  %v5696_v50 = vadd.f32 %v9173_v49, %v5695_v15  ;;  %v10618_v49 = vrot.slane %v6223_v46, %v9646_v19 }
 0x6b8   : > { %v8789_v12 = vpop.f32.mrf.mxu0  ;;  %v5851_v32 = vsel %vm2422_vm2, %v10558_v29, -inf }
 0x6b9   : > { %v8784_v40 = vpop.f32.mrf.mxu1  ;;  %5852 = vmax.xlane.f32.xlu0 %v5851_v32  ;;  %v10569_v45 = vadd.f32 %v10526_v60, %v5696_v50 }
 0x6ba   : > { %v5698_v10 = vpop.f32.mrf.mxu0 }
 0x6bb   : > { %v5738_v48 = vpop.f32.mrf.mxu1  ;;  %v5854_v10 = vsel %vm2422_vm2, %v10569_v45, -inf }
 0x6bc   : > { %v8790_v20 = vpop.f32.mrf.mxu0  ;;  %v5739_v36 = vadd.f32 %v9175_v18, %v5738_v48  ;;  %v9176_v48 = vld [vmem:[%s11009_s1 + $0x30] sm:$0xff] }
 0x6bd   : > { %v8795_v55 = vpop.f32.mrf.mxu1 }
 0x6be   : > { %v5781_v33 = vpop.f32.mrf.mxu0 }
 0x6bf   : > { %v5741_v4 = vpop.f32.mrf.mxu1 }
 0x6c0   : > { %v8801_v56 = vpop.f32.mrf.mxu0  ;;  %v10586_v4 = vadd.f32 %v10526_v60, %v5739_v36 }
 0x6c1   : > { %v8796_v57 = vpop.f32.mrf.mxu1 }
 0x6c2   : > { %v5784_v59 = vpop.f32.mrf.mxu0  ;;  %v5782_v57 = vadd.f32 %v9176_v48, %v5781_v33 }
 0x6c4   : > { %v5824_v1 = vpop.f32.mrf.mxu1  ;;  %v8802_v7 = vpop.f32.mrf.mxu0  ;;  %v5840_v33 = vadd.f32 %v10526_v60, %v5782_v57 }
 0x6c5   : > { %v5825_v53 = vadd.f32 %v9174_v0, %v5824_v1 }
 0x6c6   : > { %v8807_v25 = vpop.f32.mrf.mxu1 }
 0x6c7   : > { %v10578_v40 = vadd.f32 %v10526_v60, %v5825_v53  ;;  %v10625_v60 = vrot.slane %v6155_v8, %v9646_v19 }
 0x6c8   : > { %v5827_v31 = vpop.f32.mrf.mxu1 }
 0x6c9   : > { %v5863_v25 = vsel %vm2422_vm2, %v10578_v40, -inf }
 0x6ca   : > { %v8808_v63 = vpop.f32.mrf.mxu1 }
 0x6de   : > { %v6250_v9 = vpop.trf.xlu0 }
 0x6e0   : > { %v6266_v34 = vpop.trf.xlu1 }
 0x6e1   : > { %6418 = vxpose.xlu1.c.b16.start.end [1/1] (short) (narrow) %v6240_v30, 16 }
 0x6e2   : > { %v6282_v38 = vpop.trf.xlu0 }
 0x6e4   : > { %v6298_v13 = vpop.trf.xlu1 }
 0x6e6   : > { %6402 = vxpose.xlu0.c.b16.start.end [1/1] (short) (narrow) %v6172_v22, 16  ;;  %v6314_v52 = vpop.trf.xlu0  ;;  %v5860_v22 = vsel %vm2422_vm2, %v5840_v33, -inf }
 0x6e7   : > { %v6498_v24 = vcombine.low %v6250_v9, %v6314_v52  ;;  %v5857_v9 = vsel %vm2422_vm2, %v10586_v4, -inf }
 0x6e8   : > { %v6330_v12 = vpop.trf.xlu1 }
 0x6e9   : > { %v6566_v32 = vcombine.low %v6266_v34, %v6330_v12  ;;  %v10583_v20 = vrot.slane %v6498_v24, %v9638_v3 }
 0x6ea   : > { %v6346_v15 = vpop.trf.xlu0 }
 0x6eb   : > { %v6506_v55 = vcombine.low %v6282_v38, %v6346_v15  ;;  %v10592_v59 = vrot.slane %v6566_v32, %v9638_v3 }
 0x6ec   : > { %v6362_v56 = vpop.trf.xlu1 }
 0x6ed   : > { %v6574_v1 = vcombine.low %v6298_v13, %v6362_v56  ;;  %v10595_v7 = vrot.slane %v6506_v55, %v9638_v3 }
 0x6ee   : > { %5855 = vmax.xlane.f32.xlu1 %v5854_v10  ;;  %v10630_v52 = vpop.trf.xlu0 }
 0x6ef   : > { %v10600_v31 = vrot.slane %v6574_v1, %v9638_v3  ;;  %v6530_v63 = vcombine.low %v10583_v20, %v10595_v7  ;;  %v6531_v30 = vcombine.high %v10583_v20, %v10595_v7 }
 0x6f0   : > { %v10628_v50 = vpop.trf.xlu1 }
 0x6f1   : > { %v6598_v34 = vcombine.low %v10592_v59, %v10600_v31  ;;  %v6599_v38 = vcombine.high %v10592_v59, %v10600_v31  ;;  %v6545_v59 = vrot.slane %v6531_v30, %v9646_v19 }
 0x6f2   : > { %5864 = vmax.xlane.f32.xlu1 %v5863_v25 }
 0x6f3   : > { %5858 = vmax.xlane.f32.xlu0 %v5857_v9 }
 0x6f7   : > { %5861 = vmax.xlane.f32.xlu0 %v5860_v22 }
 0x71f   : > { %6450 = vxpose.xlu1.c.b16.start.end [1/1] (short) (narrow) %v10618_v49, 16 }
 0x724   : > { %6434 = vxpose.xlu0.c.b16.start.end [1/1] (short) (narrow) %v10625_v60, 16 }
 0x735   : > { %v5844_v13 = vpop.xlane.xlu1 %5843 }
 0x736   : > { %v5866_v0 = vsub.f32 %v10534_v61, %v5844_v13 }
 0x738   : > { %v5874_v58 = vmul.f32 1.442695, %v5866_v0 }
 0x73a   : > { %9124 = vpow2.f32 %v5874_v58  ;;  %v5847_v41 = vpop.xlane.xlu0 %5846 }
 0x73b   : > { %v5867_v46 = vsub.f32 %v10542_v17, %v5847_v41 }
 0x73d   : > { %v5850_v53 = vpop.xlane.xlu1 %5849  ;;  %v5876_v24 = vmul.f32 1.442695, %v5867_v46 }
 0x73e   : > { %v5868_v16 = vsub.f32 %v10548_v37, %v5850_v53 }
 0x73f   : > { %9126 = vpow2.f32 %v5876_v24 }
 0x740   : > { %v5878_v5 = vmul.f32 1.442695, %v5868_v16 }
 0x742   : > { %9128 = vpow2.f32 %v5878_v5  ;;  %v5853_v8 = vpop.xlane.xlu0 %5852 }
 0x743   : > { %v5869_v18 = vsub.f32 %v10558_v29, %v5853_v8  ;;  %v10652_v55 = vpop.trf.xlu1 }
 0x745   : > { %v5880_v36 = vmul.f32 1.442695, %v5869_v18  ;;  %v6241_v18 = vcombine.high %v10618_v49, %v9314_v28 }
 0x747   : > { %v10636_v12 = vpop.eup %9124  ;;  %9130 = vpow2.f32 %v5880_v36  ;;  %v6173_v36 = vcombine.high %v10625_v60, %v9314_v28 }
 0x748   : > { %v5890_v61 = vsel %vm2422_vm2, %v10636_v12, 0.0  ;;  %v10654_v48 = vpop.trf.xlu0 }
 0x749   : > { %5891 = vadd.xlane.f32.xlu0 %v5890_v61 }
 0x74c   : > { %v10640_v32 = vpop.eup %9126 }
 0x74d   : > { %v5893_v17 = vsel %vm2422_vm2, %v10640_v32, 0.0 }
 0x74e   : > { %5894 = vadd.xlane.f32.xlu1 %v5893_v17 }
 0x74f   : > { %v10644_v37 = vpop.eup %9128 }
 0x750   : > { %v5896_v15 = vsel %vm2422_vm2, %v10644_v37, 0.0 }
 0x751   : > { %5897 = vadd.xlane.f32.xlu0 %v5896_v15 }
 0x754   : > { %v10648_v29 = vpop.eup %9130 }
 0x755   : > { %v5899_v10 = vsel %vm2422_vm2, %v10648_v29, 0.0 }
 0x756   : > { %5900 = vadd.xlane.f32.xlu1 %v5899_v10 }
 0x777   : > { %v5856_v56 = vpop.xlane.xlu1 %5855 }
 0x778   : > { %v5870_v57 = vsub.f32 %v10569_v45, %v5856_v56 }
 0x77a   : > { %v5882_v1 = vmul.f32 1.442695, %v5870_v57 }
 0x77b   : > { %v5865_v25 = vpop.xlane.xlu1 %5864 }
 0x77c   : > { %9132 = vpow2.f32 %v5882_v1  ;;  %v5873_v9 = vsub.f32 %v10578_v40, %v5865_v25  ;;  %v5859_v22 = vpop.xlane.xlu0 %5858 }
 0x77d   : > { %v5871_v13 = vsub.f32 %v10586_v4, %v5859_v22 }
 0x77e   : > { %v5888_v0 = vmul.f32 1.442695, %v5873_v9 }
 0x77f   : > { %v5884_v58 = vmul.f32 1.442695, %v5871_v13 }
 0x780   : > { %v5862_v41 = vpop.xlane.xlu0 %5861 }
 0x781   : > { %9134 = vpow2.f32 %v5884_v58  ;;  %v5872_v46 = vsub.f32 %v5840_v33, %v5862_v41  ;;  %v6458_v49 = vpop.trf.xlu1 }
 0x782   : > { %9136 = vpow2.f32 %v5888_v0  ;;  %v6582_v60 = vcombine.low %v10628_v50, %v6458_v49 }
 0x783   : > { %v5886_v53 = vmul.f32 1.442695, %v5872_v46 }
 0x784   : > { %v6589_v1 = vrot.slane %v6582_v60, %v9638_v3 }
 0x785   : > { %9138 = vpow2.f32 %v5886_v53 }
 0x786   : > { %v6442_v61 = vpop.trf.xlu0 }
 0x789   : > { %v10659_v24 = vpop.eup %9132 }
 0x78a   : > { %v5902_v45 = vsel %vm2422_vm2, %v10659_v24, 0.0 }
 0x78b   : > { %5903 = vadd.xlane.f32.xlu0 %v5902_v45 }
 0x78e   : > { %v10663_v16 = vpop.eup %9134 }
 0x78f   : > { %v5905_v40 = vsel %vm2422_vm2, %v10663_v16, 0.0  ;;  %v10667_v4 = vpop.eup %9136 }
 0x790   : > { %5906 = vadd.xlane.f32.xlu1 %v5905_v40  ;;  %v5911_v33 = vsel %vm2422_vm2, %v10667_v4, 0.0 }
 0x792   : > { %v10669_v5 = vpop.eup %9138 }
 0x793   : > { %v5908_v8 = vsel %vm2422_vm2, %v10669_v5, 0.0 }
 0x794   : > { %5912 = vadd.xlane.f32.xlu1 %v5911_v33  ;;  %5909 = vadd.xlane.f32.xlu0 %v5908_v8 }
 0x7c1   : > { %6482 = vxpose.xlu1.c.b16.start.end [1/1] (short) (narrow) %v6241_v18, 16  ;;  %6466 = vxpose.xlu0.c.b16.start.end [1/1] (short) (narrow) %v6173_v36, 16 }
 0x7c5   : > { %3615 = vxpose.xlu0.b32.start [1/2] (short) (narrow) %v10455_v35, 8 }
 0x7c9   : > { %3616 = vxpose.xlu0.b32.end [2/2] (short) (narrow) %v10457_v47, 8 }
 0x7cb   : > { %3647 = vxpose.xlu1.b32.start [1/2] (short) (narrow) %v10467_v62, 8 }
 0x7cd   : > { %3679 = vxpose.xlu0.b32.start [1/2] (short) (narrow) %v10459_v14, 8 }
 0x7cf   : > { %3648 = vxpose.xlu1.b32.end [2/2] (short) (narrow) %v10469_v39, 8 }
 0x7d1   : > { %3680 = vxpose.xlu0.b32.end [2/2] (short) (narrow) %v10461_v26, 8 }
 0x7d2   : > { %v5892_v17 = vpop.xlane.xlu0 %5891 }
 0x7d3   : > { %9140 = vrcp.f32 %v5892_v17  ;;  %3743 = vxpose.xlu1.b32.start [1/2] (short) (narrow) %v10463_v54, 8 }
 0x7d5   : > { %3711 = vxpose.xlu0.b32.start [1/2] (short) (narrow) %v10471_v23, 8 }
 0x7d7   : > { %3744 = vxpose.xlu1.b32.end [2/2] (short) (narrow) %v10465_v11, 8  ;;  %v5895_v35 = vpop.xlane.xlu1 %5894 }
 0x7d8   : > { %9142 = vrcp.f32 %v5895_v35 }
 0x7d9   : > { %3712 = vxpose.xlu0.b32.end [2/2] (short) (narrow) %v10473_v43, 8 }
 0x7da   : > { %v5898_v43 = vpop.xlane.xlu0 %5897 }
 0x7db   : > { %3807 = vxpose.xlu1.b32.start [1/2] (short) (narrow) %v10505_v42, 8  ;;  %9144 = vrcp.f32 %v5898_v43 }
 0x7dd   : > { %3775 = vxpose.xlu0.b32.start [1/2] (short) (narrow) %v10480_v2, 8 }
 0x7df   : > { %3808 = vxpose.xlu1.b32.end [2/2] (short) (narrow) %v10511_v44, 8  ;;  %v5901_v2 = vpop.xlane.xlu1 %5900 }
 0x7e0   : > { %v9141_v47 = vpop.eup %9140  ;;  %9146 = vrcp.f32 %v5901_v2 }
 0x7e1   : > { %v5922_v14 = vmul.f32 %v9141_v47, %v10636_v12  ;;  %3776 = vxpose.xlu0.b32.end [2/2] (short) (narrow) %v10495_v27, 8  ;;  %v6514_v12 = vcombine.low %v10630_v52, %v6442_v61 }
 0x7e3   : > { %v5930_v26 = vpack.c.bf16 %v5922_v14, %v5922_v14  ;;  %v6521_v25 = vrot.slane %v6514_v12, %v9638_v3 }
 0x7e5   : > { %v6662_v54 = vsel %vm2422_vm2, %v5930_v26, 0  ;;  %v9143_v62 = vpop.eup %9142  ;;  %3839 = vxpose.xlu0.b32.start [1/2] (short) (narrow) %v10521_v21, 8 }
 0x7e6   : > { %8810 = vmatpush3.bf16.xpose.msra.mxu0 %v6662_v54  ;;  %v5923_v11 = vmul.f32 %v9143_v62, %v10640_v32 }
 0x7e7   : > { %8821 = vmatprep.subr.bf16.mxu0 %v9313_v6 }
 0x7e8   : > { %v5931_v39 = vpack.c.bf16 %v5923_v11, %v5923_v11  ;;  %v9145_v32 = vpop.eup %9144 }
 0x7e9   : > { %3840 = vxpose.xlu0.b32.end [2/2] (short) (narrow) %v10531_v51, 8  ;;  %v5924_v50 = vmul.f32 %v9145_v32, %v10644_v37  ;;  %v6538_v37 = vrot.slane %v6530_v63, %v9646_v19 }
 0x7ea   : > { %v6709_v23 = vsel %vm2422_vm2, %v5931_v39, 0 }
 0x7eb   : > { %8816 = vmatpush3.bf16.xpose.msra.mxu1 %v6709_v23  ;;  %v5932_v31 = vpack.c.bf16 %v5924_v50, %v5924_v50 }
 0x7ec   : > { %8827 = vmatprep.subr.bf16.mxu1 %v9313_v6 }
 0x7ed   : > { %v9147_v10 = vpop.eup %9146  ;;  %v6756_v43 = vsel %vm2422_vm2, %v5932_v31, 0 }
 0x7ee   : > { %v5925_v52 = vmul.f32 %v9147_v10, %v10648_v29 }
 0x814   : > { %v5904_v42 = vpop.xlane.xlu0 %5903 }
 0x815   : > { %9148 = vrcp.f32 %v5904_v42 }
 0x819   : > { %v5907_v27 = vpop.xlane.xlu1 %5906 }
 0x81a   : > { %9150 = vrcp.f32 %v5907_v27 }
 0x81d   : > { %v5913_v44 = vpop.xlane.xlu1 %5912  ;;  %v5910_v21 = vpop.xlane.xlu0 %5909 }
 0x81e   : > { %9152 = vrcp.f32 %v5910_v21 }
 0x81f   : > { %9154 = vrcp.f32 %v5913_v44 }
 0x822   : > { %v9149_v17 = vpop.eup %9148 }
 0x823   : > { %v6490_v51 = vpop.trf.xlu1  ;;  %v6474_v15 = vpop.trf.xlu0  ;;  %v5926_v27 = vmul.f32 %v9149_v17, %v10659_v24 }
 0x824   : > { %v6590_v56 = vcombine.low %v10652_v55, %v6490_v51  ;;  %v6522_v57 = vcombine.low %v10654_v48, %v6474_v15  ;;  %v6606_v55 = vrot.slane %v6598_v34, %v9646_v19  ;;  %v6613_v48 = vrot.slane %v6599_v38, %v9646_v19 }
 0x825   : > { %v5933_v34 = vpack.c.bf16 %v5925_v52, %v5925_v52  ;;  %v5934_v24 = vpack.c.bf16 %v5926_v27, %v5926_v27 }
 0x826   : > { %v6597_v9 = vrot.slane %v6590_v56, %v9638_v3  ;;  %v6529_v22 = vrot.slane %v6522_v57, %v9638_v3 }
 0x827   : > { %v9151_v54 = vpop.eup %9150  ;;  %v6803_v60 = vsel %vm2422_vm2, %v5933_v34, 0  ;;  %v6850_v10 = vsel %vm2422_vm2, %v5934_v24, 0 }
 0x828   : > { %v6614_v13 = vcombine.low %v6589_v1, %v6597_v9  ;;  %v6615_v0 = vcombine.high %v6589_v1, %v6597_v9  ;;  %v6546_v58 = vcombine.low %v6521_v25, %v6529_v22  ;;  %v6547_v41 = vcombine.high %v6521_v25, %v6529_v22 }
 0x829   : > { %v5927_v12 = vmul.f32 %v9151_v54, %v10663_v16 }
 0x82a   : > { %v6622_v29 = vrot.slane %v6614_v13, %v9646_v19  ;;  %v6629_v46 = vrot.slane %v6615_v0, %v9646_v19  ;;  %v6554_v53 = vrot.slane %v6546_v58, %v9646_v19  ;;  %v6561_v45 = vrot.slane %v6547_v41, %v9646_v19 }
 0x82b   : > { %v9153_v32 = vpop.eup %9152  ;;  %v5935_v51 = vpack.c.bf16 %v5927_v12, %v5927_v12 }
 0x82c   : > { %v6630_v38 = vcombine.low %v6606_v55, %v6622_v29  ;;  %v6631_v40 = vcombine.high %v6606_v55, %v6622_v29  ;;  %v6632_v63 = vcombine.low %v6613_v48, %v6629_v46  ;;  %v10731_v33 = vcombine.high %v6613_v48, %v6629_v46  ;;  %v9155_v15 = vpop.eup %9154 }
 0x82d   : > { %v6562_v8 = vcombine.low %v6538_v37, %v6554_v53  ;;  %v6563_v18 = vcombine.high %v6538_v37, %v6554_v53  ;;  %v6564_v36 = vcombine.low %v6545_v59, %v6561_v45  ;;  %v6565_v61 = vcombine.high %v6545_v59, %v6561_v45 }
 0x82e   : > { %v6638_v49 = vshrl.u32 %v6630_v38, 16  ;;  %v6644_v35 = vshrl.u32 %v6631_v40, 16  ;;  %v6650_v47 = vshrl.u32 %v6632_v63, 16  ;;  %v6656_v14 = vshrl.u32 %v10731_v33, 16 }
 0x82f   : > { %v6636_v20 = vpack.i.b16 %v6630_v38, %v6562_v8  ;;  %v6637_v7 = vshrl.u32 %v6562_v8, 16  ;;  %v6642_v30 = vpack.i.b16 %v6631_v40, %v6563_v18  ;;  %v6643_v26 = vshrl.u32 %v6563_v18, 16 }
 0x830   : > { %v6648_v62 = vpack.i.b16 %v6632_v63, %v6564_v36  ;;  %v6649_v11 = vshrl.u32 %v6564_v36, 16  ;;  %v6654_v39 = vpack.i.b16 %v10731_v33, %v6565_v61  ;;  %v6655_v23 = vshrl.u32 %v6565_v61, 16 }
 0x831   : > { %8812 = vmatmul.mubr.msk.bf16.vlgmr.msra.gmra.mxu0 %vm2422_vm2, %v6636_v20  ;;  %v6639_v2 = vpack.i.b16 %v6638_v49, %v6637_v7  ;;  %v6645_v42 = vpack.i.b16 %v6644_v35, %v6643_v26  ;;  %v5928_v56 = vmul.f32 %v9153_v32, %v10669_v5  ;;  %v6897_v16 = vsel %vm2422_vm2, %v5935_v51, 0 }
 0x832   : > { %8822 = vmatpush3.bf16.xpose.msra.mxu0 %v6756_v43  ;;  %8823 = vmatprep.mubr.msk.bf16.mxu0 %vm9315_vm0, %v9313_v6  ;;  %v6651_v44 = vpack.i.b16 %v6650_v47, %v6649_v11  ;;  %v6657_v21 = vpack.i.b16 %v6656_v14, %v6655_v23  ;;  %v5929_v57 = vmul.f32 %v9155_v15, %v10667_v4 }
 0x833   : > { %8818 = vmatmul.mubr.msk.bf16.vlgmr.msra.gmra.mxu1 %vm2422_vm2, %v6639_v2  ;;  %8833 = vmatprep.subr.bf16.mxu0 %v9313_v6  ;;  %v5936_v1 = vpack.c.bf16 %v5928_v56, %v5928_v56 }
 0x834   : > { %8828 = vmatpush3.bf16.xpose.msra.mxu1 %v6803_v60  ;;  %8829 = vmatprep.mubr.msk.bf16.mxu1 %vm9315_vm0, %v9313_v6  ;;  %v5937_v5 = vpack.c.bf16 %v5929_v57, %v5929_v57 }
 0x835   : > { %8839 = vmatprep.subr.bf16.mxu1 %v9313_v6  ;;  %v6944_v25 = vsel %vm2422_vm2, %v5936_v1, 0 }
 0x836   : > { %v6991_v4 = vsel %vm2422_vm2, %v5937_v5, 0 }
 0x839   : > { %8824 = vmatmul.mubr.msk.bf16.vlgmr.msra.gmra.mxu0 %vm2422_vm2, %v6642_v30 }
 0x83a   : > { %8834 = vmatpush3.bf16.xpose.msra.mxu0 %v6850_v10  ;;  %8835 = vmatprep.mubr.msk.bf16.mxu0 %vm9315_vm0, %v9313_v6 }
 0x83b   : > { %8830 = vmatmul.mubr.msk.bf16.vlgmr.msra.gmra.mxu1 %vm2422_vm2, %v6645_v42  ;;  %8845 = vmatprep.subr.bf16.mxu0 %v9313_v6 }
 0x83c   : > { %8840 = vmatpush3.bf16.xpose.msra.mxu1 %v6897_v16  ;;  %8841 = vmatprep.mubr.msk.bf16.mxu1 %vm9315_vm0, %v9313_v6 }
 0x83d   : > { %8851 = vmatprep.subr.bf16.mxu1 %v9313_v6 }
 0x841   : > { %8836 = vmatmul.mubr.msk.bf16.vlgmr.msra.gmra.mxu0 %vm2422_vm2, %v6648_v62  ;;  %v3631_v9 = vpop.trf.xlu0 }
 0x842   : > { %8846 = vmatpush3.bf16.xpose.msra.mxu0 %v6944_v25  ;;  %8847 = vmatprep.mubr.msk.bf16.mxu0 %vm9315_vm0, %v9313_v6 }
 0x843   : > { %8842 = vmatmul.mubr.msk.bf16.vlgmr.msra.gmra.mxu1 %vm2422_vm2, %v6651_v44  ;;  %8857 = vmatprep.subr.bf16.mxu0 %v9313_v6 }
 0x844   : > { %8852 = vmatpush3.bf16.xpose.msra.mxu1 %v6991_v4  ;;  %8853 = vmatprep.mubr.msk.bf16.mxu1 %vm9315_vm0, %v9313_v6 }
 0x847   : > { %v3663_v50 = vpop.trf.xlu1 }
 0x849   : > { %8848 = vmatmul.mubr.msk.bf16.vlgmr.msra.gmra.mxu0 %vm2422_vm2, %v6654_v39  ;;  %v3695_v22 = vpop.trf.xlu0 }
 0x84a   : > { %8873 = vmatprep.mubr.msk.bf16.mxu0 %vm9315_vm0, %v9313_v6  ;;  %v3871_v13 = vcombine.low %v3631_v9, %v3695_v22  ;;  %v3872_v0 = vcombine.high %v3631_v9, %v3695_v22 }
 0x84b   : > { %8854 = vmatmul.mubr.msk.bf16.vlgmr.msra.gmra.mxu1 %vm2422_vm2, %v6657_v21 }
 0x84c   : > { %7953 = vmatprep.mubr.bf16.mxu1 %v9314_v28  ;;  %v3879_v55 = vrot.slane %v3871_v13, %v9638_v3  ;;  %v3886_v48 = vrot.slane %v3872_v0, %v9638_v3 }
 0x84f   : > { %v3759_v0 = vpop.trf.xlu1 }
 0x851   : > { %v3727_v52 = vpop.trf.xlu0 }
 0x852   : > { %v3887_v58 = vcombine.low %v3663_v50, %v3727_v52  ;;  %v3888_v41 = vcombine.high %v3663_v50, %v3727_v52 }
 0x854   : > { %v3895_v37 = vrot.slane %v3887_v58, %v9638_v3  ;;  %v3902_v29 = vrot.slane %v3888_v41, %v9638_v3 }
 0x856   : > { %v3935_v46 = vcombine.low %v3879_v55, %v3895_v37  ;;  %v3936_v53 = vcombine.high %v3879_v55, %v3895_v37  ;;  %v3951_v45 = vcombine.low %v3886_v48, %v3902_v29  ;;  %v3952_v59 = vcombine.high %v3886_v48, %v3902_v29 }
 0x857   : > { %v3823_v41 = vpop.trf.xlu1 }
 0x858   : > { %v3943_v31 = vrot.slane %v3935_v46, %v9646_v19  ;;  %v3950_v34 = vrot.slane %v3936_v53, %v9646_v19  ;;  %v3959_v38 = vrot.slane %v3951_v45, %v9646_v19  ;;  %v3966_v40 = vrot.slane %v3952_v59, %v9646_v19 }
 0x859   : > { %v3791_v58 = vpop.trf.xlu0  ;;  %v3903_v37 = vcombine.low %v3759_v0, %v3823_v41  ;;  %v3904_v53 = vcombine.high %v3759_v0, %v3823_v41  ;;  %v9016_v0 = vld [vmem:[%s9517_s23 + $0x38] sm:$0xff]  }
 0x85a   : > { %v8438_v33 = vcombine.low %v3943_v31, %v3950_v34  ;;  %v8440_v8 = vcombine.high %v3943_v31, %v3950_v34  ;;  %v8442_v18 = vcombine.low %v3959_v38, %v3966_v40  ;;  %v8444_v36 = vcombine.high %v3959_v38, %v3966_v40  ;;  %8858 = vmatpush3.bf16.msra.mxu0 %v9016_v0 }
 0x85b   : > { %v3911_v59 = vrot.slane %v3903_v37, %v9638_v3  ;;  %8859 = vmatprep.subr.bf16.mxu0 %v9313_v6 }
 0x85c   : > { %v10782_v47 = vrot.slane %v8438_v33, %v9638_v3  ;;  %v10785_v14 = vrot.slane %v8440_v8, %v9638_v3  ;;  %v10788_v20 = vrot.slane %v8442_v18, %v9638_v3  ;;  %v10791_v7 = vrot.slane %v8444_v36, %v9638_v3 }
 0x85e   : > { %v4071_v11 = vcombine.low %v10782_v47, %v10785_v14  ;;  %v4103_v39 = vcombine.low %v10788_v20, %v10791_v7 }
 0x860   : > { %v10798_v2 = vrot.slane %v4071_v11, %v9646_v19  ;;  %v10801_v27 = vrot.slane %v4103_v39, %v9646_v19 }
 0x861   : > { %v3855_v55 = vpop.trf.xlu0 }
 0x862   : > { %v4135_v21 = vcombine.low %v10798_v2, %v10801_v27  ;;  %v3919_v29 = vcombine.low %v3791_v58, %v3855_v55  ;;  %v3920_v45 = vcombine.high %v3791_v58, %v3855_v55 }
 0x864   : > { %v3927_v31 = vrot.slane %v3919_v29, %v9638_v3  ;;  %v3934_v33 = vrot.slane %v3920_v45, %v9638_v3 }
 0x8f1   : > { %v6698_v63 = vpop.f32.mrf.mxu0 }
 0x8f2   : > { %7034 = vxpose.xlu1.b32.start [1/2] (short) (narrow) %v6698_v63, 8  ;;  %v3918_v63 = vrot.slane %v3904_v53, %v9638_v3 }
 0x8f3   : > { %v8813_v61 = vpop.f32.mrf.mxu0  ;;  %v6745_v17 = vpop.f32.mrf.mxu1 }
 0x8f4   : > { %7066 = vxpose.xlu0.b32.start [1/2] (short) (narrow) %v6745_v17, 8 }
 0x8f5   : > { %v6701_v49 = vpop.f32.mrf.mxu0  ;;  %v8819_v35 = vpop.f32.mrf.mxu1 }
 0x8f6   : > { %7035 = vxpose.xlu1.b32.end [2/2] (short) (narrow) %v6701_v49, 8  ;;  %v3967_v49 = vcombine.low %v3911_v59, %v3927_v31  ;;  %v3968_v35 = vcombine.high %v3911_v59, %v3927_v31  ;;  %v9017_v31 = vld [vmem:[%s9517_s23 + $0x30] sm:$0xff]  }
 0x8f7   : > { %v8814_v30 = vpop.f32.mrf.mxu0  ;;  %v6748_v26 = vpop.f32.mrf.mxu1  ;;  %8860 = vmatpush3.bf16.msra.mxu0 %v9017_v31  ;;  %v9022_v31 = vld [vmem:[%s9517_s23 + $0x8] sm:$0xff]  }
 0x8f8   : > { %7067 = vxpose.xlu0.b32.end [2/2] (short) (narrow) %v6748_v26, 8  ;;  %8861 = vmatprep.subr.bf16.mxu0 %v9313_v6 }
 0x8f9   : > { %v8820_v54 = vpop.f32.mrf.mxu1  ;;  %v6792_v62 = vpop.f32.mrf.mxu0 }
 0x8fa   : > { %7098 = vxpose.xlu1.b32.start [1/2] (short) (narrow) %v6792_v62, 8  ;;  %v3983_v54 = vcombine.low %v3918_v63, %v3934_v33  ;;  %v3984_v62 = vcombine.high %v3918_v63, %v3934_v33 }
 0x8fb   : > { %v8825_v23 = vpop.f32.mrf.mxu0  ;;  %v6839_v43 = vpop.f32.mrf.mxu1 }
 0x8fc   : > { %7130 = vxpose.xlu0.b32.start [1/2] (short) (narrow) %v6839_v43, 8 }
 0x8fd   : > { %v6795_v42 = vpop.f32.mrf.mxu0  ;;  %v8831_v44 = vpop.f32.mrf.mxu1 }
 0x8fe   : > { %7099 = vxpose.xlu1.b32.end [2/2] (short) (narrow) %v6795_v42, 8  ;;  %v3975_v42 = vrot.slane %v3967_v49, %v9646_v19  ;;  %v3982_v44 = vrot.slane %v3968_v35, %v9646_v19  ;;  %v4136_v35 = vcombine.high %v10798_v2, %v10801_v27 }
 0x8ff   : > { %v8826_v60 = vpop.f32.mrf.mxu0  ;;  %v6842_v12 = vpop.f32.mrf.mxu1 }
 0x900   : > { %7131 = vxpose.xlu0.b32.end [2/2] (short) (narrow) %v6842_v12, 8  ;;  %v8441_v58 = vcombine.high %v3975_v42, %v3982_v44 }
 0x901   : > { %v8832_v24 = vpop.f32.mrf.mxu1  ;;  %v6886_v32 = vpop.f32.mrf.mxu0 }
 0x902   : > { %7162 = vxpose.xlu1.b32.start [1/2] (short) (narrow) %v6886_v32, 8 }
 0x903   : > { %v8837_v51 = vpop.f32.mrf.mxu0  ;;  %v6933_v15 = vpop.f32.mrf.mxu1 }
 0x904   : > { %7194 = vxpose.xlu0.b32.start [1/2] (short) (narrow) %v6933_v15, 8  ;;  %v3991_v51 = vrot.slane %v3983_v54, %v9646_v19  ;;  %v3998_v15 = vrot.slane %v3984_v62, %v9646_v19 }
 0x905   : > { %v6889_v10 = vpop.f32.mrf.mxu0  ;;  %v8843_v56 = vpop.f32.mrf.mxu1 }
 0x906   : > { %7163 = vxpose.xlu1.b32.end [2/2] (short) (narrow) %v6889_v10, 8  ;;  %v4072_v56 = vcombine.high %v10782_v47, %v10785_v14  ;;  %v8443_v47 = vcombine.low %v3991_v51, %v3998_v15  ;;  %v8445_v37 = vcombine.high %v3991_v51, %v3998_v15  ;;  %v9019_v51 = vld [vmem:[%s9517_s23 + $0x20] sm:$0xff]  }
 0x907   : > { %v8838_v16 = vpop.f32.mrf.mxu0  ;;  %v6936_v57 = vpop.f32.mrf.mxu1 }
 0x908   : > { %7195 = vxpose.xlu0.b32.end [2/2] (short) (narrow) %v6936_v57, 8  ;;  %v4104_v16 = vcombine.high %v10788_v20, %v10791_v7  ;;  %v4086_v14 = vrot.slane %v4072_v56, %v9646_v19 }
 0x909   : > { %v8844_v1 = vpop.f32.mrf.mxu1  ;;  %v6980_v5 = vpop.f32.mrf.mxu0 }
 0x90a   : > { %7226 = vxpose.xlu1.b32.start [1/2] (short) (narrow) %v6980_v5, 8  ;;  %v4118_v20 = vrot.slane %v4104_v16, %v9646_v19 }
 0x90b   : > { %v8849_v25 = vpop.f32.mrf.mxu0  ;;  %v7027_v4 = vpop.f32.mrf.mxu1 }
 0x90c   : > { %7258 = vxpose.xlu0.b32.start [1/2] (short) (narrow) %v7027_v4, 8  ;;  %v8439_v4 = vcombine.low %v3975_v42, %v3982_v44  ;;  %v4138_v15 = vcombine.high %v4086_v14, %v4118_v20 }
 0x90d   : > { %v6983_v9 = vpop.f32.mrf.mxu0  ;;  %v8855_v22 = vpop.f32.mrf.mxu1 }
 0x90e   : > { %7227 = vxpose.xlu1.b32.end [2/2] (short) (narrow) %v6983_v9, 8 }
 0x90f   : > { %v8850_v50 = vpop.f32.mrf.mxu0  ;;  %v7030_v52 = vpop.f32.mrf.mxu1 }
 0x910   : > { %7259 = vxpose.xlu0.b32.end [2/2] (short) (narrow) %v7030_v52, 8 }
 0x911   : > { %v8856_v13 = vpop.f32.mrf.mxu1 }
 0x96e   : > { %v7050_v48 = vpop.trf.xlu1 }
 0x970   : > { %v7082_v46 = vpop.trf.xlu0 }
 0x976   : > { %v7114_v34 = vpop.trf.xlu1 }
 0x977   : > { %v7290_v38 = vcombine.low %v7050_v48, %v7114_v34  ;;  %v7291_v40 = vcombine.high %v7050_v48, %v7114_v34  ;;  %v10837_v34 = vrot.slane %v8439_v4, %v9638_v3 }
 0x978   : > { %v7146_v8 = vpop.trf.xlu0 }
 0x979   : > { %v7306_v18 = vcombine.low %v7082_v46, %v7146_v8  ;;  %v7307_v36 = vcombine.high %v7082_v46, %v7146_v8  ;;  %v7298_v61 = vrot.slane %v7290_v38, %v9638_v3  ;;  %v7305_v17 = vrot.slane %v7291_v40, %v9638_v3 }
 0x97a   : > { %v10840_v38 = vrot.slane %v8441_v58, %v9638_v3  ;;  %v10849_v8 = vrot.slane %v8443_v47, %v9638_v3 }
 0x97b   : > { %v7314_v30 = vrot.slane %v7306_v18, %v9638_v3  ;;  %v7321_v26 = vrot.slane %v7307_v36, %v9638_v3 }
 0x97d   : > { %v7354_v11 = vcombine.low %v7298_v61, %v7314_v30  ;;  %v7355_v39 = vcombine.high %v7298_v61, %v7314_v30  ;;  %v7370_v23 = vcombine.low %v7305_v17, %v7321_v26  ;;  %v7371_v43 = vcombine.high %v7305_v17, %v7321_v26  ;;  %v9018_v17 = vld [vmem:[%s9517_s23 + $0x28] sm:$0xff]  }
 0x97e   : > { %v7178_v10 = vpop.trf.xlu1  ;;  %v4137_v61 = vcombine.low %v4086_v14, %v4118_v20  ;;  %8862 = vmatpush3.bf16.msra.mxu0 %v9018_v17 }
 0x97f   : > { %v7362_v60 = vrot.slane %v7354_v11, %v9646_v19  ;;  %v7369_v12 = vrot.slane %v7355_v39, %v9646_v19  ;;  %v7378_v24 = vrot.slane %v7370_v23, %v9646_v19  ;;  %v7385_v32 = vrot.slane %v7371_v43, %v9646_v19  ;;  %8863 = vmatprep.subr.bf16.mxu0 %v9313_v6 }
 0x980   : > { %v7210_v9 = vpop.trf.xlu0  ;;  %v4070_v23 = vrot.slane %v8445_v37, %v9638_v3 }
 0x981   : > { %v8466_v57 = vcombine.low %v7362_v60, %v7369_v12  ;;  %v8468_v1 = vcombine.high %v7362_v60, %v7369_v12  ;;  %v8470_v5 = vcombine.low %v7378_v24, %v7385_v32  ;;  %v8472_v25 = vcombine.high %v7378_v24, %v7385_v32 }
 0x982   : > { %8864 = vmatpush3.bf16.msra.mxu0 %v9019_v51 }
 0x983   : > { %v7434_v22 = vrot.slane %v8466_v57, %v9638_v3  ;;  %v7450_v50 = vrot.slane %v8468_v1, %v9638_v3  ;;  %v7466_v52 = vrot.slane %v8470_v5, %v9638_v3  ;;  %v7482_v13 = vrot.slane %v8472_v25, %v9638_v3  ;;  %8865 = vmatprep.subr.bf16.mxu0 %v9313_v6 }
 0x984   : > { %v4087_v5 = vcombine.low %v10837_v34, %v10840_v38  ;;  %v4119_v25 = vcombine.low %v10849_v8, %v4070_v23 }
 0x985   : > { %v7491_v7 = vcombine.high %v7434_v22, %v7450_v50  ;;  %v7523_v41 = vcombine.high %v7466_v52, %v7482_v13  ;;  %v7490_v55 = vcombine.low %v7434_v22, %v7450_v50  ;;  %v7522_v48 = vcombine.low %v7466_v52, %v7482_v13  ;;  %v9020_v52 = vld [vmem:[%s9517_s23 + $0x18] sm:$0xff]  }
 0x986   : > { %v7242_v29 = vpop.trf.xlu1  ;;  %v4095_v14 = vrot.slane %v4087_v5, %v9646_v19  ;;  %v4127_v20 = vrot.slane %v4119_v25, %v9646_v19  ;;  %8866 = vmatpush3.bf16.msra.mxu0 %v9020_v52 }
 0x987   : > { %v7322_v46 = vcombine.low %v7178_v10, %v7242_v29  ;;  %v7323_v53 = vcombine.high %v7178_v10, %v7242_v29  ;;  %v7505_v45 = vrot.slane %v7491_v7, %v9646_v19  ;;  %v7537_v59 = vrot.slane %v7523_v41, %v9646_v19  ;;  %8867 = vmatprep.subr.bf16.mxu0 %v9313_v6 }
 0x988   : > { %v7274_v40 = vpop.trf.xlu0  ;;  %v10843_v63 = vrot.slane %v7490_v55, %v9646_v19  ;;  %v10846_v33 = vrot.slane %v7522_v48, %v9646_v19  ;;  %v9021_v55 = vld [vmem:[%s9517_s23 + $0x10] sm:$0xff]   ;;  %v4140_v17 = vcombine.high %v4095_v14, %v4127_v20 }
 0x989   : > { %v7338_v18 = vcombine.low %v7210_v9, %v7274_v40  ;;  %v7339_v36 = vcombine.high %v7210_v9, %v7274_v40  ;;  %v7556_v49 = vcombine.low %v7505_v45, %v7537_v59  ;;  %v7330_v54 = vrot.slane %v7322_v46, %v9638_v3 }
 0x98a   : > { %v7555_v30 = vcombine.high %v10843_v63, %v10846_v33  ;;  %v7554_v26 = vcombine.low %v10843_v63, %v10846_v33  ;;  %v7337_v62 = vrot.slane %v7323_v53, %v9638_v3  ;;  %v7557_v44 = vcombine.high %v7505_v45, %v7537_v59  ;;  %8868 = vmatpush3.bf16.msra.mxu0 %v9021_v55  ;;  %v9027_v55 = vld [vmem:[%s9540_s13 + $0xe8] ss:$16 sps:$4 sm:$0xff]  }
 0x98b   : > { %v7346_v11 = vrot.slane %v7338_v18, %v9638_v3  ;;  %v7353_v39 = vrot.slane %v7339_v36, %v9638_v3  ;;  %v8954_v43 = vpack.i.bf16 %v7556_v49, %v4137_v61  ;;  %v4139_v53 = vcombine.low %v4095_v14, %v4127_v20  ;;  %8869 = vmatprep.subr.bf16.mxu0 %v9313_v6 }
 0x98c   : > { %v8949_v42 = vpack.i.bf16 %v7555_v30, %v4136_v35  ;;  %v8959_v1 = vpack.i.bf16 %v7557_v44, %v4138_v15  ;;  %v4120_v59 = vcombine.high %v10849_v8, %v4070_v23  ;;  %v9023_v35 = vld [vmem:[%s9517_s23] sm:$0xff]  }
 0x98d   : > { %v7386_v60 = vcombine.low %v7330_v54, %v7346_v11  ;;  %v7387_v12 = vcombine.high %v7330_v54, %v7346_v11  ;;  %v7402_v24 = vcombine.low %v7337_v62, %v7353_v39  ;;  %v7403_v32 = vcombine.high %v7337_v62, %v7353_v39  ;;  %8955 = vrot.lane.b32.xlu0 %v8954_v43, %s9321_s4 }
 0x98e   : > { %8950 = vrot.lane.b32.xlu1 %v8949_v42, %s9322_s24  ;;  %8870 = vmatpush3.bf16.msra.mxu0 %v9022_v31 }
 0x98f   : > { %v7394_v10 = vrot.slane %v7386_v60, %v9646_v19  ;;  %v7401_v56 = vrot.slane %v7387_v12, %v9646_v19  ;;  %v7410_v16 = vrot.slane %v7402_v24, %v9646_v19  ;;  %v7417_v57 = vrot.slane %v7403_v32, %v9646_v19  ;;  %8871 = vmatprep.subr.bf16.mxu0 %v9313_v6 }
 0x991   : > { %v8467_v4 = vcombine.low %v7394_v10, %v7401_v56  ;;  %v8469_v9 = vcombine.high %v7394_v10, %v7401_v56  ;;  %v8471_v22 = vcombine.low %v7410_v16, %v7417_v57  ;;  %v8473_v50 = vcombine.high %v7410_v16, %v7417_v57 }
 0x992   : > { %8960 = vrot.lane.b32.xlu1 %v8959_v1, %s9319_s12  ;;  %8872 = vmatpush3.bf16.msra.mxu0 %v9023_v35  ;;  %v9044_v35 = vld [vmem:[%s9540_s13 + $0x84] ss:$16 sps:$4 sm:$0xff]  }
 0x993   : > { %v7441_v13 = vrot.slane %v8467_v4, %v9638_v3  ;;  %v7457_v0 = vrot.slane %v8469_v9, %v9638_v3  ;;  %v7473_v58 = vrot.slane %v8471_v22, %v9638_v3  ;;  %v7489_v47 = vrot.slane %v8473_v50, %v9638_v3 }
 0x994   : > { %v4088_v3 = vcombine.high %v10837_v34, %v10840_v38  ;;  %v4134_v34 = vrot.slane %v4120_v59, %v9646_v19 }
 0x995   : > { %v7506_v7 = vcombine.low %v7441_v13, %v7457_v0  ;;  %v7538_v41 = vcombine.low %v7473_v58, %v7489_v47  ;;  %v7507_v29 = vcombine.high %v7441_v13, %v7457_v0  ;;  %v7539_v46 = vcombine.high %v7473_v58, %v7489_v47 }
 0x996   : > { %v4102_v49 = vrot.slane %v4088_v3, %v9646_v19  ;;  %v9178_v3 = vld [vmem:[#allocation7 + $0x8] sm:$0xff] }
 0x997   : > { %v7514_v48 = vrot.slane %v7506_v7, %v9646_v19  ;;  %v7546_v37 = vrot.slane %v7538_v41, %v9646_v19  ;;  %v7521_v36 = vrot.slane %v7507_v29, %v9646_v19  ;;  %v7553_v61 = vrot.slane %v7539_v46, %v9646_v19  ;;  %v9024_v7 = vld [vmem:[%s9540_s13 + $0xe0] ss:$16 sps:$4 sm:$0xff]   ;;  %v9026_v41 = vld [vmem:[%s9540_s13 + $0xe4] ss:$16 sps:$4 sm:$0xff]  }
 0x998   : > { %v4141_v30 = vcombine.low %v4102_v49, %v4134_v34  ;;  %v4142_v11 = vcombine.high %v4102_v49, %v4134_v34  ;;  %7921 = vmatprep.subr.bf16.mxu1 %v9026_v41  ;;  %v9177_v29 = vld [vmem:[#allocation7] sm:$0xff]  ;;  %v9041_v34 = vld [vmem:[%s9540_s13 + $0xac] ss:$16 sps:$4 sm:$0xff]  }
 0x999   : > { %v7558_v45 = vcombine.low %v7514_v48, %v7546_v37  ;;  %v7559_v18 = vcombine.high %v7514_v48, %v7546_v37  ;;  %v7560_v8 = vcombine.low %v7521_v36, %v7553_v61  ;;  %v7561_v62 = vcombine.high %v7521_v36, %v7553_v61  ;;  %v9029_v48 = vld [vmem:[%s9540_s13 + $0xec] ss:$16 sps:$4 sm:$0xff]   ;;  %7922 = vmatpush1.bf16.msra.mxu1 %v9024_v7  ;;  %v9030_v61 = vld [vmem:[%s9540_s13 + $0xc0] ss:$16 sps:$4 sm:$0xff]   ;;  %v9038_v49 = vld [vmem:[%s9540_s13 + $0xa4] ss:$16 sps:$4 sm:$0xff]  }
 0x99a   : > { %7964 = vmatprep.subr.bf16.mxu0 %v9029_v48  ;;  %v9035_v36 = vld [vmem:[%s9540_s13 + $0xcc] ss:$16 sps:$4 sm:$0xff]   ;;  %v9083_v48 = vld [vmem:[%s9545_s26 + $0x10] sm:$0xff]  }
 0x99b   : > { %v8964_v40 = vpack.i.bf16 %v7558_v45, %v4139_v53  ;;  %v8969_v38 = vpack.i.bf16 %v7559_v18, %v4140_v17  ;;  %v8974_v54 = vpack.i.bf16 %v7560_v8, %v4141_v30  ;;  %v8979_v39 = vpack.i.bf16 %v7561_v62, %v4142_v11  ;;  %v9032_v18 = vld [vmem:[%s9540_s13 + $0xc4] ss:$16 sps:$4 sm:$0xff]   ;;  %v9033_v17 = vld [vmem:[%s9540_s13 + $0xc8] ss:$16 sps:$4 sm:$0xff]   ;;  %v9047_v30 = vld [vmem:[%s9540_s13 + $0x8c] ss:$16 sps:$4 sm:$0xff]  }
 0x99c   : > { %7923 = vmatprep.subr.bf16.mxu1 %v9032_v18  ;;  %v9039_v8 = vld [vmem:[%s9540_s13 + $0xa8] ss:$16 sps:$4 sm:$0xff]   ;;  %v9050_v11 = vld [vmem:[%s9540_s13 + $0x64] ss:$16 sps:$4 sm:$0xff]  }
 0x99d   : > { %8965 = vrot.lane.b32.xlu1 %v8964_v40, %s9320_s25  ;;  %7924 = vmatpush1.bf16.msra.mxu1 %v9030_v61  ;;  %v9045_v62 = vld [vmem:[%s9540_s13 + $0x88] ss:$16 sps:$4 sm:$0xff]  }
 0x99e   : > { %7925 = vmatprep.subr.bf16.mxu1 %v9038_v49  ;;  %v9080_v7 = vld [vmem:[%s9545_s26 + $0x58] sm:$0xff]  }
 0x99f   : > { %v9081_v41 = vld [vmem:[%s9545_s26 + $0x18] sm:$0xff]  }
 0x9a1   : > { %8970 = vrot.lane.b32.xlu1 %v8969_v38, %s9316_s29  ;;  %v9036_v38 = vld [vmem:[%s9540_s13 + $0xa0] ss:$16 sps:$4 sm:$0xff]   ;;  %s11028_s29 = scalar_lea.vmem %s11014_s6, %s9525_s21 }
 0x9a2   : > { %7926 = vmatpush1.bf16.msra.mxu1 %v9036_v38 }
 0x9a3   : > { %7927 = vmatprep.subr.bf16.mxu1 %v9044_v35 }
 0x9a5   : > { %8975 = vrot.lane.b32.xlu1 %v8974_v54, %s9318_s16  ;;  %v9042_v54 = vld [vmem:[%s9540_s13 + $0x80] ss:$16 sps:$4 sm:$0xff]  }
 0x9a6   : > { %7928 = vmatpush1.bf16.msra.mxu1 %v9042_v54 }
 0x9a7   : > { %7929 = vmatprep.subr.bf16.mxu1 %v9050_v11 }
 0x9a9   : > { %8980 = vrot.lane.b32.xlu1 %v8979_v39, %s9317_s22  ;;  %v9053_v39 = vld [vmem:[%s9540_s13 + $0x6c] ss:$16 sps:$4 sm:$0xff]  }
 0x9ff   : > { %v8956_v42 = vpop.permute.xlu0 %8955 }
 0xa00   : > { %v8951_v23 = vpop.permute.xlu1 %8950  ;;  %v8958_v12 = vunpack.i.h.bf16 %v8956_v42  ;;  %v8957_v24 = vunpack.i.l.bf16 %v8956_v42  ;;  %v9059_v42 = vld [vmem:[%s9540_s13 + $0x4c] ss:$16 sps:$4 sm:$0xff]  }
 0xa01   : > { %v8953_v6 = vunpack.i.h.bf16 %v8951_v23  ;;  %v8952_v44 = vunpack.i.l.bf16 %v8951_v23  ;;  %v9048_v23 = vld [vmem:[%s9540_s13 + $0x60] ss:$16 sps:$4 sm:$0xff]  }
 0xa02   : > { %7930 = vmatpush1.bf16.msra.mxu1 %v9048_v23 }
 0xa03   : > { %v7590_v32 = vsel %vm2065_vm1, %v7554_v26, %v8953_v6  ;;  %v4171_v51 = vsel %vm2065_vm1, %v4135_v21, %v8952_v44  ;;  %v9054_v6 = vld [vmem:[%s9540_s13 + $0x40] ss:$16 sps:$4 sm:$0xff]   ;;  %v9057_v44 = vld [vmem:[%s9540_s13 + $0x48] ss:$16 sps:$4 sm:$0xff]  }
 0xa04   : > { %v8961_v19 = vpop.permute.xlu1 %8960  ;;  %v4173_v25 = vsel %vm4172_vm3, %v4171_v51, %v8957_v24  ;;  %v7591_v4 = vsel %vm4172_vm3, %v7590_v32, %v8958_v12  ;;  %v9065_v12 = vld [vmem:[%s9540_s13 + $0x2c] ss:$16 sps:$4 sm:$0xff]   ;;  %v9060_v24 = vld [vmem:[%s9540_s13 + $0x20] ss:$16 sps:$4 sm:$0xff]   ;;  %v9063_v32 = vld [vmem:[%s9540_s13 + $0x28] ss:$16 sps:$4 sm:$0xff]  }
 0xa05   : > { %v8963_v15 = vunpack.i.h.bf16 %v8961_v19  ;;  %v8962_v10 = vunpack.i.l.bf16 %v8961_v19  ;;  %v9051_v19 = vld [vmem:[%s9540_s13 + $0x68] ss:$16 sps:$4 sm:$0xff]   ;;  %v9068_v51 = vld [vmem:[%s9540_s13 + $0x4] ss:$16 sps:$4 sm:$0xff]  }
 0xa07   : > { %v4175_v26 = vsel %vm4174_vm4, %v4173_v25, %v8962_v10  ;;  %v7592_v9 = vsel %vm4174_vm4, %v7591_v4, %v8963_v15  ;;  %v9071_v15 = vld [vmem:[%s9540_s13 + $0xc] ss:$16 sps:$4 sm:$0xff]   ;;  %v9066_v10 = vld [vmem:[%s9540_s13] ss:$16 sps:$4 sm:$0xff]  }
 0xa0f   : > { %v8966_v43 = vpop.permute.xlu1 %8965 }
 0xa10   : > { %v8968_v56 = vunpack.i.h.bf16 %v8966_v43  ;;  %v8967_v16 = vunpack.i.l.bf16 %v8966_v43  ;;  %v9056_v43 = vld [vmem:[%s9540_s13 + $0x44] ss:$16 sps:$4 sm:$0xff]  }
 0xa11   : > { %7931 = vmatprep.subr.bf16.mxu1 %v9056_v43 }
 0xa12   : > { %v4177_v2 = vsel %vm4176_vm5, %v4175_v26, %v8967_v16  ;;  %v7593_v27 = vsel %vm4176_vm5, %v7592_v9, %v8968_v56  ;;  %7932 = vmatpush1.bf16.msra.mxu1 %v9054_v6  ;;  %v9069_v56 = vld [vmem:[%s9540_s13 + $0x8] ss:$16 sps:$4 sm:$0xff]   ;;  %v8482_v9 = vld [vmem:[%s11028_s29] ss:$0 sm:$0xff] }
 0xa13   : > { %v8971_v60 = vpop.permute.xlu1 %8970 }
 0xa14   : > { %v8973_v1 = vunpack.i.h.bf16 %v8971_v60  ;;  %v8972_v5 = vunpack.i.l.bf16 %v8971_v60  ;;  %v9062_v60 = vld [vmem:[%s9540_s13 + $0x24] ss:$16 sps:$4 sm:$0xff]  }
 0xa15   : > { %7933 = vmatprep.subr.bf16.mxu1 %v9062_v60 }
 0xa16   : > { %v4179_v22 = vsel %vm4178_vm6, %v4177_v2, %v8972_v5  ;;  %v7594_v50 = vsel %vm4178_vm6, %v7593_v27, %v8973_v1  ;;  %7934 = vmatpush1.bf16.msra.mxu1 %v9060_v24 }
 0xa17   : > { %v8976_v57 = vpop.permute.xlu1 %8975  ;;  %7935 = vmatprep.subr.bf16.mxu1 %v9068_v51 }
 0xa18   : > { %v8978_v63 = vunpack.i.h.bf16 %v8976_v57  ;;  %v8977_v33 = vunpack.i.l.bf16 %v8976_v57 }
 0xa1a   : > { %v4181_v0 = vsel %vm4180_vm7, %v4179_v22, %v8977_v33  ;;  %v7595_v58 = vsel %vm4180_vm7, %v7594_v50, %v8978_v63  ;;  %7936 = vmatpush1.bf16.msra.mxu1 %v9066_v10  ;;  %v9072_v50 = vld [vmem:[%s9545_s26 + $0x78] sm:$0xff]  }
 0xa1b   : > { %v8981_v21 = vpop.permute.xlu1 %8980  ;;  %8623 = vmatprep.subr.bf16.mxu1 %v9072_v50 }
 0xa1c   : > { %v8983_v52 = vunpack.i.h.bf16 %v8981_v21  ;;  %v8982_v13 = vunpack.i.l.bf16 %v8981_v21 }
 0xa1e   : > { %v4183_v47 = vsel %vm4182_vm8, %v4181_v0, %v8982_v13  ;;  %v7596_v14 = vsel %vm4182_vm8, %v7595_v58, %v8983_v52  ;;  %v9073_v52 = vld [vmem:[%s9545_s26 + $0x38] sm:$0xff]   ;;  %v9074_v13 = vld [vmem:[%s9545_s26 + $0x70] sm:$0xff]   ;;  %v9076_v58 = vld [vmem:[%s9545_s26 + $0x68] sm:$0xff]  }
 0xa1f   : > { %v7597_v20 = vpack.c.bf16 %v7596_v14, %v4183_v47  ;;  %v9075_v0 = vld [vmem:[%s9545_s26 + $0x30] sm:$0xff]   ;;  %v9077_v47 = vld [vmem:[%s9545_s26 + $0x28] sm:$0xff]   ;;  %v9078_v14 = vld [vmem:[%s9545_s26 + $0x60] sm:$0xff]  }
 0xa21   : > { %8874 = vmatmul.mubr.bf16.vlgmr.msra.gmra.mxu0 %v7597_v20  ;;  %v9079_v20 = vld [vmem:[%s9545_s26 + $0x20] sm:$0xff]  }
 0xa22   : > { %7996 = vmatprep.mubr.bf16.mxu0 %v9314_v28  ;;  %7965 = vmatpush1.bf16.msra.mxu0 %v9027_v55  ;;  %v9082_v55 = vld [vmem:[%s9545_s26 + $0x50] sm:$0xff]  }
 0xa23   : > { %7966 = vmatprep.subr.bf16.mxu0 %v9035_v36 }
 0xa26   : > { %7967 = vmatpush1.bf16.msra.mxu0 %v9033_v17 }
 0xa27   : > { %7968 = vmatprep.subr.bf16.mxu0 %v9041_v34 }
 0xa2a   : > { %7969 = vmatpush1.bf16.msra.mxu0 %v9039_v8 }
 0xa2b   : > { %7970 = vmatprep.subr.bf16.mxu0 %v9047_v30 }
 0xa2e   : > { %7971 = vmatpush1.bf16.msra.mxu0 %v9045_v62 }
 0xa2f   : > { %7972 = vmatprep.subr.bf16.mxu0 %v9053_v39 }
 0xa32   : > { %7973 = vmatpush1.bf16.msra.mxu0 %v9051_v19 }
 0xa33   : > { %7974 = vmatprep.subr.bf16.mxu0 %v9059_v42 }
 0xa36   : > { %7975 = vmatpush1.bf16.msra.mxu0 %v9057_v44 }
 0xa37   : > { %7976 = vmatprep.subr.bf16.mxu0 %v9065_v12 }
 0xa3a   : > { %7977 = vmatpush1.bf16.msra.mxu0 %v9063_v32 }
 0xa3b   : > { %7978 = vmatprep.subr.bf16.mxu0 %v9071_v15 }
 0xa3e   : > { %7979 = vmatpush1.bf16.msra.mxu0 %v9069_v56 }
 0xae1   : > { %v7696_v37 = vpop.f32.mrf.mxu0 }
 0xae2   : > { %v10916_v46 = vadd.f32 %v9177_v29, %v7696_v37  ;;  %v9084_v37 = vld [vmem:[%s9545_s26 + $0x48] sm:$0xff]  }
 0xae3   : > { %v8875_v53 = vpop.f32.mrf.mxu0  ;;  %v9085_v29 = vld [vmem:[%s9545_s26 + $0x8] sm:$0xff]  }
 0xae4   : > { %v7706_v28 = vmul.f32 %v10916_v46, %v10916_v46  ;;  %v9086_v53 = vld [vmem:[%s9545_s26 + $0x40] sm:$0xff]  }
 0xae5   : > { %v7699_v45 = vpop.f32.mrf.mxu0 }
 0xae6   : > { %v10920_v59 = vadd.f32 %v9178_v3, %v7699_v45  ;;  %7708 = vadd.xlane.f32.xlu0 %v7706_v28  ;;  %v9087_v28 = vld [vmem:[%s9545_s26] sm:$0xff]  }
 0xae7   : > { %v8876_v31 = vpop.f32.mrf.mxu0 }
 0xae8   : > { %v7707_v40 = vmul.f32 %v10920_v59, %v10920_v59 }
 0xaea   : > { %7710 = vadd.xlane.f32.xlu1 %v7707_v40 }
 0xb6f   : > { %v7709_v16 = vpop.xlane.xlu0 %7708 }
 0xb70   : > { %v7712_v57 = vmul.f32 0.0078125, %v7709_v16 }
 0xb72   : > { %v7714_v1 = vadd.f32 1e-06, %v7712_v57 }
 0xb73   : > { %v7711_v5 = vpop.xlane.xlu1 %7710 }
 0xb74   : > { %9156 = vrsqrt.f32 %v7714_v1  ;;  %v7713_v25 = vmul.f32 0.0078125, %v7711_v5 }
 0xb76   : > { %v7715_v4 = vadd.f32 1e-06, %v7713_v25 }
 0xb78   : > { %9158 = vrsqrt.f32 %v7715_v4 }
 0xb81   : > { %v9157_v63 = vpop.eup %9156 }
 0xb82   : > { %v7718_v33 = vmul.f32 %v9157_v63, %v10916_v46 }
 0xb84   : > { %v7726_v27 = vmul.f32 %v8482_v9, %v7718_v33 }
 0xb85   : > { %v9159_v26 = vpop.eup %9158 }
 0xb86   : > { %v7719_v2 = vmul.f32 %v9159_v26, %v10920_v59 }
 0xb88   : > { %v7727_v21 = vmul.f32 %v8482_v9, %v7719_v2 }
 0xb8a   : > { %v7728_v22 = vpack.c.bf16 %v7727_v21, %v7726_v27 }
 0xb8c   : > { %7954 = vmatmul.mubr.bf16.vlgmr.msra.gmra.mxu1 %v7728_v22  ;;  %7997 = vmatmul.mubr.bf16.vlgmr.msra.gmra.mxu0 %v7728_v22 }
 0xb8d   : > { %8624 = vmatpush3.bf16.msra.mxu1 %v9073_v52 }
 0xb8e   : > { %8625 = vmatprep.subr.bf16.mxu1 %v9074_v13 }
 0xb91   : > { %8626 = vmatpush3.bf16.msra.mxu1 %v9075_v0 }
 0xb92   : > { %8627 = vmatprep.subr.bf16.mxu1 %v9076_v58 }
 0xb95   : > { %8628 = vmatpush3.bf16.msra.mxu1 %v9077_v47 }
 0xb96   : > { %8629 = vmatprep.subr.bf16.mxu1 %v9078_v14 }
 0xb99   : > { %8630 = vmatpush3.bf16.msra.mxu1 %v9079_v20 }
 0xb9a   : > { %8631 = vmatprep.subr.bf16.mxu1 %v9080_v7 }
 0xb9d   : > { %8632 = vmatpush3.bf16.msra.mxu1 %v9081_v41 }
 0xb9e   : > { %8633 = vmatprep.subr.bf16.mxu1 %v9082_v55 }
 0xba1   : > { %8634 = vmatpush3.bf16.msra.mxu1 %v9083_v48 }
 0xba2   : > { %8635 = vmatprep.subr.bf16.mxu1 %v9084_v37 }
 0xba5   : > { %8636 = vmatpush3.bf16.msra.mxu1 %v9085_v29 }
 0xba6   : > { %8637 = vmatprep.subr.bf16.mxu1 %v9086_v53 }
 0xba9   : > { %8638 = vmatpush3.bf16.msra.mxu1 %v9087_v28 }
 0xc4c   : > { %v7955_v45 = vpop.f32.mrf.mxu1  ;;  %v7998_v12 = vpop.f32.mrf.mxu0 }
 0xc4d   : > { %v8007_v3 = vmul.f32 %v7955_v45, %v7955_v45 }
 0xc4e   : > { %v7957_v31 = vpop.f32.mrf.mxu1  ;;  %v8000_v10 = vpop.f32.mrf.mxu0 }
 0xc4f   : > { %v8011_v40 = vmul.f32 %v8007_v3, %v7955_v45  ;;  %v8008_v18 = vmul.f32 %v7957_v31, %v7957_v31 }
 0xc50   : > { %v7959_v36 = vpop.f32.mrf.mxu1  ;;  %v8002_v4 = vpop.f32.mrf.mxu0 }
 0xc51   : > { %v8015_v61 = vmul.f32 0.044715, %v8011_v40  ;;  %v8012_v17 = vmul.f32 %v8008_v18, %v7957_v31  ;;  %v8009_v49 = vmul.f32 %v7959_v36, %v7959_v36 }
 0xc52   : > { %v7961_v34 = vpop.f32.mrf.mxu1  ;;  %v8004_v21 = vpop.f32.mrf.mxu0 }
 0xc53   : > { %v8019_v38 = vadd.f32 %v8015_v61, %v7955_v45  ;;  %v8016_v8 = vmul.f32 0.044715, %v8012_v17  ;;  %v8013_v35 = vmul.f32 %v8009_v49, %v7959_v36  ;;  %v8010_v30 = vmul.f32 %v7961_v34, %v7961_v34 }
 0xc55   : > { %v8023_v54 = vmul.f32 0.7978846, %v8019_v38  ;;  %v8020_v62 = vadd.f32 %v8016_v8, %v7957_v31  ;;  %v8017_v11 = vmul.f32 0.044715, %v8013_v35  ;;  %v8014_v39 = vmul.f32 %v8010_v30, %v7961_v34 }
 0xc57   : > { %9160 = vtanh.f32 %v8023_v54  ;;  %v8024_v23 = vmul.f32 0.7978846, %v8020_v62  ;;  %v8021_v19 = vadd.f32 %v8017_v11, %v7959_v36  ;;  %v8018_v43 = vmul.f32 0.044715, %v8014_v39 }
 0xc59   : > { %9162 = vtanh.f32 %v8024_v23  ;;  %v8025_v42 = vmul.f32 0.7978846, %v8021_v19  ;;  %v8022_v6 = vadd.f32 %v8018_v43, %v7961_v34 }
 0xc5b   : > { %9164 = vtanh.f32 %v8025_v42  ;;  %v8026_v44 = vmul.f32 0.7978846, %v8022_v6 }
 0xc5d   : > { %9166 = vtanh.f32 %v8026_v44 }
 0xc64   : > { %v9161_v60 = vpop.eup %9160 }
 0xc65   : > { %v8031_v32 = vadd.f32 1.0, %v9161_v60 }
 0xc66   : > { %v9163_v24 = vpop.eup %9162 }
 0xc67   : > { %v8032_v51 = vadd.f32 1.0, %v9163_v24  ;;  %v8035_v1 = vmul.f32 0.5, %v8031_v32 }
 0xc68   : > { %v9165_v15 = vpop.eup %9164 }
 0xc69   : > { %v8036_v56 = vmul.f32 0.5, %v8032_v51  ;;  %v8033_v16 = vadd.f32 1.0, %v9165_v15  ;;  %v8039_v9 = vmul.f32 %v8035_v1, %v7955_v45 }
 0xc6a   : > { %v9167_v57 = vpop.eup %9166 }
 0xc6b   : > { %v8037_v5 = vmul.f32 0.5, %v8033_v16  ;;  %v8034_v25 = vadd.f32 1.0, %v9167_v57  ;;  %v8040_v63 = vmul.f32 %v8036_v56, %v7957_v31  ;;  %v8043_v52 = vmul.f32 %v8039_v9, %v7998_v12 }
 0xc6d   : > { %v8041_v33 = vmul.f32 %v8037_v5, %v7959_v36  ;;  %v8038_v26 = vmul.f32 0.5, %v8034_v25  ;;  %v8044_v22 = vmul.f32 %v8040_v63, %v8000_v10 }
 0xc6f   : > { %v8042_v2 = vmul.f32 %v8038_v26, %v7961_v34  ;;  %v8045_v27 = vmul.f32 %v8041_v33, %v8002_v4 }
 0xc71   : > { %v8046_v50 = vmul.f32 %v8042_v2, %v8004_v21  ;;  %v8047_v0 = vpack.c.bf16 %v8045_v27, %v8043_v52 }
 0xc73   : > { %v8048_v13 = vpack.c.bf16 %v8046_v50, %v8044_v22 }
 0xc75   : > { %8209 = vmatprep.mubr.bf16.mxu1 %v8048_v13 }
 0xc76   : > { %8210 = vmatmul.mubr.bf16.vlgmr.msra.gmra.mxu1 %v8047_v0 }
 0xd36   : > { %v8639_v58 = vpop.f32.mrf.mxu1 }
 0xd38   : > { %v8640_v47 = vpop.f32.mrf.mxu1 }
 0xd39   : > { %v8641_v14 = vadd.f32 %v8640_v47, %v8639_v58 }
 0xd3a   : > { %v8642_v20 = vpop.f32.mrf.mxu1 }
 0xd3b   : > { %v8218_v7 = vadd.f32 %v8641_v14, %v10916_v46  ;;  %8223 = sbr.rel (%p8531_p1) target bundleno = 3394 (0xd42), region = 76 }
 0xd3c   : > { %v8643_v41 = vpop.f32.mrf.mxu1 }
 0xd3d   : > { %v8644_v55 = vadd.f32 %v8643_v41, %v8642_v20 }
 0xd3f   : > { %v8219_v48 = vadd.f32 %v8644_v55, %v10920_v59 }
 0xd40   : > { %8224 = vst [vmem:[#allocation7] sm:$0xff] %v8218_v7 }
 0xd41   : > { %8225 = vst [vmem:[#allocation7 + $0x8] sm:$0xff] %v8219_v48 }
 0xd42 PF: > { %p8532_p4 = scmp.ne.s32.totalorder %s9402_s17, 1 }
 0xd44   : > { %8229 = sbr.rel (%p8532_p4) target bundleno = 3568 (0xdf0), region = 80 }
 0xd49   : > { %v8231_v37 = vmul.f32 %v8218_v7, %v8218_v7  ;;  %v8232_v29 = vmul.f32 %v8219_v48, %v8219_v48  ;;  %v8533_v40 = vld [vmem:[%s11017_s9] ss:$0 sm:$0xff] }
 0xd4b   : > { %8233 = vadd.xlane.f32.xlu0 %v8231_v37 }
 0xd4f   : > { %8235 = vadd.xlane.f32.xlu0 %v8232_v29 }
 0xdd4   : > { %v8234_v46 = vpop.xlane.xlu0 %8233 }
 0xdd5   : > { %v8237_v53 = vmul.f32 0.0078125, %v8234_v46 }
 0xdd7   : > { %v8239_v28 = vadd.f32 1e-06, %v8237_v53 }
 0xdd8   : > { %v8236_v45 = vpop.xlane.xlu0 %8235 }
 0xdd9   : > { %9179 = vrsqrt.f32 %v8239_v28  ;;  %v8238_v59 = vmul.f32 0.0078125, %v8236_v45 }
 0xddb   : > { %v8240_v3 = vadd.f32 1e-06, %v8238_v59 }
 0xddd   : > { %9181 = vrsqrt.f32 %v8240_v3 }
 0xde6   : > { %v9180_v31 = vpop.eup %9179 }
 0xde7   : > { %v8243_v18 = vmul.f32 %v9180_v31, %v8218_v7 }
 0xde9   : > { %v8251_v36 = vmul.f32 %v8533_v40, %v8243_v18 }
 0xdea   : > { %v9182_v61 = vpop.eup %9181 }
 0xdeb   : > { %8253 = vst [vmem:[#allocation7] sm:$0xff] %v8251_v36  ;;  %v8244_v17 = vmul.f32 %v9182_v61, %v8219_v48 }
 0xded   : > { %v8252_v49 = vmul.f32 %v8533_v40, %v8244_v17 }
 0xdef   : > { %8254 = vst [vmem:[#allocation7 + $0x8] sm:$0xff] %v8252_v49 }
 0xdf0 PF: > { %s9325_s22 = smov [#allocation7]  }
 0xdf1   : > { %s8261_s16 = sshll.u32 %s9325_s22, 4  ;;  %s8262_s16 = int_to_ptr.vmem [resolvable:$true] %s8261_s16 }
 0xdf2   : > { %s9239_s12 = scalar_lea.vmem %s8262_s16, 256  ;;  %p9246_p0 = scmp.lt.s32.totalorder %s8262_s16, %s8262_s16 }
 0xdf3   : > { %p9240_p6 = scmp.ne.s32.totalorder %s8262_s16, %s9239_s12  ;;  %p9247_p13 = scmp.lt.s32.totalorder %s9239_s12, %s9239_s12 }
 0xdf5   : > { %p9241_p10 = pnand %p9240_p6, %p8531_p1  ;;  %p9248_p9 = por %p9247_p13, %p9246_p0 }
 0xdf7   : > { %p9242_p12 = pneg %p9241_p10 }
 0xdf9   : > { %p9249_p2 = pnand %p9248_p9, %p9242_p12 }
 0xdfb   : > { %9252 = shalt.err (!%p9249_p2)
}
 0xdfc   : > { %s9326_s25 = smov 128   ;;  %s9327_s4 = smov 8  }
 0xdfd   : > { %8885 = dma.vmem_to_hbm [thread:$0]  (%p8531_p1), %s8262_s16, 256, %s11018_s10, [#allocation4], %s9326_s25, %s9326_s25, %s9327_s4  }
 0xdfe   : > { %9288 = dma.done.wait (%p8531_p1), [#allocation4], 256  }
 0xdff   : > { %9290 = vsyncadd (%p8531_p1), [#allocation4], 4294967040 }
 0xe00 PF: > { %s11029_s27 = sld [smem:[#allocation11_spill]]  ;;  %p24_p3 = scmp.ge.s32.totalorder %s9405_s18, 4  }
 0xe01   : > { %s11030_s13 = smov %s9297_s14  ;;  %s11031_s14 = smov %s9301_s15 }
 0xe02   : > { %s11033_s16 = smov %s9405_s18  ;;  %26 = sbr.rel (!%p24_p3) target bundleno = 8 (0x8), region = 134 }
 0xe06   : > { %s11032_s15 = smov %s11029_s27 }
 0xe07   :  { %8277 = vsyncpa [#allocation3], 1 }
 0xe08   :  { %8279 = vsyncpa [#allocation3 + $0x1], 1 }
 0xe09   :  { %8280 = vsyncpa [#allocation6], 1 }
 0xe0a   :  { %8282 = vsyncpa [#allocation6 + $0x1], 1 }
 0xe0b   :  { %8283 = vsyncpa [#allocation4], 1 }
 0xe0c   :  { %8285 = vsyncpa [#allocation4 + $0x1], 1 }

</bundles_post_ra>
